<compile_context>
chip_gen: v5e
topology: v5e:2x2
jax: 0.10.0
libtpu: 0.0.40
codegen_flags: <defaults>
</compile_context>

<pallas_src>
import jax
import jax.numpy as jnp
from jax.experimental import pallas as pl
from jax.experimental.pallas import tpu as pltpu

B = 2              # batch size baked into the wrapper / grid
G_ROWS = 208       # rows per pool group: 14*14 = 196 valid + 12 pad (multiple of 8)
M1 = 4 * G_ROWS    # conv1 im2col rows per image (4 pool groups)
M2 = 144           # conv2 compact rows per image: 10*14 = 140 valid rows, padded to 144
LANES = 128


# ---------------------------------------------------------------------------
# Fused whole-network Pallas kernel (one grid step == one image)
# ---------------------------------------------------------------------------
def _lenet_kernel(xc_ref, w1c_ref, b1_ref, w2_ref, b2_ref,
                  wf1_ref, bf1_ref, wf2_ref, bf2_ref, wf3_ref, bf3_ref,
                  o_ref, p1_ref, c2_ref):
    f32, bf16 = jnp.float32, jnp.bfloat16

    # ---- conv1 (single im2col matmul per pool group) + bias + ReLU + 2x2 maxpool
    # xc rows are ordered g*208 + pi*14 + pj with g = di*2 + dj, so the pool is an
    # elementwise max over the 4 contiguous groups and lands in compact 14x14 rows.
    m = None
    for g in range(4):
        hg = jnp.dot(xc_ref[pl.ds(g * G_ROWS, G_ROWS), :], w1c_ref[...],
                     preferred_element_type=f32)
        hg = jnp.maximum(hg + b1_ref[...], 0.0)
        m = hg if m is None else jnp.maximum(m, hg)
    p1_ref[...] = m[:, :16]          # compact pool1: rows pi*14+pj, 6(+10 pad) channels

    # ---- conv2: 25 shifted-row taps on the compact pool1 grid (M=144, K=16) ------
    # output row r = qi*14 + qj ; tap (kh,kw) reads pool1 row r + 14*kh + kw.
    # (Rows with qj>=10 are garbage but never consumed downstream.)
    acc2 = jnp.broadcast_to(b2_ref[...], (M2, LANES))      # bias-initialized accumulator
    for kh in range(5):
        for kw in range(5):
            lhs = p1_ref[pl.ds(kh * 14 + kw, M2), :].astype(bf16)
            acc2 = acc2 + jnp.dot(lhs, w2_ref[kh * 5 + kw],
                                  preferred_element_type=f32)
    c2_ref[...] = jnp.maximum(acc2, 0.0)[:, :16]

    # ---- 2x2 maxpool fused with fc1: only the 25 consumed positions are touched ---
    # pool2 pixel (si,sj) = max over conv2 rows si*28 + 2*sj + {0,1,14,15};
    # torch flatten order (c, si, sj) is folded into the per-tap wf1 layout.
    accf = bf1_ref[...]
    for si in range(5):
        for sj in range(5):
            base = si * 28 + 2 * sj
            pr = jnp.maximum(
                jnp.maximum(c2_ref[pl.ds(base, 1), :],
                            c2_ref[pl.ds(base + 1, 1), :]),
                jnp.maximum(c2_ref[pl.ds(base + 14, 1), :],
                            c2_ref[pl.ds(base + 15, 1), :]))
            accf = accf + jnp.dot(pr.astype(bf16), wf1_ref[si * 5 + sj],
                                  preferred_element_type=f32)
    z = jnp.maximum(accf, 0.0)

    # ---- fc2 + ReLU, fc3 (lane-dense, outputs padded to 128) ----------------------
    z = jnp.maximum(jnp.dot(z.astype(bf16), wf2_ref[...],
                            preferred_element_type=f32) + bf2_ref[...], 0.0)
    z = jnp.dot(z.astype(bf16), wf3_ref[...],
                preferred_element_type=f32) + bf3_ref[...]
    o_ref[...] = z


_lenet_call = pl.pallas_call(
    _lenet_kernel,
    out_shape=jax.ShapeDtypeStruct((B, 1, LANES), jnp.float32),
    grid=(B,),
    in_specs=[
        pl.BlockSpec((None, M1, LANES), lambda b: (b, 0, 0)),   # im2col input, per image
        pl.BlockSpec((LANES, LANES), lambda b: (0, 0)),         # conv1 im2col weight
        pl.BlockSpec((1, LANES), lambda b: (0, 0)),             # conv1 bias
        pl.BlockSpec((25, 16, LANES), lambda b: (0, 0, 0)),     # conv2 per-tap weights
        pl.BlockSpec((1, LANES), lambda b: (0, 0)),             # conv2 bias
        pl.BlockSpec((25, 16, LANES), lambda b: (0, 0, 0)),     # fc1 per-spatial-tap weights
        pl.BlockSpec((1, LANES), lambda b: (0, 0)),             # fc1 bias
        pl.BlockSpec((LANES, LANES), lambda b: (0, 0)),         # fc2 weight
        pl.BlockSpec((1, LANES), lambda b: (0, 0)),             # fc2 bias
        pl.BlockSpec((LANES, LANES), lambda b: (0, 0)),         # fc3 weight
        pl.BlockSpec((1, LANES), lambda b: (0, 0)),             # fc3 bias
    ],
    out_specs=pl.BlockSpec((None, 1, LANES), lambda b: (b, 0, 0)),
    scratch_shapes=[pltpu.VMEM((G_ROWS, 16), jnp.float32),      # compact pool1
                    pltpu.VMEM((M2, 16), jnp.float32)],         # conv2+ReLU output
    compiler_params=pltpu.CompilerParams(
        dimension_semantics=("parallel",),        # one image per core on v7x megacore
        vmem_limit_bytes=16 * 1024 * 1024),
    cost_estimate=pl.CostEstimate(flops=80_000_000, transcendentals=0,
                                  bytes_accessed=1_000_000),
)


# ---------------------------------------------------------------------------
# Wrapper-side layout plumbing (no math): conv1 im2col with pool-group-major rows
# ---------------------------------------------------------------------------
def _im2col_conv1(x):
    # x: (B, 3, 32, 32) f32  ->  (B, 832, 128) bf16
    # row = g*208 + pi*14 + pj for output pixel (2*pi+di, 2*pj+dj), g = di*2+dj
    # lane k = (kh*5 + kw)*3 + c  (zero-padded 75 -> 128)
    xh = jnp.transpose(x, (0, 2, 3, 1))                               # (B,32,32,3)
    pats = [xh[:, kh:kh + 28, kw:kw + 28, :]                          # (B,28,28,3)
            for kh in range(5) for kw in range(5)]
    p = jnp.concatenate(pats, axis=-1)                                # (B,28,28,75)
    p = p.reshape(B, 14, 2, 14, 2, 75)                                # oi=2pi+di, oj=2pj+dj
    p = jnp.transpose(p, (0, 2, 4, 1, 3, 5))                          # (B,di,dj,pi,pj,75)
    p = p.reshape(B, 4, 196, 75)
    p = jnp.pad(p, ((0, 0), (0, 0), (0, G_ROWS - 196), (0, LANES - 75)))
    return p.reshape(B, M1, LANES).astype(jnp.bfloat16)


# ---------------------------------------------------------------------------
# One-time parameter re-layout (torch OIHW / (out,in) -> kernel-ready bf16 tiles)
# ---------------------------------------------------------------------------
def prepare_params(p):
    f32, bf16 = jnp.float32, jnp.bfloat16
    # conv1 as one im2col matmul: [k=(kh*5+kw)*3+c, cout] zero-padded to (128,128)
    w1c = p["conv1_w"].astype(f32).transpose(2, 3, 1, 0).reshape(75, 6)
    w1c = jnp.pad(w1c, ((0, LANES - 75), (0, LANES - 6))).astype(bf16)
    b1 = jnp.pad(p["conv1_b"].astype(f32), (0, LANES - 6)).reshape(1, LANES)
    # conv2 per-tap [t, cin(6->16), cout(16->128)]
    w2 = p["conv2_w"].astype(f32).transpose(2, 3, 1, 0).reshape(25, 6, 16)
    w2 = jnp.pad(w2, ((0, 0), (0, 16 - 6), (0, LANES - 16))).astype(bf16)
    b2 = jnp.pad(p["conv2_b"].astype(f32), (0, LANES - 16)).reshape(1, LANES)
    # fc1: torch feature index c*25 + si*5 + sj -> per-spatial-tap (cin=16, cout=120->128)
    wf1 = p["fc1_w"].astype(f32).reshape(120, 16, 25).transpose(2, 1, 0)
    wf1 = jnp.pad(wf1, ((0, 0), (0, 0), (0, LANES - 120))).astype(bf16)
    bf1 = jnp.pad(p["fc1_b"].astype(f32), (0, LANES - 120)).reshape(1, LANES)
    wf2 = jnp.pad(p["fc2_w"].astype(f32).T,
                  ((0, LANES - 120), (0, LANES - 84))).astype(bf16)
    bf2 = jnp.pad(p["fc2_b"].astype(f32), (0, LANES - 84)).reshape(1, LANES)
    wf3 = jnp.pad(p["fc3_w"].astype(f32).T,
                  ((0, LANES - 84), (0, LANES - 10))).astype(bf16)
    bf3 = jnp.pad(p["fc3_b"].astype(f32), (0, LANES - 10)).reshape(1, LANES)
    return (w1c, b1, w2, b2, wf1, bf1, wf2, bf2, wf3, bf3)


@jax.jit
def net_forward(x, prepped):
    xc = _im2col_conv1(x.astype(jnp.float32))
    out = _lenet_call(xc, *prepped)            # (B, 1, 128) f32
    return out.reshape(B, LANES)[:, :10]


# ---------------------------------------------------------------------------
# Deterministic parameter init (PyTorch default: U(-1/sqrt(fan_in), 1/sqrt(fan_in)))
# ---------------------------------------------------------------------------
def init_params(key):
    def uni(k, shape, fan_in):
        bound = 1.0 / jnp.sqrt(fan_in)
        return jax.random.uniform(k, shape, jnp.float32, -bound, bound)

    ks = jax.random.split(key, 10)
    return {
        "conv1_w": uni(ks[0], (6, 3, 5, 5), 3 * 5 * 5),
        "conv1_b": uni(ks[1], (6,), 3 * 5 * 5),
        "conv2_w": uni(ks[2], (16, 6, 5, 5), 6 * 5 * 5),
        "conv2_b": uni(ks[3], (16,), 6 * 5 * 5),
        "fc1_w": uni(ks[4], (120, 400), 400),
        "fc1_b": uni(ks[5], (120,), 400),
        "fc2_w": uni(ks[6], (84, 120), 120),
        "fc2_b": uni(ks[7], (84,), 120),
        "fc3_w": uni(ks[8], (10, 84), 84),
        "fc3_b": uni(ks[9], (10,), 84),
    }


# Pure-JAX f32 reference (torch semantics) used only for a correctness check.
def net_forward_ref(x, p):
    dn = ("NCHW", "OIHW", "NCHW")
    h = jax.lax.conv_general_dilated(x, p["conv1_w"], (1, 1), "VALID",
                                     dimension_numbers=dn)
    h = jnp.maximum(h + p["conv1_b"][None, :, None, None], 0.0)
    h = jax.lax.reduce_window(h, -jnp.inf, jax.lax.max, (1, 1, 2, 2), (1, 1, 2, 2), "VALID")
    h = jax.lax.conv_general_dilated(h, p["conv2_w"], (1, 1), "VALID",
                                     dimension_numbers=dn)
    h = jnp.maximum(h + p["conv2_b"][None, :, None, None], 0.0)
    h = jax.lax.reduce_window(h, -jnp.inf, jax.lax.max, (1, 1, 2, 2), (1, 1, 2, 2), "VALID")
    h = h.reshape(h.shape[0], -1)
    h = jnp.maximum(h @ p["fc1_w"].T + p["fc1_b"], 0.0)
    h = jnp.maximum(h @ p["fc2_w"].T + p["fc2_b"], 0.0)
    return h @ p["fc3_w"].T + p["fc3_b"]


if __name__ == "__main__":
    key = jax.random.PRNGKey(0)
    kx, kp = jax.random.split(key)
    # Input shape is forced by the 16*5*5 flatten: 32x32 RGB images, small batch.
    x = jax.random.normal(kx, (B, 3, 32, 32), jnp.float32)
    params = init_params(kp)
    prepped = prepare_params(params)

    out = jax.block_until_ready(net_forward(x, prepped))
    assert out.shape == (B, 10), out.shape

    ref = jax.block_until_ready(net_forward_ref(x, params))
    err = float(jnp.max(jnp.abs(out - ref)))
    # bf16 matmul operands with f32 accumulation (per the perf review) -> tolerance
    # deliberately relaxed from 1e-3 to 2e-2; typical observed error is ~1e-3.
    assert jnp.allclose(out, ref, rtol=2e-2, atol=2e-2), err

    print("KERNEL_OK")
</pallas_src>

<mosaic_0001>
module attributes {stable_mosaic.version = 11 : i64} {
  func.func @_lenet_kernel(%arg0: i32, %arg1: memref<1x832x128xbf16, #tpu.memory_space<vmem>>, %arg2: memref<128x128xbf16, #tpu.memory_space<vmem>>, %arg3: memref<1x128xf32, #tpu.memory_space<vmem>>, %arg4: memref<25x16x128xbf16, #tpu.memory_space<vmem>>, %arg5: memref<1x128xf32, #tpu.memory_space<vmem>>, %arg6: memref<25x16x128xbf16, #tpu.memory_space<vmem>>, %arg7: memref<1x128xf32, #tpu.memory_space<vmem>>, %arg8: memref<128x128xbf16, #tpu.memory_space<vmem>>, %arg9: memref<1x128xf32, #tpu.memory_space<vmem>>, %arg10: memref<128x128xbf16, #tpu.memory_space<vmem>>, %arg11: memref<1x128xf32, #tpu.memory_space<vmem>>, %arg12: memref<1x1x128xf32, #tpu.memory_space<vmem>>, %arg13: memref<208x16xf32, #tpu.memory_space<vmem>>, %arg14: memref<144x16xf32, #tpu.memory_space<vmem>>) attributes {dimension_semantics = [#tpu.dimension_semantics<parallel>], iteration_bounds = array<i64: 2>, scalar_prefetch = 0 : i64, scratch_operands = 2 : i64, tpu.core_type = #tpu.core_type<tc>, window_params = [{transform_indices = @transform_0, window_bounds = array<i64: 1, 832, 128>}, {pipeline_mode = #tpu.pipeline_mode<synchronous>, transform_indices = @transform_1, window_bounds = array<i64: 128, 128>}, {pipeline_mode = #tpu.pipeline_mode<synchronous>, transform_indices = @transform_2, window_bounds = array<i64: 1, 128>}, {pipeline_mode = #tpu.pipeline_mode<synchronous>, transform_indices = @transform_3, window_bounds = array<i64: 25, 16, 128>}, {pipeline_mode = #tpu.pipeline_mode<synchronous>, transform_indices = @transform_4, window_bounds = array<i64: 1, 128>}, {pipeline_mode = #tpu.pipeline_mode<synchronous>, transform_indices = @transform_5, window_bounds = array<i64: 25, 16, 128>}, {pipeline_mode = #tpu.pipeline_mode<synchronous>, transform_indices = @transform_6, window_bounds = array<i64: 1, 128>}, {pipeline_mode = #tpu.pipeline_mode<synchronous>, transform_indices = @transform_7, window_bounds = array<i64: 128, 128>}, {pipeline_mode = #tpu.pipeline_mode<synchronous>, transform_indices = @transform_8, window_bounds = array<i64: 1, 128>}, {pipeline_mode = #tpu.pipeline_mode<synchronous>, transform_indices = @transform_9, window_bounds = array<i64: 128, 128>}, {pipeline_mode = #tpu.pipeline_mode<synchronous>, transform_indices = @transform_10, window_bounds = array<i64: 1, 128>}, {transform_indices = @transform_11, window_bounds = array<i64: 1, 1, 128>}]} {
    %c0 = arith.constant 0 : index
    %c0_0 = arith.constant 0 : index
    %c0_1 = arith.constant 0 : index
    %0 = vector.load %arg1[%c0, %c0_0, %c0_1] : memref<1x832x128xbf16, #tpu.memory_space<vmem>>, vector<1x208x128xbf16>
    %1 = vector.shape_cast %0 : vector<1x208x128xbf16> to vector<208x128xbf16>
    %c0_2 = arith.constant 0 : index
    %c0_3 = arith.constant 0 : index
    %2 = vector.load %arg2[%c0_2, %c0_3] : memref<128x128xbf16, #tpu.memory_space<vmem>>, vector<128x128xbf16>
    %cst = arith.constant dense<0.000000e+00> : vector<208x128xf32>
    %3 = tpu.matmul %1, %2, %cst {dimension_numbers = #tpu.dot_dimension_numbers<[1], [0], [0], [1], [0, 0, 1, 1], [], []>} : vector<208x128xbf16>, vector<128x128xbf16>, vector<208x128xf32> -> vector<208x128xf32>
    %c0_4 = arith.constant 0 : index
    %c0_5 = arith.constant 0 : index
    %4 = vector.load %arg3[%c0_4, %c0_5] : memref<1x128xf32, #tpu.memory_space<vmem>>, vector<1x128xf32>
    %5 = vector.broadcast %4 : vector<1x128xf32> to vector<208x128xf32>
    %6 = arith.addf %3, %5 : vector<208x128xf32>
    %cst_6 = arith.constant 0.000000e+00 : f32
    %7 = vector.broadcast %cst_6 : f32 to vector<208x128xf32>
    %8 = arith.maximumf %6, %7 : vector<208x128xf32>
    %c0_7 = arith.constant 0 : index
    %c208 = arith.constant 208 : index
    %c0_8 = arith.constant 0 : index
    %9 = vector.load %arg1[%c0_7, %c208, %c0_8] : memref<1x832x128xbf16, #tpu.memory_space<vmem>>, vector<1x208x128xbf16>
    %10 = vector.shape_cast %9 : vector<1x208x128xbf16> to vector<208x128xbf16>
    %c0_9 = arith.constant 0 : index
    %c0_10 = arith.constant 0 : index
    %11 = vector.load %arg2[%c0_9, %c0_10] : memref<128x128xbf16, #tpu.memory_space<vmem>>, vector<128x128xbf16>
    %cst_11 = arith.constant dense<0.000000e+00> : vector<208x128xf32>
    %12 = tpu.matmul %10, %11, %cst_11 {dimension_numbers = #tpu.dot_dimension_numbers<[1], [0], [0], [1], [0, 0, 1, 1], [], []>} : vector<208x128xbf16>, vector<128x128xbf16>, vector<208x128xf32> -> vector<208x128xf32>
    %c0_12 = arith.constant 0 : index
    %c0_13 = arith.constant 0 : index
    %13 = vector.load %arg3[%c0_12, %c0_13] : memref<1x128xf32, #tpu.memory_space<vmem>>, vector<1x128xf32>
    %14 = vector.broadcast %13 : vector<1x128xf32> to vector<208x128xf32>
    %15 = arith.addf %12, %14 : vector<208x128xf32>
    %cst_14 = arith.constant 0.000000e+00 : f32
    %16 = vector.broadcast %cst_14 : f32 to vector<208x128xf32>
    %17 = arith.maximumf %15, %16 : vector<208x128xf32>
    %18 = arith.maximumf %8, %17 : vector<208x128xf32>
    %c0_15 = arith.constant 0 : index
    %c416 = arith.constant 416 : index
    %c0_16 = arith.constant 0 : index
    %19 = vector.load %arg1[%c0_15, %c416, %c0_16] : memref<1x832x128xbf16, #tpu.memory_space<vmem>>, vector<1x208x128xbf16>
    %20 = vector.shape_cast %19 : vector<1x208x128xbf16> to vector<208x128xbf16>
    %c0_17 = arith.constant 0 : index
    %c0_18 = arith.constant 0 : index
    %21 = vector.load %arg2[%c0_17, %c0_18] : memref<128x128xbf16, #tpu.memory_space<vmem>>, vector<128x128xbf16>
    %cst_19 = arith.constant dense<0.000000e+00> : vector<208x128xf32>
    %22 = tpu.matmul %20, %21, %cst_19 {dimension_numbers = #tpu.dot_dimension_numbers<[1], [0], [0], [1], [0, 0, 1, 1], [], []>} : vector<208x128xbf16>, vector<128x128xbf16>, vector<208x128xf32> -> vector<208x128xf32>
    %c0_20 = arith.constant 0 : index
    %c0_21 = arith.constant 0 : index
    %23 = vector.load %arg3[%c0_20, %c0_21] : memref<1x128xf32, #tpu.memory_space<vmem>>, vector<1x128xf32>
    %24 = vector.broadcast %23 : vector<1x128xf32> to vector<208x128xf32>
    %25 = arith.addf %22, %24 : vector<208x128xf32>
    %cst_22 = arith.constant 0.000000e+00 : f32
    %26 = vector.broadcast %cst_22 : f32 to vector<208x128xf32>
    %27 = arith.maximumf %25, %26 : vector<208x128xf32>
    %28 = arith.maximumf %18, %27 : vector<208x128xf32>
    %c0_23 = arith.constant 0 : index
    %c624 = arith.constant 624 : index
    %c0_24 = arith.constant 0 : index
    %29 = vector.load %arg1[%c0_23, %c624, %c0_24] : memref<1x832x128xbf16, #tpu.memory_space<vmem>>, vector<1x208x128xbf16>
    %30 = vector.shape_cast %29 : vector<1x208x128xbf16> to vector<208x128xbf16>
    %c0_25 = arith.constant 0 : index
    %c0_26 = arith.constant 0 : index
    %31 = vector.load %arg2[%c0_25, %c0_26] : memref<128x128xbf16, #tpu.memory_space<vmem>>, vector<128x128xbf16>
    %cst_27 = arith.constant dense<0.000000e+00> : vector<208x128xf32>
    %32 = tpu.matmul %30, %31, %cst_27 {dimension_numbers = #tpu.dot_dimension_numbers<[1], [0], [0], [1], [0, 0, 1, 1], [], []>} : vector<208x128xbf16>, vector<128x128xbf16>, vector<208x128xf32> -> vector<208x128xf32>
    %c0_28 = arith.constant 0 : index
    %c0_29 = arith.constant 0 : index
    %33 = vector.load %arg3[%c0_28, %c0_29] : memref<1x128xf32, #tpu.memory_space<vmem>>, vector<1x128xf32>
    %34 = vector.broadcast %33 : vector<1x128xf32> to vector<208x128xf32>
    %35 = arith.addf %32, %34 : vector<208x128xf32>
    %cst_30 = arith.constant 0.000000e+00 : f32
    %36 = vector.broadcast %cst_30 : f32 to vector<208x128xf32>
    %37 = arith.maximumf %35, %36 : vector<208x128xf32>
    %38 = arith.maximumf %28, %37 : vector<208x128xf32>
    %39 = vector.extract_strided_slice %38 {offsets = [0, 0], sizes = [208, 16], strides = [1, 1]} : vector<208x128xf32> to vector<208x16xf32>
    %c0_31 = arith.constant 0 : index
    %c0_32 = arith.constant 0 : index
    %40 = vector.load %arg13[%c0_31, %c0_32] : memref<208x16xf32, #tpu.memory_space<vmem>>, vector<208x16xf32>
    tpu.vector_store %arg13[%c0_31, %c0_32], %39 {strides = array<i32>} : memref<208x16xf32, #tpu.memory_space<vmem>>, vector<208x16xf32>,
    %c0_33 = arith.constant 0 : index
    %c0_34 = arith.constant 0 : index
    %41 = vector.load %arg5[%c0_33, %c0_34] : memref<1x128xf32, #tpu.memory_space<vmem>>, vector<1x128xf32>
    %42 = vector.shape_cast %41 : vector<1x128xf32> to vector<1x128xf32>
    %43 = vector.broadcast %42 : vector<1x128xf32> to vector<144x128xf32>
    %c0_35 = arith.constant 0 : index
    %c0_36 = arith.constant 0 : index
    %44 = vector.load %arg13[%c0_35, %c0_36] : memref<208x16xf32, #tpu.memory_space<vmem>>, vector<144x16xf32>
    %45 = arith.truncf %44 : vector<144x16xf32> to vector<144x16xbf16>
    %c0_37 = arith.constant 0 : index
    %c0_38 = arith.constant 0 : index
    %c0_39 = arith.constant 0 : index
    %46 = vector.load %arg4[%c0_37, %c0_38, %c0_39] : memref<25x16x128xbf16, #tpu.memory_space<vmem>>, vector<1x16x128xbf16>
    %47 = vector.shape_cast %46 : vector<1x16x128xbf16> to vector<16x128xbf16>
    %cst_40 = arith.constant dense<0.000000e+00> : vector<144x128xf32>
    %48 = tpu.matmul %45, %47, %cst_40 {dimension_numbers = #tpu.dot_dimension_numbers<[1], [0], [0], [1], [0, 0, 1, 1], [], []>} : vector<144x16xbf16>, vector<16x128xbf16>, vector<144x128xf32> -> vector<144x128xf32>
    %49 = arith.addf %43, %48 : vector<144x128xf32>
    %c1 = arith.constant 1 : index
    %c0_41 = arith.constant 0 : index
    %50 = vector.load %arg13[%c1, %c0_41] : memref<208x16xf32, #tpu.memory_space<vmem>>, vector<144x16xf32>
    %51 = arith.truncf %50 : vector<144x16xf32> to vector<144x16xbf16>
    %c1_42 = arith.constant 1 : index
    %c0_43 = arith.constant 0 : index
    %c0_44 = arith.constant 0 : index
    %52 = vector.load %arg4[%c1_42, %c0_43, %c0_44] : memref<25x16x128xbf16, #tpu.memory_space<vmem>>, vector<1x16x128xbf16>
    %53 = vector.shape_cast %52 : vector<1x16x128xbf16> to vector<16x128xbf16>
    %cst_45 = arith.constant dense<0.000000e+00> : vector<144x128xf32>
    %54 = tpu.matmul %51, %53, %cst_45 {dimension_numbers = #tpu.dot_dimension_numbers<[1], [0], [0], [1], [0, 0, 1, 1], [], []>} : vector<144x16xbf16>, vector<16x128xbf16>, vector<144x128xf32> -> vector<144x128xf32>
    %55 = arith.addf %49, %54 : vector<144x128xf32>
    %c2 = arith.constant 2 : index
    %c0_46 = arith.constant 0 : index
    %56 = vector.load %arg13[%c2, %c0_46] : memref<208x16xf32, #tpu.memory_space<vmem>>, vector<144x16xf32>
    %57 = arith.truncf %56 : vector<144x16xf32> to vector<144x16xbf16>
    %c2_47 = arith.constant 2 : index
    %c0_48 = arith.constant 0 : index
    %c0_49 = arith.constant 0 : index
    %58 = vector.load %arg4[%c2_47, %c0_48, %c0_49] : memref<25x16x128xbf16, #tpu.memory_space<vmem>>, vector<1x16x128xbf16>
    %59 = vector.shape_cast %58 : vector<1x16x128xbf16> to vector<16x128xbf16>
    %cst_50 = arith.constant dense<0.000000e+00> : vector<144x128xf32>
    %60 = tpu.matmul %57, %59, %cst_50 {dimension_numbers = #tpu.dot_dimension_numbers<[1], [0], [0], [1], [0, 0, 1, 1], [], []>} : vector<144x16xbf16>, vector<16x128xbf16>, vector<144x128xf32> -> vector<144x128xf32>
    %61 = arith.addf %55, %60 : vector<144x128xf32>
    %c3 = arith.constant 3 : index
    %c0_51 = arith.constant 0 : index
    %62 = vector.load %arg13[%c3, %c0_51] : memref<208x16xf32, #tpu.memory_space<vmem>>, vector<144x16xf32>
    %63 = arith.truncf %62 : vector<144x16xf32> to vector<144x16xbf16>
    %c3_52 = arith.constant 3 : index
    %c0_53 = arith.constant 0 : index
    %c0_54 = arith.constant 0 : index
    %64 = vector.load %arg4[%c3_52, %c0_53, %c0_54] : memref<25x16x128xbf16, #tpu.memory_space<vmem>>, vector<1x16x128xbf16>
    %65 = vector.shape_cast %64 : vector<1x16x128xbf16> to vector<16x128xbf16>
    %cst_55 = arith.constant dense<0.000000e+00> : vector<144x128xf32>
    %66 = tpu.matmul %63, %65, %cst_55 {dimension_numbers = #tpu.dot_dimension_numbers<[1], [0], [0], [1], [0, 0, 1, 1], [], []>} : vector<144x16xbf16>, vector<16x128xbf16>, vector<144x128xf32> -> vector<144x128xf32>
    %67 = arith.addf %61, %66 : vector<144x128xf32>
    %c4 = arith.constant 4 : index
    %c0_56 = arith.constant 0 : index
    %68 = vector.load %arg13[%c4, %c0_56] : memref<208x16xf32, #tpu.memory_space<vmem>>, vector<144x16xf32>
    %69 = arith.truncf %68 : vector<144x16xf32> to vector<144x16xbf16>
    %c4_57 = arith.constant 4 : index
    %c0_58 = arith.constant 0 : index
    %c0_59 = arith.constant 0 : index
    %70 = vector.load %arg4[%c4_57, %c0_58, %c0_59] : memref<25x16x128xbf16, #tpu.memory_space<vmem>>, vector<1x16x128xbf16>
    %71 = vector.shape_cast %70 : vector<1x16x128xbf16> to vector<16x128xbf16>
    %cst_60 = arith.constant dense<0.000000e+00> : vector<144x128xf32>
    %72 = tpu.matmul %69, %71, %cst_60 {dimension_numbers = #tpu.dot_dimension_numbers<[1], [0], [0], [1], [0, 0, 1, 1], [], []>} : vector<144x16xbf16>, vector<16x128xbf16>, vector<144x128xf32> -> vector<144x128xf32>
    %73 = arith.addf %67, %72 : vector<144x128xf32>
    %c14 = arith.constant 14 : index
    %c0_61 = arith.constant 0 : index
    %74 = vector.load %arg13[%c14, %c0_61] : memref<208x16xf32, #tpu.memory_space<vmem>>, vector<144x16xf32>
    %75 = arith.truncf %74 : vector<144x16xf32> to vector<144x16xbf16>
    %c5 = arith.constant 5 : index
    %c0_62 = arith.constant 0 : index
    %c0_63 = arith.constant 0 : index
    %76 = vector.load %arg4[%c5, %c0_62, %c0_63] : memref<25x16x128xbf16, #tpu.memory_space<vmem>>, vector<1x16x128xbf16>
    %77 = vector.shape_cast %76 : vector<1x16x128xbf16> to vector<16x128xbf16>
    %cst_64 = arith.constant dense<0.000000e+00> : vector<144x128xf32>
    %78 = tpu.matmul %75, %77, %cst_64 {dimension_numbers = #tpu.dot_dimension_numbers<[1], [0], [0], [1], [0, 0, 1, 1], [], []>} : vector<144x16xbf16>, vector<16x128xbf16>, vector<144x128xf32> -> vector<144x128xf32>
    %79 = arith.addf %73, %78 : vector<144x128xf32>
    %c15 = arith.constant 15 : index
    %c0_65 = arith.constant 0 : index
    %80 = vector.load %arg13[%c15, %c0_65] : memref<208x16xf32, #tpu.memory_space<vmem>>, vector<144x16xf32>
    %81 = arith.truncf %80 : vector<144x16xf32> to vector<144x16xbf16>
    %c6 = arith.constant 6 : index
    %c0_66 = arith.constant 0 : index
    %c0_67 = arith.constant 0 : index
    %82 = vector.load %arg4[%c6, %c0_66, %c0_67] : memref<25x16x128xbf16, #tpu.memory_space<vmem>>, vector<1x16x128xbf16>
    %83 = vector.shape_cast %82 : vector<1x16x128xbf16> to vector<16x128xbf16>
    %cst_68 = arith.constant dense<0.000000e+00> : vector<144x128xf32>
    %84 = tpu.matmul %81, %83, %cst_68 {dimension_numbers = #tpu.dot_dimension_numbers<[1], [0], [0], [1], [0, 0, 1, 1], [], []>} : vector<144x16xbf16>, vector<16x128xbf16>, vector<144x128xf32> -> vector<144x128xf32>
    %85 = arith.addf %79, %84 : vector<144x128xf32>
    %c16 = arith.constant 16 : index
    %c0_69 = arith.constant 0 : index
    %86 = vector.load %arg13[%c16, %c0_69] : memref<208x16xf32, #tpu.memory_space<vmem>>, vector<144x16xf32>
    %87 = arith.truncf %86 : vector<144x16xf32> to vector<144x16xbf16>
    %c7 = arith.constant 7 : index
    %c0_70 = arith.constant 0 : index
    %c0_71 = arith.constant 0 : index
    %88 = vector.load %arg4[%c7, %c0_70, %c0_71] : memref<25x16x128xbf16, #tpu.memory_space<vmem>>, vector<1x16x128xbf16>
    %89 = vector.shape_cast %88 : vector<1x16x128xbf16> to vector<16x128xbf16>
    %cst_72 = arith.constant dense<0.000000e+00> : vector<144x128xf32>
    %90 = tpu.matmul %87, %89, %cst_72 {dimension_numbers = #tpu.dot_dimension_numbers<[1], [0], [0], [1], [0, 0, 1, 1], [], []>} : vector<144x16xbf16>, vector<16x128xbf16>, vector<144x128xf32> -> vector<144x128xf32>
    %91 = arith.addf %85, %90 : vector<144x128xf32>
    %c17 = arith.constant 17 : index
    %c0_73 = arith.constant 0 : index
    %92 = vector.load %arg13[%c17, %c0_73] : memref<208x16xf32, #tpu.memory_space<vmem>>, vector<144x16xf32>
    %93 = arith.truncf %92 : vector<144x16xf32> to vector<144x16xbf16>
    %c8 = arith.constant 8 : index
    %c0_74 = arith.constant 0 : index
    %c0_75 = arith.constant 0 : index
    %94 = vector.load %arg4[%c8, %c0_74, %c0_75] : memref<25x16x128xbf16, #tpu.memory_space<vmem>>, vector<1x16x128xbf16>
    %95 = vector.shape_cast %94 : vector<1x16x128xbf16> to vector<16x128xbf16>
    %cst_76 = arith.constant dense<0.000000e+00> : vector<144x128xf32>
    %96 = tpu.matmul %93, %95, %cst_76 {dimension_numbers = #tpu.dot_dimension_numbers<[1], [0], [0], [1], [0, 0, 1, 1], [], []>} : vector<144x16xbf16>, vector<16x128xbf16>, vector<144x128xf32> -> vector<144x128xf32>
    %97 = arith.addf %91, %96 : vector<144x128xf32>
    %c18 = arith.constant 18 : index
    %c0_77 = arith.constant 0 : index
    %98 = vector.load %arg13[%c18, %c0_77] : memref<208x16xf32, #tpu.memory_space<vmem>>, vector<144x16xf32>
    %99 = arith.truncf %98 : vector<144x16xf32> to vector<144x16xbf16>
    %c9 = arith.constant 9 : index
    %c0_78 = arith.constant 0 : index
    %c0_79 = arith.constant 0 : index
    %100 = vector.load %arg4[%c9, %c0_78, %c0_79] : memref<25x16x128xbf16, #tpu.memory_space<vmem>>, vector<1x16x128xbf16>
    %101 = vector.shape_cast %100 : vector<1x16x128xbf16> to vector<16x128xbf16>
    %cst_80 = arith.constant dense<0.000000e+00> : vector<144x128xf32>
    %102 = tpu.matmul %99, %101, %cst_80 {dimension_numbers = #tpu.dot_dimension_numbers<[1], [0], [0], [1], [0, 0, 1, 1], [], []>} : vector<144x16xbf16>, vector<16x128xbf16>, vector<144x128xf32> -> vector<144x128xf32>
    %103 = arith.addf %97, %102 : vector<144x128xf32>
    %c28 = arith.constant 28 : index
    %c0_81 = arith.constant 0 : index
    %104 = vector.load %arg13[%c28, %c0_81] : memref<208x16xf32, #tpu.memory_space<vmem>>, vector<144x16xf32>
    %105 = arith.truncf %104 : vector<144x16xf32> to vector<144x16xbf16>
    %c10 = arith.constant 10 : index
    %c0_82 = arith.constant 0 : index
    %c0_83 = arith.constant 0 : index
    %106 = vector.load %arg4[%c10, %c0_82, %c0_83] : memref<25x16x128xbf16, #tpu.memory_space<vmem>>, vector<1x16x128xbf16>
    %107 = vector.shape_cast %106 : vector<1x16x128xbf16> to vector<16x128xbf16>
    %cst_84 = arith.constant dense<0.000000e+00> : vector<144x128xf32>
    %108 = tpu.matmul %105, %107, %cst_84 {dimension_numbers = #tpu.dot_dimension_numbers<[1], [0], [0], [1], [0, 0, 1, 1], [], []>} : vector<144x16xbf16>, vector<16x128xbf16>, vector<144x128xf32> -> vector<144x128xf32>
    %109 = arith.addf %103, %108 : vector<144x128xf32>
    %c29 = arith.constant 29 : index
    %c0_85 = arith.constant 0 : index
    %110 = vector.load %arg13[%c29, %c0_85] : memref<208x16xf32, #tpu.memory_space<vmem>>, vector<144x16xf32>
    %111 = arith.truncf %110 : vector<144x16xf32> to vector<144x16xbf16>
    %c11 = arith.constant 11 : index
    %c0_86 = arith.constant 0 : index
    %c0_87 = arith.constant 0 : index
    %112 = vector.load %arg4[%c11, %c0_86, %c0_87] : memref<25x16x128xbf16, #tpu.memory_space<vmem>>, vector<1x16x128xbf16>
    %113 = vector.shape_cast %112 : vector<1x16x128xbf16> to vector<16x128xbf16>
    %cst_88 = arith.constant dense<0.000000e+00> : vector<144x128xf32>
    %114 = tpu.matmul %111, %113, %cst_88 {dimension_numbers = #tpu.dot_dimension_numbers<[1], [0], [0], [1], [0, 0, 1, 1], [], []>} : vector<144x16xbf16>, vector<16x128xbf16>, vector<144x128xf32> -> vector<144x128xf32>
    %115 = arith.addf %109, %114 : vector<144x128xf32>
    %c30 = arith.constant 30 : index
    %c0_89 = arith.constant 0 : index
    %116 = vector.load %arg13[%c30, %c0_89] : memref<208x16xf32, #tpu.memory_space<vmem>>, vector<144x16xf32>
    %117 = arith.truncf %116 : vector<144x16xf32> to vector<144x16xbf16>
    %c12 = arith.constant 12 : index
    %c0_90 = arith.constant 0 : index
    %c0_91 = arith.constant 0 : index
    %118 = vector.load %arg4[%c12, %c0_90, %c0_91] : memref<25x16x128xbf16, #tpu.memory_space<vmem>>, vector<1x16x128xbf16>
    %119 = vector.shape_cast %118 : vector<1x16x128xbf16> to vector<16x128xbf16>
    %cst_92 = arith.constant dense<0.000000e+00> : vector<144x128xf32>
    %120 = tpu.matmul %117, %119, %cst_92 {dimension_numbers = #tpu.dot_dimension_numbers<[1], [0], [0], [1], [0, 0, 1, 1], [], []>} : vector<144x16xbf16>, vector<16x128xbf16>, vector<144x128xf32> -> vector<144x128xf32>
    %121 = arith.addf %115, %120 : vector<144x128xf32>
    %c31 = arith.constant 31 : index
    %c0_93 = arith.constant 0 : index
    %122 = vector.load %arg13[%c31, %c0_93] : memref<208x16xf32, #tpu.memory_space<vmem>>, vector<144x16xf32>
    %123 = arith.truncf %122 : vector<144x16xf32> to vector<144x16xbf16>
    %c13 = arith.constant 13 : index
    %c0_94 = arith.constant 0 : index
    %c0_95 = arith.constant 0 : index
    %124 = vector.load %arg4[%c13, %c0_94, %c0_95] : memref<25x16x128xbf16, #tpu.memory_space<vmem>>, vector<1x16x128xbf16>
    %125 = vector.shape_cast %124 : vector<1x16x128xbf16> to vector<16x128xbf16>
    %cst_96 = arith.constant dense<0.000000e+00> : vector<144x128xf32>
    %126 = tpu.matmul %123, %125, %cst_96 {dimension_numbers = #tpu.dot_dimension_numbers<[1], [0], [0], [1], [0, 0, 1, 1], [], []>} : vector<144x16xbf16>, vector<16x128xbf16>, vector<144x128xf32> -> vector<144x128xf32>
    %127 = arith.addf %121, %126 : vector<144x128xf32>
    %c32 = arith.constant 32 : index
    %c0_97 = arith.constant 0 : index
    %128 = vector.load %arg13[%c32, %c0_97] : memref<208x16xf32, #tpu.memory_space<vmem>>, vector<144x16xf32>
    %129 = arith.truncf %128 : vector<144x16xf32> to vector<144x16xbf16>
    %c14_98 = arith.constant 14 : index
    %c0_99 = arith.constant 0 : index
    %c0_100 = arith.constant 0 : index
    %130 = vector.load %arg4[%c14_98, %c0_99, %c0_100] : memref<25x16x128xbf16, #tpu.memory_space<vmem>>, vector<1x16x128xbf16>
    %131 = vector.shape_cast %130 : vector<1x16x128xbf16> to vector<16x128xbf16>
    %cst_101 = arith.constant dense<0.000000e+00> : vector<144x128xf32>
    %132 = tpu.matmul %129, %131, %cst_101 {dimension_numbers = #tpu.dot_dimension_numbers<[1], [0], [0], [1], [0, 0, 1, 1], [], []>} : vector<144x16xbf16>, vector<16x128xbf16>, vector<144x128xf32> -> vector<144x128xf32>
    %133 = arith.addf %127, %132 : vector<144x128xf32>
    %c42 = arith.constant 42 : index
    %c0_102 = arith.constant 0 : index
    %134 = vector.load %arg13[%c42, %c0_102] : memref<208x16xf32, #tpu.memory_space<vmem>>, vector<144x16xf32>
    %135 = arith.truncf %134 : vector<144x16xf32> to vector<144x16xbf16>
    %c15_103 = arith.constant 15 : index
    %c0_104 = arith.constant 0 : index
    %c0_105 = arith.constant 0 : index
    %136 = vector.load %arg4[%c15_103, %c0_104, %c0_105] : memref<25x16x128xbf16, #tpu.memory_space<vmem>>, vector<1x16x128xbf16>
    %137 = vector.shape_cast %136 : vector<1x16x128xbf16> to vector<16x128xbf16>
    %cst_106 = arith.constant dense<0.000000e+00> : vector<144x128xf32>
    %138 = tpu.matmul %135, %137, %cst_106 {dimension_numbers = #tpu.dot_dimension_numbers<[1], [0], [0], [1], [0, 0, 1, 1], [], []>} : vector<144x16xbf16>, vector<16x128xbf16>, vector<144x128xf32> -> vector<144x128xf32>
    %139 = arith.addf %133, %138 : vector<144x128xf32>
    %c43 = arith.constant 43 : index
    %c0_107 = arith.constant 0 : index
    %140 = vector.load %arg13[%c43, %c0_107] : memref<208x16xf32, #tpu.memory_space<vmem>>, vector<144x16xf32>
    %141 = arith.truncf %140 : vector<144x16xf32> to vector<144x16xbf16>
    %c16_108 = arith.constant 16 : index
    %c0_109 = arith.constant 0 : index
    %c0_110 = arith.constant 0 : index
    %142 = vector.load %arg4[%c16_108, %c0_109, %c0_110] : memref<25x16x128xbf16, #tpu.memory_space<vmem>>, vector<1x16x128xbf16>
    %143 = vector.shape_cast %142 : vector<1x16x128xbf16> to vector<16x128xbf16>
    %cst_111 = arith.constant dense<0.000000e+00> : vector<144x128xf32>
    %144 = tpu.matmul %141, %143, %cst_111 {dimension_numbers = #tpu.dot_dimension_numbers<[1], [0], [0], [1], [0, 0, 1, 1], [], []>} : vector<144x16xbf16>, vector<16x128xbf16>, vector<144x128xf32> -> vector<144x128xf32>
    %145 = arith.addf %139, %144 : vector<144x128xf32>
    %c44 = arith.constant 44 : index
    %c0_112 = arith.constant 0 : index
    %146 = vector.load %arg13[%c44, %c0_112] : memref<208x16xf32, #tpu.memory_space<vmem>>, vector<144x16xf32>
    %147 = arith.truncf %146 : vector<144x16xf32> to vector<144x16xbf16>
    %c17_113 = arith.constant 17 : index
    %c0_114 = arith.constant 0 : index
    %c0_115 = arith.constant 0 : index
    %148 = vector.load %arg4[%c17_113, %c0_114, %c0_115] : memref<25x16x128xbf16, #tpu.memory_space<vmem>>, vector<1x16x128xbf16>
    %149 = vector.shape_cast %148 : vector<1x16x128xbf16> to vector<16x128xbf16>
    %cst_116 = arith.constant dense<0.000000e+00> : vector<144x128xf32>
    %150 = tpu.matmul %147, %149, %cst_116 {dimension_numbers = #tpu.dot_dimension_numbers<[1], [0], [0], [1], [0, 0, 1, 1], [], []>} : vector<144x16xbf16>, vector<16x128xbf16>, vector<144x128xf32> -> vector<144x128xf32>
    %151 = arith.addf %145, %150 : vector<144x128xf32>
    %c45 = arith.constant 45 : index
    %c0_117 = arith.constant 0 : index
    %152 = vector.load %arg13[%c45, %c0_117] : memref<208x16xf32, #tpu.memory_space<vmem>>, vector<144x16xf32>
    %153 = arith.truncf %152 : vector<144x16xf32> to vector<144x16xbf16>
    %c18_118 = arith.constant 18 : index
    %c0_119 = arith.constant 0 : index
    %c0_120 = arith.constant 0 : index
    %154 = vector.load %arg4[%c18_118, %c0_119, %c0_120] : memref<25x16x128xbf16, #tpu.memory_space<vmem>>, vector<1x16x128xbf16>
    %155 = vector.shape_cast %154 : vector<1x16x128xbf16> to vector<16x128xbf16>
    %cst_121 = arith.constant dense<0.000000e+00> : vector<144x128xf32>
    %156 = tpu.matmul %153, %155, %cst_121 {dimension_numbers = #tpu.dot_dimension_numbers<[1], [0], [0], [1], [0, 0, 1, 1], [], []>} : vector<144x16xbf16>, vector<16x128xbf16>, vector<144x128xf32> -> vector<144x128xf32>
    %157 = arith.addf %151, %156 : vector<144x128xf32>
    %c46 = arith.constant 46 : index
    %c0_122 = arith.constant 0 : index
    %158 = vector.load %arg13[%c46, %c0_122] : memref<208x16xf32, #tpu.memory_space<vmem>>, vector<144x16xf32>
    %159 = arith.truncf %158 : vector<144x16xf32> to vector<144x16xbf16>
    %c19 = arith.constant 19 : index
    %c0_123 = arith.constant 0 : index
    %c0_124 = arith.constant 0 : index
    %160 = vector.load %arg4[%c19, %c0_123, %c0_124] : memref<25x16x128xbf16, #tpu.memory_space<vmem>>, vector<1x16x128xbf16>
    %161 = vector.shape_cast %160 : vector<1x16x128xbf16> to vector<16x128xbf16>
    %cst_125 = arith.constant dense<0.000000e+00> : vector<144x128xf32>
    %162 = tpu.matmul %159, %161, %cst_125 {dimension_numbers = #tpu.dot_dimension_numbers<[1], [0], [0], [1], [0, 0, 1, 1], [], []>} : vector<144x16xbf16>, vector<16x128xbf16>, vector<144x128xf32> -> vector<144x128xf32>
    %163 = arith.addf %157, %162 : vector<144x128xf32>
    %c56 = arith.constant 56 : index
    %c0_126 = arith.constant 0 : index
    %164 = vector.load %arg13[%c56, %c0_126] : memref<208x16xf32, #tpu.memory_space<vmem>>, vector<144x16xf32>
    %165 = arith.truncf %164 : vector<144x16xf32> to vector<144x16xbf16>
    %c20 = arith.constant 20 : index
    %c0_127 = arith.constant 0 : index
    %c0_128 = arith.constant 0 : index
    %166 = vector.load %arg4[%c20, %c0_127, %c0_128] : memref<25x16x128xbf16, #tpu.memory_space<vmem>>, vector<1x16x128xbf16>
    %167 = vector.shape_cast %166 : vector<1x16x128xbf16> to vector<16x128xbf16>
    %cst_129 = arith.constant dense<0.000000e+00> : vector<144x128xf32>
    %168 = tpu.matmul %165, %167, %cst_129 {dimension_numbers = #tpu.dot_dimension_numbers<[1], [0], [0], [1], [0, 0, 1, 1], [], []>} : vector<144x16xbf16>, vector<16x128xbf16>, vector<144x128xf32> -> vector<144x128xf32>
    %169 = arith.addf %163, %168 : vector<144x128xf32>
    %c57 = arith.constant 57 : index
    %c0_130 = arith.constant 0 : index
    %170 = vector.load %arg13[%c57, %c0_130] : memref<208x16xf32, #tpu.memory_space<vmem>>, vector<144x16xf32>
    %171 = arith.truncf %170 : vector<144x16xf32> to vector<144x16xbf16>
    %c21 = arith.constant 21 : index
    %c0_131 = arith.constant 0 : index
    %c0_132 = arith.constant 0 : index
    %172 = vector.load %arg4[%c21, %c0_131, %c0_132] : memref<25x16x128xbf16, #tpu.memory_space<vmem>>, vector<1x16x128xbf16>
    %173 = vector.shape_cast %172 : vector<1x16x128xbf16> to vector<16x128xbf16>
    %cst_133 = arith.constant dense<0.000000e+00> : vector<144x128xf32>
    %174 = tpu.matmul %171, %173, %cst_133 {dimension_numbers = #tpu.dot_dimension_numbers<[1], [0], [0], [1], [0, 0, 1, 1], [], []>} : vector<144x16xbf16>, vector<16x128xbf16>, vector<144x128xf32> -> vector<144x128xf32>
    %175 = arith.addf %169, %174 : vector<144x128xf32>
    %c58 = arith.constant 58 : index
    %c0_134 = arith.constant 0 : index
    %176 = vector.load %arg13[%c58, %c0_134] : memref<208x16xf32, #tpu.memory_space<vmem>>, vector<144x16xf32>
    %177 = arith.truncf %176 : vector<144x16xf32> to vector<144x16xbf16>
    %c22 = arith.constant 22 : index
    %c0_135 = arith.constant 0 : index
    %c0_136 = arith.constant 0 : index
    %178 = vector.load %arg4[%c22, %c0_135, %c0_136] : memref<25x16x128xbf16, #tpu.memory_space<vmem>>, vector<1x16x128xbf16>
    %179 = vector.shape_cast %178 : vector<1x16x128xbf16> to vector<16x128xbf16>
    %cst_137 = arith.constant dense<0.000000e+00> : vector<144x128xf32>
    %180 = tpu.matmul %177, %179, %cst_137 {dimension_numbers = #tpu.dot_dimension_numbers<[1], [0], [0], [1], [0, 0, 1, 1], [], []>} : vector<144x16xbf16>, vector<16x128xbf16>, vector<144x128xf32> -> vector<144x128xf32>
    %181 = arith.addf %175, %180 : vector<144x128xf32>
    %c59 = arith.constant 59 : index
    %c0_138 = arith.constant 0 : index
    %182 = vector.load %arg13[%c59, %c0_138] : memref<208x16xf32, #tpu.memory_space<vmem>>, vector<144x16xf32>
    %183 = arith.truncf %182 : vector<144x16xf32> to vector<144x16xbf16>
    %c23 = arith.constant 23 : index
    %c0_139 = arith.constant 0 : index
    %c0_140 = arith.constant 0 : index
    %184 = vector.load %arg4[%c23, %c0_139, %c0_140] : memref<25x16x128xbf16, #tpu.memory_space<vmem>>, vector<1x16x128xbf16>
    %185 = vector.shape_cast %184 : vector<1x16x128xbf16> to vector<16x128xbf16>
    %cst_141 = arith.constant dense<0.000000e+00> : vector<144x128xf32>
    %186 = tpu.matmul %183, %185, %cst_141 {dimension_numbers = #tpu.dot_dimension_numbers<[1], [0], [0], [1], [0, 0, 1, 1], [], []>} : vector<144x16xbf16>, vector<16x128xbf16>, vector<144x128xf32> -> vector<144x128xf32>
    %187 = arith.addf %181, %186 : vector<144x128xf32>
    %c60 = arith.constant 60 : index
    %c0_142 = arith.constant 0 : index
    %188 = vector.load %arg13[%c60, %c0_142] : memref<208x16xf32, #tpu.memory_space<vmem>>, vector<144x16xf32>
    %189 = arith.truncf %188 : vector<144x16xf32> to vector<144x16xbf16>
    %c24 = arith.constant 24 : index
    %c0_143 = arith.constant 0 : index
    %c0_144 = arith.constant 0 : index
    %190 = vector.load %arg4[%c24, %c0_143, %c0_144] : memref<25x16x128xbf16, #tpu.memory_space<vmem>>, vector<1x16x128xbf16>
    %191 = vector.shape_cast %190 : vector<1x16x128xbf16> to vector<16x128xbf16>
    %cst_145 = arith.constant dense<0.000000e+00> : vector<144x128xf32>
    %192 = tpu.matmul %189, %191, %cst_145 {dimension_numbers = #tpu.dot_dimension_numbers<[1], [0], [0], [1], [0, 0, 1, 1], [], []>} : vector<144x16xbf16>, vector<16x128xbf16>, vector<144x128xf32> -> vector<144x128xf32>
    %193 = arith.addf %187, %192 : vector<144x128xf32>
    %cst_146 = arith.constant 0.000000e+00 : f32
    %194 = vector.broadcast %cst_146 : f32 to vector<144x128xf32>
    %195 = arith.maximumf %193, %194 : vector<144x128xf32>
    %196 = vector.extract_strided_slice %195 {offsets = [0, 0], sizes = [144, 16], strides = [1, 1]} : vector<144x128xf32> to vector<144x16xf32>
    %c0_147 = arith.constant 0 : index
    %c0_148 = arith.constant 0 : index
    %197 = vector.load %arg14[%c0_147, %c0_148] : memref<144x16xf32, #tpu.memory_space<vmem>>, vector<144x16xf32>
    tpu.vector_store %arg14[%c0_147, %c0_148], %196 {strides = array<i32>} : memref<144x16xf32, #tpu.memory_space<vmem>>, vector<144x16xf32>,
    %c0_149 = arith.constant 0 : index
    %c0_150 = arith.constant 0 : index
    %198 = vector.load %arg7[%c0_149, %c0_150] : memref<1x128xf32, #tpu.memory_space<vmem>>, vector<1x128xf32>
    %c0_151 = arith.constant 0 : index
    %c0_152 = arith.constant 0 : index
    %199 = vector.load %arg14[%c0_151, %c0_152] : memref<144x16xf32, #tpu.memory_space<vmem>>, vector<1x16xf32>
    %c1_153 = arith.constant 1 : index
    %c0_154 = arith.constant 0 : index
    %200 = vector.load %arg14[%c1_153, %c0_154] : memref<144x16xf32, #tpu.memory_space<vmem>>, vector<1x16xf32>
    %201 = arith.maximumf %199, %200 : vector<1x16xf32>
    %c14_155 = arith.constant 14 : index
    %c0_156 = arith.constant 0 : index
    %202 = vector.load %arg14[%c14_155, %c0_156] : memref<144x16xf32, #tpu.memory_space<vmem>>, vector<1x16xf32>
    %c15_157 = arith.constant 15 : index
    %c0_158 = arith.constant 0 : index
    %203 = vector.load %arg14[%c15_157, %c0_158] : memref<144x16xf32, #tpu.memory_space<vmem>>, vector<1x16xf32>
    %204 = arith.maximumf %202, %203 : vector<1x16xf32>
    %205 = arith.maximumf %201, %204 : vector<1x16xf32>
    %206 = arith.truncf %205 : vector<1x16xf32> to vector<1x16xbf16>
    %c0_159 = arith.constant 0 : index
    %c0_160 = arith.constant 0 : index
    %c0_161 = arith.constant 0 : index
    %207 = vector.load %arg6[%c0_159, %c0_160, %c0_161] : memref<25x16x128xbf16, #tpu.memory_space<vmem>>, vector<1x16x128xbf16>
    %208 = vector.shape_cast %207 : vector<1x16x128xbf16> to vector<16x128xbf16>
    %cst_162 = arith.constant dense<0.000000e+00> : vector<1x128xf32>
    %209 = tpu.matmul %206, %208, %cst_162 {dimension_numbers = #tpu.dot_dimension_numbers<[1], [0], [0], [1], [0, 0, 1, 1], [], []>} : vector<1x16xbf16>, vector<16x128xbf16>, vector<1x128xf32> -> vector<1x128xf32>
    %210 = arith.addf %198, %209 : vector<1x128xf32>
    %c2_163 = arith.constant 2 : index
    %c0_164 = arith.constant 0 : index
    %211 = vector.load %arg14[%c2_163, %c0_164] : memref<144x16xf32, #tpu.memory_space<vmem>>, vector<1x16xf32>
    %c3_165 = arith.constant 3 : index
    %c0_166 = arith.constant 0 : index
    %212 = vector.load %arg14[%c3_165, %c0_166] : memref<144x16xf32, #tpu.memory_space<vmem>>, vector<1x16xf32>
    %213 = arith.maximumf %211, %212 : vector<1x16xf32>
    %c16_167 = arith.constant 16 : index
    %c0_168 = arith.constant 0 : index
    %214 = vector.load %arg14[%c16_167, %c0_168] : memref<144x16xf32, #tpu.memory_space<vmem>>, vector<1x16xf32>
    %c17_169 = arith.constant 17 : index
    %c0_170 = arith.constant 0 : index
    %215 = vector.load %arg14[%c17_169, %c0_170] : memref<144x16xf32, #tpu.memory_space<vmem>>, vector<1x16xf32>
    %216 = arith.maximumf %214, %215 : vector<1x16xf32>
    %217 = arith.maximumf %213, %216 : vector<1x16xf32>
    %218 = arith.truncf %217 : vector<1x16xf32> to vector<1x16xbf16>
    %c1_171 = arith.constant 1 : index
    %c0_172 = arith.constant 0 : index
    %c0_173 = arith.constant 0 : index
    %219 = vector.load %arg6[%c1_171, %c0_172, %c0_173] : memref<25x16x128xbf16, #tpu.memory_space<vmem>>, vector<1x16x128xbf16>
    %220 = vector.shape_cast %219 : vector<1x16x128xbf16> to vector<16x128xbf16>
    %cst_174 = arith.constant dense<0.000000e+00> : vector<1x128xf32>
    %221 = tpu.matmul %218, %220, %cst_174 {dimension_numbers = #tpu.dot_dimension_numbers<[1], [0], [0], [1], [0, 0, 1, 1], [], []>} : vector<1x16xbf16>, vector<16x128xbf16>, vector<1x128xf32> -> vector<1x128xf32>
    %222 = arith.addf %210, %221 : vector<1x128xf32>
    %c4_175 = arith.constant 4 : index
    %c0_176 = arith.constant 0 : index
    %223 = vector.load %arg14[%c4_175, %c0_176] : memref<144x16xf32, #tpu.memory_space<vmem>>, vector<1x16xf32>
    %c5_177 = arith.constant 5 : index
    %c0_178 = arith.constant 0 : index
    %224 = vector.load %arg14[%c5_177, %c0_178] : memref<144x16xf32, #tpu.memory_space<vmem>>, vector<1x16xf32>
    %225 = arith.maximumf %223, %224 : vector<1x16xf32>
    %c18_179 = arith.constant 18 : index
    %c0_180 = arith.constant 0 : index
    %226 = vector.load %arg14[%c18_179, %c0_180] : memref<144x16xf32, #tpu.memory_space<vmem>>, vector<1x16xf32>
    %c19_181 = arith.constant 19 : index
    %c0_182 = arith.constant 0 : index
    %227 = vector.load %arg14[%c19_181, %c0_182] : memref<144x16xf32, #tpu.memory_space<vmem>>, vector<1x16xf32>
    %228 = arith.maximumf %226, %227 : vector<1x16xf32>
    %229 = arith.maximumf %225, %228 : vector<1x16xf32>
    %230 = arith.truncf %229 : vector<1x16xf32> to vector<1x16xbf16>
    %c2_183 = arith.constant 2 : index
    %c0_184 = arith.constant 0 : index
    %c0_185 = arith.constant 0 : index
    %231 = vector.load %arg6[%c2_183, %c0_184, %c0_185] : memref<25x16x128xbf16, #tpu.memory_space<vmem>>, vector<1x16x128xbf16>
    %232 = vector.shape_cast %231 : vector<1x16x128xbf16> to vector<16x128xbf16>
    %cst_186 = arith.constant dense<0.000000e+00> : vector<1x128xf32>
    %233 = tpu.matmul %230, %232, %cst_186 {dimension_numbers = #tpu.dot_dimension_numbers<[1], [0], [0], [1], [0, 0, 1, 1], [], []>} : vector<1x16xbf16>, vector<16x128xbf16>, vector<1x128xf32> -> vector<1x128xf32>
    %234 = arith.addf %222, %233 : vector<1x128xf32>
    %c6_187 = arith.constant 6 : index
    %c0_188 = arith.constant 0 : index
    %235 = vector.load %arg14[%c6_187, %c0_188] : memref<144x16xf32, #tpu.memory_space<vmem>>, vector<1x16xf32>
    %c7_189 = arith.constant 7 : index
    %c0_190 = arith.constant 0 : index
    %236 = vector.load %arg14[%c7_189, %c0_190] : memref<144x16xf32, #tpu.memory_space<vmem>>, vector<1x16xf32>
    %237 = arith.maximumf %235, %236 : vector<1x16xf32>
    %c20_191 = arith.constant 20 : index
    %c0_192 = arith.constant 0 : index
    %238 = vector.load %arg14[%c20_191, %c0_192] : memref<144x16xf32, #tpu.memory_space<vmem>>, vector<1x16xf32>
    %c21_193 = arith.constant 21 : index
    %c0_194 = arith.constant 0 : index
    %239 = vector.load %arg14[%c21_193, %c0_194] : memref<144x16xf32, #tpu.memory_space<vmem>>, vector<1x16xf32>
    %240 = arith.maximumf %238, %239 : vector<1x16xf32>
    %241 = arith.maximumf %237, %240 : vector<1x16xf32>
    %242 = arith.truncf %241 : vector<1x16xf32> to vector<1x16xbf16>
    %c3_195 = arith.constant 3 : index
    %c0_196 = arith.constant 0 : index
    %c0_197 = arith.constant 0 : index
    %243 = vector.load %arg6[%c3_195, %c0_196, %c0_197] : memref<25x16x128xbf16, #tpu.memory_space<vmem>>, vector<1x16x128xbf16>
    %244 = vector.shape_cast %243 : vector<1x16x128xbf16> to vector<16x128xbf16>
    %cst_198 = arith.constant dense<0.000000e+00> : vector<1x128xf32>
    %245 = tpu.matmul %242, %244, %cst_198 {dimension_numbers = #tpu.dot_dimension_numbers<[1], [0], [0], [1], [0, 0, 1, 1], [], []>} : vector<1x16xbf16>, vector<16x128xbf16>, vector<1x128xf32> -> vector<1x128xf32>
    %246 = arith.addf %234, %245 : vector<1x128xf32>
    %c8_199 = arith.constant 8 : index
    %c0_200 = arith.constant 0 : index
    %247 = vector.load %arg14[%c8_199, %c0_200] : memref<144x16xf32, #tpu.memory_space<vmem>>, vector<1x16xf32>
    %c9_201 = arith.constant 9 : index
    %c0_202 = arith.constant 0 : index
    %248 = vector.load %arg14[%c9_201, %c0_202] : memref<144x16xf32, #tpu.memory_space<vmem>>, vector<1x16xf32>
    %249 = arith.maximumf %247, %248 : vector<1x16xf32>
    %c22_203 = arith.constant 22 : index
    %c0_204 = arith.constant 0 : index
    %250 = vector.load %arg14[%c22_203, %c0_204] : memref<144x16xf32, #tpu.memory_space<vmem>>, vector<1x16xf32>
    %c23_205 = arith.constant 23 : index
    %c0_206 = arith.constant 0 : index
    %251 = vector.load %arg14[%c23_205, %c0_206] : memref<144x16xf32, #tpu.memory_space<vmem>>, vector<1x16xf32>
    %252 = arith.maximumf %250, %251 : vector<1x16xf32>
    %253 = arith.maximumf %249, %252 : vector<1x16xf32>
    %254 = arith.truncf %253 : vector<1x16xf32> to vector<1x16xbf16>
    %c4_207 = arith.constant 4 : index
    %c0_208 = arith.constant 0 : index
    %c0_209 = arith.constant 0 : index
    %255 = vector.load %arg6[%c4_207, %c0_208, %c0_209] : memref<25x16x128xbf16, #tpu.memory_space<vmem>>, vector<1x16x128xbf16>
    %256 = vector.shape_cast %255 : vector<1x16x128xbf16> to vector<16x128xbf16>
    %cst_210 = arith.constant dense<0.000000e+00> : vector<1x128xf32>
    %257 = tpu.matmul %254, %256, %cst_210 {dimension_numbers = #tpu.dot_dimension_numbers<[1], [0], [0], [1], [0, 0, 1, 1], [], []>} : vector<1x16xbf16>, vector<16x128xbf16>, vector<1x128xf32> -> vector<1x128xf32>
    %258 = arith.addf %246, %257 : vector<1x128xf32>
    %c28_211 = arith.constant 28 : index
    %c0_212 = arith.constant 0 : index
    %259 = vector.load %arg14[%c28_211, %c0_212] : memref<144x16xf32, #tpu.memory_space<vmem>>, vector<1x16xf32>
    %c29_213 = arith.constant 29 : index
    %c0_214 = arith.constant 0 : index
    %260 = vector.load %arg14[%c29_213, %c0_214] : memref<144x16xf32, #tpu.memory_space<vmem>>, vector<1x16xf32>
    %261 = arith.maximumf %259, %260 : vector<1x16xf32>
    %c42_215 = arith.constant 42 : index
    %c0_216 = arith.constant 0 : index
    %262 = vector.load %arg14[%c42_215, %c0_216] : memref<144x16xf32, #tpu.memory_space<vmem>>, vector<1x16xf32>
    %c43_217 = arith.constant 43 : index
    %c0_218 = arith.constant 0 : index
    %263 = vector.load %arg14[%c43_217, %c0_218] : memref<144x16xf32, #tpu.memory_space<vmem>>, vector<1x16xf32>
    %264 = arith.maximumf %262, %263 : vector<1x16xf32>
    %265 = arith.maximumf %261, %264 : vector<1x16xf32>
    %266 = arith.truncf %265 : vector<1x16xf32> to vector<1x16xbf16>
    %c5_219 = arith.constant 5 : index
    %c0_220 = arith.constant 0 : index
    %c0_221 = arith.constant 0 : index
    %267 = vector.load %arg6[%c5_219, %c0_220, %c0_221] : memref<25x16x128xbf16, #tpu.memory_space<vmem>>, vector<1x16x128xbf16>
    %268 = vector.shape_cast %267 : vector<1x16x128xbf16> to vector<16x128xbf16>
    %cst_222 = arith.constant dense<0.000000e+00> : vector<1x128xf32>
    %269 = tpu.matmul %266, %268, %cst_222 {dimension_numbers = #tpu.dot_dimension_numbers<[1], [0], [0], [1], [0, 0, 1, 1], [], []>} : vector<1x16xbf16>, vector<16x128xbf16>, vector<1x128xf32> -> vector<1x128xf32>
    %270 = arith.addf %258, %269 : vector<1x128xf32>
    %c30_223 = arith.constant 30 : index
    %c0_224 = arith.constant 0 : index
    %271 = vector.load %arg14[%c30_223, %c0_224] : memref<144x16xf32, #tpu.memory_space<vmem>>, vector<1x16xf32>
    %c31_225 = arith.constant 31 : index
    %c0_226 = arith.constant 0 : index
    %272 = vector.load %arg14[%c31_225, %c0_226] : memref<144x16xf32, #tpu.memory_space<vmem>>, vector<1x16xf32>
    %273 = arith.maximumf %271, %272 : vector<1x16xf32>
    %c44_227 = arith.constant 44 : index
    %c0_228 = arith.constant 0 : index
    %274 = vector.load %arg14[%c44_227, %c0_228] : memref<144x16xf32, #tpu.memory_space<vmem>>, vector<1x16xf32>
    %c45_229 = arith.constant 45 : index
    %c0_230 = arith.constant 0 : index
    %275 = vector.load %arg14[%c45_229, %c0_230] : memref<144x16xf32, #tpu.memory_space<vmem>>, vector<1x16xf32>
    %276 = arith.maximumf %274, %275 : vector<1x16xf32>
    %277 = arith.maximumf %273, %276 : vector<1x16xf32>
    %278 = arith.truncf %277 : vector<1x16xf32> to vector<1x16xbf16>
    %c6_231 = arith.constant 6 : index
    %c0_232 = arith.constant 0 : index
    %c0_233 = arith.constant 0 : index
    %279 = vector.load %arg6[%c6_231, %c0_232, %c0_233] : memref<25x16x128xbf16, #tpu.memory_space<vmem>>, vector<1x16x128xbf16>
    %280 = vector.shape_cast %279 : vector<1x16x128xbf16> to vector<16x128xbf16>
    %cst_234 = arith.constant dense<0.000000e+00> : vector<1x128xf32>
    %281 = tpu.matmul %278, %280, %cst_234 {dimension_numbers = #tpu.dot_dimension_numbers<[1], [0], [0], [1], [0, 0, 1, 1], [], []>} : vector<1x16xbf16>, vector<16x128xbf16>, vector<1x128xf32> -> vector<1x128xf32>
    %282 = arith.addf %270, %281 : vector<1x128xf32>
    %c32_235 = arith.constant 32 : index
    %c0_236 = arith.constant 0 : index
    %283 = vector.load %arg14[%c32_235, %c0_236] : memref<144x16xf32, #tpu.memory_space<vmem>>, vector<1x16xf32>
    %c33 = arith.constant 33 : index
    %c0_237 = arith.constant 0 : index
    %284 = vector.load %arg14[%c33, %c0_237] : memref<144x16xf32, #tpu.memory_space<vmem>>, vector<1x16xf32>
    %285 = arith.maximumf %283, %284 : vector<1x16xf32>
    %c46_238 = arith.constant 46 : index
    %c0_239 = arith.constant 0 : index
    %286 = vector.load %arg14[%c46_238, %c0_239] : memref<144x16xf32, #tpu.memory_space<vmem>>, vector<1x16xf32>
    %c47 = arith.constant 47 : index
    %c0_240 = arith.constant 0 : index
    %287 = vector.load %arg14[%c47, %c0_240] : memref<144x16xf32, #tpu.memory_space<vmem>>, vector<1x16xf32>
    %288 = arith.maximumf %286, %287 : vector<1x16xf32>
    %289 = arith.maximumf %285, %288 : vector<1x16xf32>
    %290 = arith.truncf %289 : vector<1x16xf32> to vector<1x16xbf16>
    %c7_241 = arith.constant 7 : index
    %c0_242 = arith.constant 0 : index
    %c0_243 = arith.constant 0 : index
    %291 = vector.load %arg6[%c7_241, %c0_242, %c0_243] : memref<25x16x128xbf16, #tpu.memory_space<vmem>>, vector<1x16x128xbf16>
    %292 = vector.shape_cast %291 : vector<1x16x128xbf16> to vector<16x128xbf16>
    %cst_244 = arith.constant dense<0.000000e+00> : vector<1x128xf32>
    %293 = tpu.matmul %290, %292, %cst_244 {dimension_numbers = #tpu.dot_dimension_numbers<[1], [0], [0], [1], [0, 0, 1, 1], [], []>} : vector<1x16xbf16>, vector<16x128xbf16>, vector<1x128xf32> -> vector<1x128xf32>
    %294 = arith.addf %282, %293 : vector<1x128xf32>
    %c34 = arith.constant 34 : index
    %c0_245 = arith.constant 0 : index
    %295 = vector.load %arg14[%c34, %c0_245] : memref<144x16xf32, #tpu.memory_space<vmem>>, vector<1x16xf32>
    %c35 = arith.constant 35 : index
    %c0_246 = arith.constant 0 : index
    %296 = vector.load %arg14[%c35, %c0_246] : memref<144x16xf32, #tpu.memory_space<vmem>>, vector<1x16xf32>
    %297 = arith.maximumf %295, %296 : vector<1x16xf32>
    %c48 = arith.constant 48 : index
    %c0_247 = arith.constant 0 : index
    %298 = vector.load %arg14[%c48, %c0_247] : memref<144x16xf32, #tpu.memory_space<vmem>>, vector<1x16xf32>
    %c49 = arith.constant 49 : index
    %c0_248 = arith.constant 0 : index
    %299 = vector.load %arg14[%c49, %c0_248] : memref<144x16xf32, #tpu.memory_space<vmem>>, vector<1x16xf32>
    %300 = arith.maximumf %298, %299 : vector<1x16xf32>
    %301 = arith.maximumf %297, %300 : vector<1x16xf32>
    %302 = arith.truncf %301 : vector<1x16xf32> to vector<1x16xbf16>
    %c8_249 = arith.constant 8 : index
    %c0_250 = arith.constant 0 : index
    %c0_251 = arith.constant 0 : index
    %303 = vector.load %arg6[%c8_249, %c0_250, %c0_251] : memref<25x16x128xbf16, #tpu.memory_space<vmem>>, vector<1x16x128xbf16>
    %304 = vector.shape_cast %303 : vector<1x16x128xbf16> to vector<16x128xbf16>
    %cst_252 = arith.constant dense<0.000000e+00> : vector<1x128xf32>
    %305 = tpu.matmul %302, %304, %cst_252 {dimension_numbers = #tpu.dot_dimension_numbers<[1], [0], [0], [1], [0, 0, 1, 1], [], []>} : vector<1x16xbf16>, vector<16x128xbf16>, vector<1x128xf32> -> vector<1x128xf32>
    %306 = arith.addf %294, %305 : vector<1x128xf32>
    %c36 = arith.constant 36 : index
    %c0_253 = arith.constant 0 : index
    %307 = vector.load %arg14[%c36, %c0_253] : memref<144x16xf32, #tpu.memory_space<vmem>>, vector<1x16xf32>
    %c37 = arith.constant 37 : index
    %c0_254 = arith.constant 0 : index
    %308 = vector.load %arg14[%c37, %c0_254] : memref<144x16xf32, #tpu.memory_space<vmem>>, vector<1x16xf32>
    %309 = arith.maximumf %307, %308 : vector<1x16xf32>
    %c50 = arith.constant 50 : index
    %c0_255 = arith.constant 0 : index
    %310 = vector.load %arg14[%c50, %c0_255] : memref<144x16xf32, #tpu.memory_space<vmem>>, vector<1x16xf32>
    %c51 = arith.constant 51 : index
    %c0_256 = arith.constant 0 : index
    %311 = vector.load %arg14[%c51, %c0_256] : memref<144x16xf32, #tpu.memory_space<vmem>>, vector<1x16xf32>
    %312 = arith.maximumf %310, %311 : vector<1x16xf32>
    %313 = arith.maximumf %309, %312 : vector<1x16xf32>
    %314 = arith.truncf %313 : vector<1x16xf32> to vector<1x16xbf16>
    %c9_257 = arith.constant 9 : index
    %c0_258 = arith.constant 0 : index
    %c0_259 = arith.constant 0 : index
    %315 = vector.load %arg6[%c9_257, %c0_258, %c0_259] : memref<25x16x128xbf16, #tpu.memory_space<vmem>>, vector<1x16x128xbf16>
    %316 = vector.shape_cast %315 : vector<1x16x128xbf16> to vector<16x128xbf16>
    %cst_260 = arith.constant dense<0.000000e+00> : vector<1x128xf32>
    %317 = tpu.matmul %314, %316, %cst_260 {dimension_numbers = #tpu.dot_dimension_numbers<[1], [0], [0], [1], [0, 0, 1, 1], [], []>} : vector<1x16xbf16>, vector<16x128xbf16>, vector<1x128xf32> -> vector<1x128xf32>
    %318 = arith.addf %306, %317 : vector<1x128xf32>
    %c56_261 = arith.constant 56 : index
    %c0_262 = arith.constant 0 : index
    %319 = vector.load %arg14[%c56_261, %c0_262] : memref<144x16xf32, #tpu.memory_space<vmem>>, vector<1x16xf32>
    %c57_263 = arith.constant 57 : index
    %c0_264 = arith.constant 0 : index
    %320 = vector.load %arg14[%c57_263, %c0_264] : memref<144x16xf32, #tpu.memory_space<vmem>>, vector<1x16xf32>
    %321 = arith.maximumf %319, %320 : vector<1x16xf32>
    %c70 = arith.constant 70 : index
    %c0_265 = arith.constant 0 : index
    %322 = vector.load %arg14[%c70, %c0_265] : memref<144x16xf32, #tpu.memory_space<vmem>>, vector<1x16xf32>
    %c71 = arith.constant 71 : index
    %c0_266 = arith.constant 0 : index
    %323 = vector.load %arg14[%c71, %c0_266] : memref<144x16xf32, #tpu.memory_space<vmem>>, vector<1x16xf32>
    %324 = arith.maximumf %322, %323 : vector<1x16xf32>
    %325 = arith.maximumf %321, %324 : vector<1x16xf32>
    %326 = arith.truncf %325 : vector<1x16xf32> to vector<1x16xbf16>
    %c10_267 = arith.constant 10 : index
    %c0_268 = arith.constant 0 : index
    %c0_269 = arith.constant 0 : index
    %327 = vector.load %arg6[%c10_267, %c0_268, %c0_269] : memref<25x16x128xbf16, #tpu.memory_space<vmem>>, vector<1x16x128xbf16>
    %328 = vector.shape_cast %327 : vector<1x16x128xbf16> to vector<16x128xbf16>
    %cst_270 = arith.constant dense<0.000000e+00> : vector<1x128xf32>
    %329 = tpu.matmul %326, %328, %cst_270 {dimension_numbers = #tpu.dot_dimension_numbers<[1], [0], [0], [1], [0, 0, 1, 1], [], []>} : vector<1x16xbf16>, vector<16x128xbf16>, vector<1x128xf32> -> vector<1x128xf32>
    %330 = arith.addf %318, %329 : vector<1x128xf32>
    %c58_271 = arith.constant 58 : index
    %c0_272 = arith.constant 0 : index
    %331 = vector.load %arg14[%c58_271, %c0_272] : memref<144x16xf32, #tpu.memory_space<vmem>>, vector<1x16xf32>
    %c59_273 = arith.constant 59 : index
    %c0_274 = arith.constant 0 : index
    %332 = vector.load %arg14[%c59_273, %c0_274] : memref<144x16xf32, #tpu.memory_space<vmem>>, vector<1x16xf32>
    %333 = arith.maximumf %331, %332 : vector<1x16xf32>
    %c72 = arith.constant 72 : index
    %c0_275 = arith.constant 0 : index
    %334 = vector.load %arg14[%c72, %c0_275] : memref<144x16xf32, #tpu.memory_space<vmem>>, vector<1x16xf32>
    %c73 = arith.constant 73 : index
    %c0_276 = arith.constant 0 : index
    %335 = vector.load %arg14[%c73, %c0_276] : memref<144x16xf32, #tpu.memory_space<vmem>>, vector<1x16xf32>
    %336 = arith.maximumf %334, %335 : vector<1x16xf32>
    %337 = arith.maximumf %333, %336 : vector<1x16xf32>
    %338 = arith.truncf %337 : vector<1x16xf32> to vector<1x16xbf16>
    %c11_277 = arith.constant 11 : index
    %c0_278 = arith.constant 0 : index
    %c0_279 = arith.constant 0 : index
    %339 = vector.load %arg6[%c11_277, %c0_278, %c0_279] : memref<25x16x128xbf16, #tpu.memory_space<vmem>>, vector<1x16x128xbf16>
    %340 = vector.shape_cast %339 : vector<1x16x128xbf16> to vector<16x128xbf16>
    %cst_280 = arith.constant dense<0.000000e+00> : vector<1x128xf32>
    %341 = tpu.matmul %338, %340, %cst_280 {dimension_numbers = #tpu.dot_dimension_numbers<[1], [0], [0], [1], [0, 0, 1, 1], [], []>} : vector<1x16xbf16>, vector<16x128xbf16>, vector<1x128xf32> -> vector<1x128xf32>
    %342 = arith.addf %330, %341 : vector<1x128xf32>
    %c60_281 = arith.constant 60 : index
    %c0_282 = arith.constant 0 : index
    %343 = vector.load %arg14[%c60_281, %c0_282] : memref<144x16xf32, #tpu.memory_space<vmem>>, vector<1x16xf32>
    %c61 = arith.constant 61 : index
    %c0_283 = arith.constant 0 : index
    %344 = vector.load %arg14[%c61, %c0_283] : memref<144x16xf32, #tpu.memory_space<vmem>>, vector<1x16xf32>
    %345 = arith.maximumf %343, %344 : vector<1x16xf32>
    %c74 = arith.constant 74 : index
    %c0_284 = arith.constant 0 : index
    %346 = vector.load %arg14[%c74, %c0_284] : memref<144x16xf32, #tpu.memory_space<vmem>>, vector<1x16xf32>
    %c75 = arith.constant 75 : index
    %c0_285 = arith.constant 0 : index
    %347 = vector.load %arg14[%c75, %c0_285] : memref<144x16xf32, #tpu.memory_space<vmem>>, vector<1x16xf32>
    %348 = arith.maximumf %346, %347 : vector<1x16xf32>
    %349 = arith.maximumf %345, %348 : vector<1x16xf32>
    %350 = arith.truncf %349 : vector<1x16xf32> to vector<1x16xbf16>
    %c12_286 = arith.constant 12 : index
    %c0_287 = arith.constant 0 : index
    %c0_288 = arith.constant 0 : index
    %351 = vector.load %arg6[%c12_286, %c0_287, %c0_288] : memref<25x16x128xbf16, #tpu.memory_space<vmem>>, vector<1x16x128xbf16>
    %352 = vector.shape_cast %351 : vector<1x16x128xbf16> to vector<16x128xbf16>
    %cst_289 = arith.constant dense<0.000000e+00> : vector<1x128xf32>
    %353 = tpu.matmul %350, %352, %cst_289 {dimension_numbers = #tpu.dot_dimension_numbers<[1], [0], [0], [1], [0, 0, 1, 1], [], []>} : vector<1x16xbf16>, vector<16x128xbf16>, vector<1x128xf32> -> vector<1x128xf32>
    %354 = arith.addf %342, %353 : vector<1x128xf32>
    %c62 = arith.constant 62 : index
    %c0_290 = arith.constant 0 : index
    %355 = vector.load %arg14[%c62, %c0_290] : memref<144x16xf32, #tpu.memory_space<vmem>>, vector<1x16xf32>
    %c63 = arith.constant 63 : index
    %c0_291 = arith.constant 0 : index
    %356 = vector.load %arg14[%c63, %c0_291] : memref<144x16xf32, #tpu.memory_space<vmem>>, vector<1x16xf32>
    %357 = arith.maximumf %355, %356 : vector<1x16xf32>
    %c76 = arith.constant 76 : index
    %c0_292 = arith.constant 0 : index
    %358 = vector.load %arg14[%c76, %c0_292] : memref<144x16xf32, #tpu.memory_space<vmem>>, vector<1x16xf32>
    %c77 = arith.constant 77 : index
    %c0_293 = arith.constant 0 : index
    %359 = vector.load %arg14[%c77, %c0_293] : memref<144x16xf32, #tpu.memory_space<vmem>>, vector<1x16xf32>
    %360 = arith.maximumf %358, %359 : vector<1x16xf32>
    %361 = arith.maximumf %357, %360 : vector<1x16xf32>
    %362 = arith.truncf %361 : vector<1x16xf32> to vector<1x16xbf16>
    %c13_294 = arith.constant 13 : index
    %c0_295 = arith.constant 0 : index
    %c0_296 = arith.constant 0 : index
    %363 = vector.load %arg6[%c13_294, %c0_295, %c0_296] : memref<25x16x128xbf16, #tpu.memory_space<vmem>>, vector<1x16x128xbf16>
    %364 = vector.shape_cast %363 : vector<1x16x128xbf16> to vector<16x128xbf16>
    %cst_297 = arith.constant dense<0.000000e+00> : vector<1x128xf32>
    %365 = tpu.matmul %362, %364, %cst_297 {dimension_numbers = #tpu.dot_dimension_numbers<[1], [0], [0], [1], [0, 0, 1, 1], [], []>} : vector<1x16xbf16>, vector<16x128xbf16>, vector<1x128xf32> -> vector<1x128xf32>
    %366 = arith.addf %354, %365 : vector<1x128xf32>
    %c64 = arith.constant 64 : index
    %c0_298 = arith.constant 0 : index
    %367 = vector.load %arg14[%c64, %c0_298] : memref<144x16xf32, #tpu.memory_space<vmem>>, vector<1x16xf32>
    %c65 = arith.constant 65 : index
    %c0_299 = arith.constant 0 : index
    %368 = vector.load %arg14[%c65, %c0_299] : memref<144x16xf32, #tpu.memory_space<vmem>>, vector<1x16xf32>
    %369 = arith.maximumf %367, %368 : vector<1x16xf32>
    %c78 = arith.constant 78 : index
    %c0_300 = arith.constant 0 : index
    %370 = vector.load %arg14[%c78, %c0_300] : memref<144x16xf32, #tpu.memory_space<vmem>>, vector<1x16xf32>
    %c79 = arith.constant 79 : index
    %c0_301 = arith.constant 0 : index
    %371 = vector.load %arg14[%c79, %c0_301] : memref<144x16xf32, #tpu.memory_space<vmem>>, vector<1x16xf32>
    %372 = arith.maximumf %370, %371 : vector<1x16xf32>
    %373 = arith.maximumf %369, %372 : vector<1x16xf32>
    %374 = arith.truncf %373 : vector<1x16xf32> to vector<1x16xbf16>
    %c14_302 = arith.constant 14 : index
    %c0_303 = arith.constant 0 : index
    %c0_304 = arith.constant 0 : index
    %375 = vector.load %arg6[%c14_302, %c0_303, %c0_304] : memref<25x16x128xbf16, #tpu.memory_space<vmem>>, vector<1x16x128xbf16>
    %376 = vector.shape_cast %375 : vector<1x16x128xbf16> to vector<16x128xbf16>
    %cst_305 = arith.constant dense<0.000000e+00> : vector<1x128xf32>
    %377 = tpu.matmul %374, %376, %cst_305 {dimension_numbers = #tpu.dot_dimension_numbers<[1], [0], [0], [1], [0, 0, 1, 1], [], []>} : vector<1x16xbf16>, vector<16x128xbf16>, vector<1x128xf32> -> vector<1x128xf32>
    %378 = arith.addf %366, %377 : vector<1x128xf32>
    %c84 = arith.constant 84 : index
    %c0_306 = arith.constant 0 : index
    %379 = vector.load %arg14[%c84, %c0_306] : memref<144x16xf32, #tpu.memory_space<vmem>>, vector<1x16xf32>
    %c85 = arith.constant 85 : index
    %c0_307 = arith.constant 0 : index
    %380 = vector.load %arg14[%c85, %c0_307] : memref<144x16xf32, #tpu.memory_space<vmem>>, vector<1x16xf32>
    %381 = arith.maximumf %379, %380 : vector<1x16xf32>
    %c98 = arith.constant 98 : index
    %c0_308 = arith.constant 0 : index
    %382 = vector.load %arg14[%c98, %c0_308] : memref<144x16xf32, #tpu.memory_space<vmem>>, vector<1x16xf32>
    %c99 = arith.constant 99 : index
    %c0_309 = arith.constant 0 : index
    %383 = vector.load %arg14[%c99, %c0_309] : memref<144x16xf32, #tpu.memory_space<vmem>>, vector<1x16xf32>
    %384 = arith.maximumf %382, %383 : vector<1x16xf32>
    %385 = arith.maximumf %381, %384 : vector<1x16xf32>
    %386 = arith.truncf %385 : vector<1x16xf32> to vector<1x16xbf16>
    %c15_310 = arith.constant 15 : index
    %c0_311 = arith.constant 0 : index
    %c0_312 = arith.constant 0 : index
    %387 = vector.load %arg6[%c15_310, %c0_311, %c0_312] : memref<25x16x128xbf16, #tpu.memory_space<vmem>>, vector<1x16x128xbf16>
    %388 = vector.shape_cast %387 : vector<1x16x128xbf16> to vector<16x128xbf16>
    %cst_313 = arith.constant dense<0.000000e+00> : vector<1x128xf32>
    %389 = tpu.matmul %386, %388, %cst_313 {dimension_numbers = #tpu.dot_dimension_numbers<[1], [0], [0], [1], [0, 0, 1, 1], [], []>} : vector<1x16xbf16>, vector<16x128xbf16>, vector<1x128xf32> -> vector<1x128xf32>
    %390 = arith.addf %378, %389 : vector<1x128xf32>
    %c86 = arith.constant 86 : index
    %c0_314 = arith.constant 0 : index
    %391 = vector.load %arg14[%c86, %c0_314] : memref<144x16xf32, #tpu.memory_space<vmem>>, vector<1x16xf32>
    %c87 = arith.constant 87 : index
    %c0_315 = arith.constant 0 : index
    %392 = vector.load %arg14[%c87, %c0_315] : memref<144x16xf32, #tpu.memory_space<vmem>>, vector<1x16xf32>
    %393 = arith.maximumf %391, %392 : vector<1x16xf32>
    %c100 = arith.constant 100 : index
    %c0_316 = arith.constant 0 : index
    %394 = vector.load %arg14[%c100, %c0_316] : memref<144x16xf32, #tpu.memory_space<vmem>>, vector<1x16xf32>
    %c101 = arith.constant 101 : index
    %c0_317 = arith.constant 0 : index
    %395 = vector.load %arg14[%c101, %c0_317] : memref<144x16xf32, #tpu.memory_space<vmem>>, vector<1x16xf32>
    %396 = arith.maximumf %394, %395 : vector<1x16xf32>
    %397 = arith.maximumf %393, %396 : vector<1x16xf32>
    %398 = arith.truncf %397 : vector<1x16xf32> to vector<1x16xbf16>
    %c16_318 = arith.constant 16 : index
    %c0_319 = arith.constant 0 : index
    %c0_320 = arith.constant 0 : index
    %399 = vector.load %arg6[%c16_318, %c0_319, %c0_320] : memref<25x16x128xbf16, #tpu.memory_space<vmem>>, vector<1x16x128xbf16>
    %400 = vector.shape_cast %399 : vector<1x16x128xbf16> to vector<16x128xbf16>
    %cst_321 = arith.constant dense<0.000000e+00> : vector<1x128xf32>
    %401 = tpu.matmul %398, %400, %cst_321 {dimension_numbers = #tpu.dot_dimension_numbers<[1], [0], [0], [1], [0, 0, 1, 1], [], []>} : vector<1x16xbf16>, vector<16x128xbf16>, vector<1x128xf32> -> vector<1x128xf32>
    %402 = arith.addf %390, %401 : vector<1x128xf32>
    %c88 = arith.constant 88 : index
    %c0_322 = arith.constant 0 : index
    %403 = vector.load %arg14[%c88, %c0_322] : memref<144x16xf32, #tpu.memory_space<vmem>>, vector<1x16xf32>
    %c89 = arith.constant 89 : index
    %c0_323 = arith.constant 0 : index
    %404 = vector.load %arg14[%c89, %c0_323] : memref<144x16xf32, #tpu.memory_space<vmem>>, vector<1x16xf32>
    %405 = arith.maximumf %403, %404 : vector<1x16xf32>
    %c102 = arith.constant 102 : index
    %c0_324 = arith.constant 0 : index
    %406 = vector.load %arg14[%c102, %c0_324] : memref<144x16xf32, #tpu.memory_space<vmem>>, vector<1x16xf32>
    %c103 = arith.constant 103 : index
    %c0_325 = arith.constant 0 : index
    %407 = vector.load %arg14[%c103, %c0_325] : memref<144x16xf32, #tpu.memory_space<vmem>>, vector<1x16xf32>
    %408 = arith.maximumf %406, %407 : vector<1x16xf32>
    %409 = arith.maximumf %405, %408 : vector<1x16xf32>
    %410 = arith.truncf %409 : vector<1x16xf32> to vector<1x16xbf16>
    %c17_326 = arith.constant 17 : index
    %c0_327 = arith.constant 0 : index
    %c0_328 = arith.constant 0 : index
    %411 = vector.load %arg6[%c17_326, %c0_327, %c0_328] : memref<25x16x128xbf16, #tpu.memory_space<vmem>>, vector<1x16x128xbf16>
    %412 = vector.shape_cast %411 : vector<1x16x128xbf16> to vector<16x128xbf16>
    %cst_329 = arith.constant dense<0.000000e+00> : vector<1x128xf32>
    %413 = tpu.matmul %410, %412, %cst_329 {dimension_numbers = #tpu.dot_dimension_numbers<[1], [0], [0], [1], [0, 0, 1, 1], [], []>} : vector<1x16xbf16>, vector<16x128xbf16>, vector<1x128xf32> -> vector<1x128xf32>
    %414 = arith.addf %402, %413 : vector<1x128xf32>
    %c90 = arith.constant 90 : index
    %c0_330 = arith.constant 0 : index
    %415 = vector.load %arg14[%c90, %c0_330] : memref<144x16xf32, #tpu.memory_space<vmem>>, vector<1x16xf32>
    %c91 = arith.constant 91 : index
    %c0_331 = arith.constant 0 : index
    %416 = vector.load %arg14[%c91, %c0_331] : memref<144x16xf32, #tpu.memory_space<vmem>>, vector<1x16xf32>
    %417 = arith.maximumf %415, %416 : vector<1x16xf32>
    %c104 = arith.constant 104 : index
    %c0_332 = arith.constant 0 : index
    %418 = vector.load %arg14[%c104, %c0_332] : memref<144x16xf32, #tpu.memory_space<vmem>>, vector<1x16xf32>
    %c105 = arith.constant 105 : index
    %c0_333 = arith.constant 0 : index
    %419 = vector.load %arg14[%c105, %c0_333] : memref<144x16xf32, #tpu.memory_space<vmem>>, vector<1x16xf32>
    %420 = arith.maximumf %418, %419 : vector<1x16xf32>
    %421 = arith.maximumf %417, %420 : vector<1x16xf32>
    %422 = arith.truncf %421 : vector<1x16xf32> to vector<1x16xbf16>
    %c18_334 = arith.constant 18 : index
    %c0_335 = arith.constant 0 : index
    %c0_336 = arith.constant 0 : index
    %423 = vector.load %arg6[%c18_334, %c0_335, %c0_336] : memref<25x16x128xbf16, #tpu.memory_space<vmem>>, vector<1x16x128xbf16>
    %424 = vector.shape_cast %423 : vector<1x16x128xbf16> to vector<16x128xbf16>
    %cst_337 = arith.constant dense<0.000000e+00> : vector<1x128xf32>
    %425 = tpu.matmul %422, %424, %cst_337 {dimension_numbers = #tpu.dot_dimension_numbers<[1], [0], [0], [1], [0, 0, 1, 1], [], []>} : vector<1x16xbf16>, vector<16x128xbf16>, vector<1x128xf32> -> vector<1x128xf32>
    %426 = arith.addf %414, %425 : vector<1x128xf32>
    %c92 = arith.constant 92 : index
    %c0_338 = arith.constant 0 : index
    %427 = vector.load %arg14[%c92, %c0_338] : memref<144x16xf32, #tpu.memory_space<vmem>>, vector<1x16xf32>
    %c93 = arith.constant 93 : index
    %c0_339 = arith.constant 0 : index
    %428 = vector.load %arg14[%c93, %c0_339] : memref<144x16xf32, #tpu.memory_space<vmem>>, vector<1x16xf32>
    %429 = arith.maximumf %427, %428 : vector<1x16xf32>
    %c106 = arith.constant 106 : index
    %c0_340 = arith.constant 0 : index
    %430 = vector.load %arg14[%c106, %c0_340] : memref<144x16xf32, #tpu.memory_space<vmem>>, vector<1x16xf32>
    %c107 = arith.constant 107 : index
    %c0_341 = arith.constant 0 : index
    %431 = vector.load %arg14[%c107, %c0_341] : memref<144x16xf32, #tpu.memory_space<vmem>>, vector<1x16xf32>
    %432 = arith.maximumf %430, %431 : vector<1x16xf32>
    %433 = arith.maximumf %429, %432 : vector<1x16xf32>
    %434 = arith.truncf %433 : vector<1x16xf32> to vector<1x16xbf16>
    %c19_342 = arith.constant 19 : index
    %c0_343 = arith.constant 0 : index
    %c0_344 = arith.constant 0 : index
    %435 = vector.load %arg6[%c19_342, %c0_343, %c0_344] : memref<25x16x128xbf16, #tpu.memory_space<vmem>>, vector<1x16x128xbf16>
    %436 = vector.shape_cast %435 : vector<1x16x128xbf16> to vector<16x128xbf16>
    %cst_345 = arith.constant dense<0.000000e+00> : vector<1x128xf32>
    %437 = tpu.matmul %434, %436, %cst_345 {dimension_numbers = #tpu.dot_dimension_numbers<[1], [0], [0], [1], [0, 0, 1, 1], [], []>} : vector<1x16xbf16>, vector<16x128xbf16>, vector<1x128xf32> -> vector<1x128xf32>
    %438 = arith.addf %426, %437 : vector<1x128xf32>
    %c112 = arith.constant 112 : index
    %c0_346 = arith.constant 0 : index
    %439 = vector.load %arg14[%c112, %c0_346] : memref<144x16xf32, #tpu.memory_space<vmem>>, vector<1x16xf32>
    %c113 = arith.constant 113 : index
    %c0_347 = arith.constant 0 : index
    %440 = vector.load %arg14[%c113, %c0_347] : memref<144x16xf32, #tpu.memory_space<vmem>>, vector<1x16xf32>
    %441 = arith.maximumf %439, %440 : vector<1x16xf32>
    %c126 = arith.constant 126 : index
    %c0_348 = arith.constant 0 : index
    %442 = vector.load %arg14[%c126, %c0_348] : memref<144x16xf32, #tpu.memory_space<vmem>>, vector<1x16xf32>
    %c127 = arith.constant 127 : index
    %c0_349 = arith.constant 0 : index
    %443 = vector.load %arg14[%c127, %c0_349] : memref<144x16xf32, #tpu.memory_space<vmem>>, vector<1x16xf32>
    %444 = arith.maximumf %442, %443 : vector<1x16xf32>
    %445 = arith.maximumf %441, %444 : vector<1x16xf32>
    %446 = arith.truncf %445 : vector<1x16xf32> to vector<1x16xbf16>
    %c20_350 = arith.constant 20 : index
    %c0_351 = arith.constant 0 : index
    %c0_352 = arith.constant 0 : index
    %447 = vector.load %arg6[%c20_350, %c0_351, %c0_352] : memref<25x16x128xbf16, #tpu.memory_space<vmem>>, vector<1x16x128xbf16>
    %448 = vector.shape_cast %447 : vector<1x16x128xbf16> to vector<16x128xbf16>
    %cst_353 = arith.constant dense<0.000000e+00> : vector<1x128xf32>
    %449 = tpu.matmul %446, %448, %cst_353 {dimension_numbers = #tpu.dot_dimension_numbers<[1], [0], [0], [1], [0, 0, 1, 1], [], []>} : vector<1x16xbf16>, vector<16x128xbf16>, vector<1x128xf32> -> vector<1x128xf32>
    %450 = arith.addf %438, %449 : vector<1x128xf32>
    %c114 = arith.constant 114 : index
    %c0_354 = arith.constant 0 : index
    %451 = vector.load %arg14[%c114, %c0_354] : memref<144x16xf32, #tpu.memory_space<vmem>>, vector<1x16xf32>
    %c115 = arith.constant 115 : index
    %c0_355 = arith.constant 0 : index
    %452 = vector.load %arg14[%c115, %c0_355] : memref<144x16xf32, #tpu.memory_space<vmem>>, vector<1x16xf32>
    %453 = arith.maximumf %451, %452 : vector<1x16xf32>
    %c128 = arith.constant 128 : index
    %c0_356 = arith.constant 0 : index
    %454 = vector.load %arg14[%c128, %c0_356] : memref<144x16xf32, #tpu.memory_space<vmem>>, vector<1x16xf32>
    %c129 = arith.constant 129 : index
    %c0_357 = arith.constant 0 : index
    %455 = vector.load %arg14[%c129, %c0_357] : memref<144x16xf32, #tpu.memory_space<vmem>>, vector<1x16xf32>
    %456 = arith.maximumf %454, %455 : vector<1x16xf32>
    %457 = arith.maximumf %453, %456 : vector<1x16xf32>
    %458 = arith.truncf %457 : vector<1x16xf32> to vector<1x16xbf16>
    %c21_358 = arith.constant 21 : index
    %c0_359 = arith.constant 0 : index
    %c0_360 = arith.constant 0 : index
    %459 = vector.load %arg6[%c21_358, %c0_359, %c0_360] : memref<25x16x128xbf16, #tpu.memory_space<vmem>>, vector<1x16x128xbf16>
    %460 = vector.shape_cast %459 : vector<1x16x128xbf16> to vector<16x128xbf16>
    %cst_361 = arith.constant dense<0.000000e+00> : vector<1x128xf32>
    %461 = tpu.matmul %458, %460, %cst_361 {dimension_numbers = #tpu.dot_dimension_numbers<[1], [0], [0], [1], [0, 0, 1, 1], [], []>} : vector<1x16xbf16>, vector<16x128xbf16>, vector<1x128xf32> -> vector<1x128xf32>
    %462 = arith.addf %450, %461 : vector<1x128xf32>
    %c116 = arith.constant 116 : index
    %c0_362 = arith.constant 0 : index
    %463 = vector.load %arg14[%c116, %c0_362] : memref<144x16xf32, #tpu.memory_space<vmem>>, vector<1x16xf32>
    %c117 = arith.constant 117 : index
    %c0_363 = arith.constant 0 : index
    %464 = vector.load %arg14[%c117, %c0_363] : memref<144x16xf32, #tpu.memory_space<vmem>>, vector<1x16xf32>
    %465 = arith.maximumf %463, %464 : vector<1x16xf32>
    %c130 = arith.constant 130 : index
    %c0_364 = arith.constant 0 : index
    %466 = vector.load %arg14[%c130, %c0_364] : memref<144x16xf32, #tpu.memory_space<vmem>>, vector<1x16xf32>
    %c131 = arith.constant 131 : index
    %c0_365 = arith.constant 0 : index
    %467 = vector.load %arg14[%c131, %c0_365] : memref<144x16xf32, #tpu.memory_space<vmem>>, vector<1x16xf32>
    %468 = arith.maximumf %466, %467 : vector<1x16xf32>
    %469 = arith.maximumf %465, %468 : vector<1x16xf32>
    %470 = arith.truncf %469 : vector<1x16xf32> to vector<1x16xbf16>
    %c22_366 = arith.constant 22 : index
    %c0_367 = arith.constant 0 : index
    %c0_368 = arith.constant 0 : index
    %471 = vector.load %arg6[%c22_366, %c0_367, %c0_368] : memref<25x16x128xbf16, #tpu.memory_space<vmem>>, vector<1x16x128xbf16>
    %472 = vector.shape_cast %471 : vector<1x16x128xbf16> to vector<16x128xbf16>
    %cst_369 = arith.constant dense<0.000000e+00> : vector<1x128xf32>
    %473 = tpu.matmul %470, %472, %cst_369 {dimension_numbers = #tpu.dot_dimension_numbers<[1], [0], [0], [1], [0, 0, 1, 1], [], []>} : vector<1x16xbf16>, vector<16x128xbf16>, vector<1x128xf32> -> vector<1x128xf32>
    %474 = arith.addf %462, %473 : vector<1x128xf32>
    %c118 = arith.constant 118 : index
    %c0_370 = arith.constant 0 : index
    %475 = vector.load %arg14[%c118, %c0_370] : memref<144x16xf32, #tpu.memory_space<vmem>>, vector<1x16xf32>
    %c119 = arith.constant 119 : index
    %c0_371 = arith.constant 0 : index
    %476 = vector.load %arg14[%c119, %c0_371] : memref<144x16xf32, #tpu.memory_space<vmem>>, vector<1x16xf32>
    %477 = arith.maximumf %475, %476 : vector<1x16xf32>
    %c132 = arith.constant 132 : index
    %c0_372 = arith.constant 0 : index
    %478 = vector.load %arg14[%c132, %c0_372] : memref<144x16xf32, #tpu.memory_space<vmem>>, vector<1x16xf32>
    %c133 = arith.constant 133 : index
    %c0_373 = arith.constant 0 : index
    %479 = vector.load %arg14[%c133, %c0_373] : memref<144x16xf32, #tpu.memory_space<vmem>>, vector<1x16xf32>
    %480 = arith.maximumf %478, %479 : vector<1x16xf32>
    %481 = arith.maximumf %477, %480 : vector<1x16xf32>
    %482 = arith.truncf %481 : vector<1x16xf32> to vector<1x16xbf16>
    %c23_374 = arith.constant 23 : index
    %c0_375 = arith.constant 0 : index
    %c0_376 = arith.constant 0 : index
    %483 = vector.load %arg6[%c23_374, %c0_375, %c0_376] : memref<25x16x128xbf16, #tpu.memory_space<vmem>>, vector<1x16x128xbf16>
    %484 = vector.shape_cast %483 : vector<1x16x128xbf16> to vector<16x128xbf16>
    %cst_377 = arith.constant dense<0.000000e+00> : vector<1x128xf32>
    %485 = tpu.matmul %482, %484, %cst_377 {dimension_numbers = #tpu.dot_dimension_numbers<[1], [0], [0], [1], [0, 0, 1, 1], [], []>} : vector<1x16xbf16>, vector<16x128xbf16>, vector<1x128xf32> -> vector<1x128xf32>
    %486 = arith.addf %474, %485 : vector<1x128xf32>
    %c120 = arith.constant 120 : index
    %c0_378 = arith.constant 0 : index
    %487 = vector.load %arg14[%c120, %c0_378] : memref<144x16xf32, #tpu.memory_space<vmem>>, vector<1x16xf32>
    %c121 = arith.constant 121 : index
    %c0_379 = arith.constant 0 : index
    %488 = vector.load %arg14[%c121, %c0_379] : memref<144x16xf32, #tpu.memory_space<vmem>>, vector<1x16xf32>
    %489 = arith.maximumf %487, %488 : vector<1x16xf32>
    %c134 = arith.constant 134 : index
    %c0_380 = arith.constant 0 : index
    %490 = vector.load %arg14[%c134, %c0_380] : memref<144x16xf32, #tpu.memory_space<vmem>>, vector<1x16xf32>
    %c135 = arith.constant 135 : index
    %c0_381 = arith.constant 0 : index
    %491 = vector.load %arg14[%c135, %c0_381] : memref<144x16xf32, #tpu.memory_space<vmem>>, vector<1x16xf32>
    %492 = arith.maximumf %490, %491 : vector<1x16xf32>
    %493 = arith.maximumf %489, %492 : vector<1x16xf32>
    %494 = arith.truncf %493 : vector<1x16xf32> to vector<1x16xbf16>
    %c24_382 = arith.constant 24 : index
    %c0_383 = arith.constant 0 : index
    %c0_384 = arith.constant 0 : index
    %495 = vector.load %arg6[%c24_382, %c0_383, %c0_384] : memref<25x16x128xbf16, #tpu.memory_space<vmem>>, vector<1x16x128xbf16>
    %496 = vector.shape_cast %495 : vector<1x16x128xbf16> to vector<16x128xbf16>
    %cst_385 = arith.constant dense<0.000000e+00> : vector<1x128xf32>
    %497 = tpu.matmul %494, %496, %cst_385 {dimension_numbers = #tpu.dot_dimension_numbers<[1], [0], [0], [1], [0, 0, 1, 1], [], []>} : vector<1x16xbf16>, vector<16x128xbf16>, vector<1x128xf32> -> vector<1x128xf32>
    %498 = arith.addf %486, %497 : vector<1x128xf32>
    %cst_386 = arith.constant 0.000000e+00 : f32
    %499 = vector.broadcast %cst_386 : f32 to vector<1x128xf32>
    %500 = arith.maximumf %498, %499 : vector<1x128xf32>
    %501 = arith.truncf %500 : vector<1x128xf32> to vector<1x128xbf16>
    %c0_387 = arith.constant 0 : index
    %c0_388 = arith.constant 0 : index
    %502 = vector.load %arg8[%c0_387, %c0_388] : memref<128x128xbf16, #tpu.memory_space<vmem>>, vector<128x128xbf16>
    %cst_389 = arith.constant dense<0.000000e+00> : vector<1x128xf32>
    %503 = tpu.matmul %501, %502, %cst_389 {dimension_numbers = #tpu.dot_dimension_numbers<[1], [0], [0], [1], [0, 0, 1, 1], [], []>} : vector<1x128xbf16>, vector<128x128xbf16>, vector<1x128xf32> -> vector<1x128xf32>
    %c0_390 = arith.constant 0 : index
    %c0_391 = arith.constant 0 : index
    %504 = vector.load %arg9[%c0_390, %c0_391] : memref<1x128xf32, #tpu.memory_space<vmem>>, vector<1x128xf32>
    %505 = arith.addf %503, %504 : vector<1x128xf32>
    %cst_392 = arith.constant 0.000000e+00 : f32
    %506 = vector.broadcast %cst_392 : f32 to vector<1x128xf32>
    %507 = arith.maximumf %505, %506 : vector<1x128xf32>
    %508 = arith.truncf %507 : vector<1x128xf32> to vector<1x128xbf16>
    %c0_393 = arith.constant 0 : index
    %c0_394 = arith.constant 0 : index
    %509 = vector.load %arg10[%c0_393, %c0_394] : memref<128x128xbf16, #tpu.memory_space<vmem>>, vector<128x128xbf16>
    %cst_395 = arith.constant dense<0.000000e+00> : vector<1x128xf32>
    %510 = tpu.matmul %508, %509, %cst_395 {dimension_numbers = #tpu.dot_dimension_numbers<[1], [0], [0], [1], [0, 0, 1, 1], [], []>} : vector<1x128xbf16>, vector<128x128xbf16>, vector<1x128xf32> -> vector<1x128xf32>
    %c0_396 = arith.constant 0 : index
    %c0_397 = arith.constant 0 : index
    %511 = vector.load %arg11[%c0_396, %c0_397] : memref<1x128xf32, #tpu.memory_space<vmem>>, vector<1x128xf32>
    %512 = arith.addf %510, %511 : vector<1x128xf32>
    %c0_398 = arith.constant 0 : index
    %c0_399 = arith.constant 0 : index
    %c0_400 = arith.constant 0 : index
    %513 = vector.load %arg12[%c0_398, %c0_399, %c0_400] : memref<1x1x128xf32, #tpu.memory_space<vmem>>, vector<1x1x128xf32>
    %514 = vector.shape_cast %513 : vector<1x1x128xf32> to vector<1x128xf32>
    %515 = vector.shape_cast %512 : vector<1x128xf32> to vector<1x1x128xf32>
    tpu.vector_store %arg12[%c0_398, %c0_399, %c0_400], %515 {strides = array<i32>} : memref<1x1x128xf32, #tpu.memory_space<vmem>>, vector<1x1x128xf32>,
    return
  }
  func.func @transform_0(%arg0: i32) -> (i32, i32, i32) {
    %c0_i32 = arith.constant 0 : i32
    %c0_i32_0 = arith.constant 0 : i32
    %c0_i32_1 = arith.constant 0 : i32
    return %arg0, %c0_i32, %c0_i32_0 : i32, i32, i32
  }
  func.func @transform_1(%arg0: i32) -> (i32, i32) {
    %c0_i32 = arith.constant 0 : i32
    %c0_i32_0 = arith.constant 0 : i32
    %c0_i32_1 = arith.constant 0 : i32
    return %c0_i32, %c0_i32_0 : i32, i32
  }
  func.func @transform_2(%arg0: i32) -> (i32, i32) {
    %c0_i32 = arith.constant 0 : i32
    %c0_i32_0 = arith.constant 0 : i32
    %c0_i32_1 = arith.constant 0 : i32
    return %c0_i32, %c0_i32_0 : i32, i32
  }
  func.func @transform_3(%arg0: i32) -> (i32, i32, i32) {
    %c0_i32 = arith.constant 0 : i32
    %c0_i32_0 = arith.constant 0 : i32
    %c0_i32_1 = arith.constant 0 : i32
    %c0_i32_2 = arith.constant 0 : i32
    return %c0_i32, %c0_i32_0, %c0_i32_1 : i32, i32, i32
  }
  func.func @transform_4(%arg0: i32) -> (i32, i32) {
    %c0_i32 = arith.constant 0 : i32
    %c0_i32_0 = arith.constant 0 : i32
    %c0_i32_1 = arith.constant 0 : i32
    return %c0_i32, %c0_i32_0 : i32, i32
  }
  func.func @transform_5(%arg0: i32) -> (i32, i32, i32) {
    %c0_i32 = arith.constant 0 : i32
    %c0_i32_0 = arith.constant 0 : i32
    %c0_i32_1 = arith.constant 0 : i32
    %c0_i32_2 = arith.constant 0 : i32
    return %c0_i32, %c0_i32_0, %c0_i32_1 : i32, i32, i32
  }
  func.func @transform_6(%arg0: i32) -> (i32, i32) {
    %c0_i32 = arith.constant 0 : i32
    %c0_i32_0 = arith.constant 0 : i32
    %c0_i32_1 = arith.constant 0 : i32
    return %c0_i32, %c0_i32_0 : i32, i32
  }
  func.func @transform_7(%arg0: i32) -> (i32, i32) {
    %c0_i32 = arith.constant 0 : i32
    %c0_i32_0 = arith.constant 0 : i32
    %c0_i32_1 = arith.constant 0 : i32
    return %c0_i32, %c0_i32_0 : i32, i32
  }
  func.func @transform_8(%arg0: i32) -> (i32, i32) {
    %c0_i32 = arith.constant 0 : i32
    %c0_i32_0 = arith.constant 0 : i32
    %c0_i32_1 = arith.constant 0 : i32
    return %c0_i32, %c0_i32_0 : i32, i32
  }
  func.func @transform_9(%arg0: i32) -> (i32, i32) {
    %c0_i32 = arith.constant 0 : i32
    %c0_i32_0 = arith.constant 0 : i32
    %c0_i32_1 = arith.constant 0 : i32
    return %c0_i32, %c0_i32_0 : i32, i32
  }
  func.func @transform_10(%arg0: i32) -> (i32, i32) {
    %c0_i32 = arith.constant 0 : i32
    %c0_i32_0 = arith.constant 0 : i32
    %c0_i32_1 = arith.constant 0 : i32
    return %c0_i32, %c0_i32_0 : i32, i32
  }
  func.func @transform_11(%arg0: i32) -> (i32, i32, i32) {
    %c0_i32 = arith.constant 0 : i32
    %c0_i32_0 = arith.constant 0 : i32
    %c0_i32_1 = arith.constant 0 : i32
    return %arg0, %c0_i32, %c0_i32_0 : i32, i32, i32
  }
}

</mosaic_0001>

<bundles_post_ra>
// kernel: net_forward.1
= control target key start
LH: loop header
LB: loop body
LE: loop exit
PB: predicated region body
PF: predicated region fallthrough
CT: control target
= control target key end

     0   :  { %s8440_s0 = inlined_call_operand.vmem [shape: bf16[2,832,128], index: 0, kind: input, shape index: {}]   ;;  %s8441_s1 = inlined_call_operand.vmem [shape: bf16[128,128], index: 1, kind: input, shape index: {}]   ;;  %s8442_s2 = inlined_call_operand.vmem [shape: f32[1,128], index: 2, kind: input, shape index: {}]   ;;  %s8443_s3 = inlined_call_operand.vmem [shape: bf16[25,16,128], index: 3, kind: input, shape index: {}]   ;;  %s8444_s4 = inlined_call_operand.vmem [shape: f32[1,128], index: 4, kind: input, shape index: {}]   ;;  %s8445_s5 = inlined_call_operand.vmem [shape: bf16[25,16,128], index: 5, kind: input, shape index: {}]   ;;  %s8446_s6 = inlined_call_operand.vmem [shape: f32[1,128], index: 6, kind: input, shape index: {}]   ;;  %s8447_s7 = inlined_call_operand.vmem [shape: bf16[128,128], index: 7, kind: input, shape index: {}]   ;;  %s8448_s8 = inlined_call_operand.vmem [shape: f32[1,128], index: 8, kind: input, shape index: {}]   ;;  %s8449_s9 = inlined_call_operand.vmem [shape: bf16[128,128], index: 9, kind: input, shape index: {}]   ;;  %s8450_s10 = inlined_call_operand.vmem [shape: f32[1,128], index: 10, kind: input, shape index: {}]   ;;  %s8451_s11 = inlined_call_operand.hbm [shape: f32[2,1,128], index: 11, kind: output, shape index: {}]  }
   0x1   :  { %8455 = sst [smem:[#allocation10_spill]] %s8440_s0 }
   0x2   :  { %8456 = sst [smem:[#allocation11_spill]] %s8441_s1 }
   0x3   :  { %16 = vsyncpa [#allocation5], 0 }
   0x4   :  { %18 = vsyncpa [#allocation5 + $0x1], 0  ;;  %s7036_s17 = smov 0   ;;  %s7038_s18 = smov 0  }
   0x5   :  { %s7040_s19 = smov 0   ;;  %s7042_s20 = smov 0  }
   0x6 LB: > { %s7057_s21 = sadd.s32 4294967295, %s6974_s20   ;;  %s5867_s22 = sadd.s32 4294967294, %s6974_s20   ;;  %s6974_s20 = sphi %s7042_s20, %s8484_s20   ;;  %s6970_s19 = sphi %s7040_s19, %s8483_s19   ;;  %s6966_s18 = sphi %s7038_s18, %s8482_s18   ;;  %s6962_s17 = sphi %s7036_s17, %s8481_s17  }
   0x7   : > { %s7061_s23 = sadd.s32 1, %s6974_s20   ;;  %s267_s24 = sadd.s32 1, %s6970_s19 }
   0x8   : > { %s264_s25 = ssub.s32 %s6974_s20, %s7061_s23  ;;  %p277_p0 = scmp.ne.s32.totalorder %s6970_s19, %s6966_s18 }
   0x9   : > { %p265_p1 = scmp.eq.s32.totalorder %s264_s25, 0  ;;  %p278_p2 = scmp.eq.s32.totalorder %s7057_s21, 1 }
   0xa   : > { %p283_p3 = scmp.ne.s32.totalorder %s6966_s18, %s6962_s17  ;;  %p284_p4 = scmp.eq.s32.totalorder %s5867_s22, 1 }
   0xb   : > { %s7072_s26 = scalar_select %p265_p1, %s6970_s19, %s267_s24  }
   0xc   : > { %p7074_p5 = por %p278_p2, %p277_p0  ;;  %p7078_p6 = por %p284_p4, %p283_p3 }
   0xd   : > { %p5870_p7 = scmp.ge.s32.totalorder %s6974_s20, 1  ;;  %p340_p8 = scmp.lt.s32.totalorder %s6974_s20, 3 }
   0xf   : > { %p341_p9 = pnand %p5870_p7, %p340_p8 }
  0x11   : > { %344 = sbr.rel (%p341_p9) target bundleno = 1824 (0x720), region = 64 }
  0x16   : > { %s8459_s1 = sld [smem:[#allocation11_spill]]  ;;  %p379_p10 = scmp.lt.s32.totalorder %s7057_s21, 1  ;;  %v6784_v8 = vld [vmem:[%s8443_s3] sm:$0xff]  ;;  %v6786_v41 = vld [vmem:[%s8443_s3 + $0x10] sm:$0xff]  ;;  %v6787_v42 = vld [vmem:[%s8443_s3 + $0x18] sm:$0xff]  ;;  %vm1347_vm0 = vcmask 130048  }
  0x17   : > { %s8460_s0 = sld [smem:[#allocation10_spill]]  ;;  %v6785_v43 = vld [vmem:[%s8443_s3 + $0x8] sm:$0xff]  ;;  %v7162_v44 = vld [vmem:[%s8442_s2] ss:$0 sm:$0xff]  ;;  %s5808_s16 = scalar_lea.hbm %s8451_s11, %s7057_s21 }
  0x18   : > { %s380_s12 = scalar_select %p379_p10, %s7057_s21, 1 }
  0x1a   : > { %s6850_s15 = smul.u32 416, %s380_s12  ;;  %s5812_s12 = sshll.u32 %s5808_s16, 4  ;;  %s5813_s12 = int_to_ptr.hbm [resolvable:$true] %s5812_s12 }
  0x1c   : > { %v6744_v0 = vld [vmem:[%s8459_s1 + $0x38] sm:$0xff]  ;;  %v6743_v1 = vld [vmem:[%s8459_s1 + $0x30] sm:$0xff]  ;;  %v6742_v2 = vld [vmem:[%s8459_s1 + $0x28] sm:$0xff] }
  0x1d   : > { %557 = vmatpush.bf16.msra.mxu0 %v6744_v0  ;;  %761 = vmatpush.bf16.msra.mxu1 %v6744_v0  ;;  %v6741_v3 = vld [vmem:[%s8459_s1 + $0x20] sm:$0xff]  ;;  %v6740_v4 = vld [vmem:[%s8459_s1 + $0x18] sm:$0xff]  ;;  %v6739_v5 = vld [vmem:[%s8459_s1 + $0x10] sm:$0xff]  ;;  %s7113_s29 = scalar_lea.vmem %s8460_s0, %s6850_s15  ;;  %s6926_s0 = sshra.s32 %s5813_s12, 4  ;;  %s6927_s0 = int_to_ptr.hbm [resolvable:$true] %s6926_s0 }
  0x1e   : > { %991 = vmatpush.bf16.msra.mxu2 %v6744_v0  ;;  %1221 = vmatpush.bf16.msra.mxu3 %v6744_v0  ;;  %v6738_v6 = vld [vmem:[%s8459_s1 + $0x8] sm:$0xff]  ;;  %v6737_v7 = vld [vmem:[%s8459_s1] sm:$0xff]  ;;  %v6758_v11 = vld [vmem:[%s7113_s29 + $0xd0] sm:$0xff]  ;;  %s6928_s1 = scalar_lea.hbm %s6927_s0, 1  ;;  %s6932_s15 = scalar_lea.hbm %s8451_s11, 2 }
  0x1f   : > { %v6724_v9 = vld [vmem:[%s7113_s29] sm:$0xff]  ;;  %v6745_v10 = vld [vmem:[%s7113_s29 + $0x68] sm:$0xff]  ;;  %v6771_v12 = vld [vmem:[%s7113_s29 + $0x138] sm:$0xff]  ;;  %p6929_p11 = scmp.ne.s32.totalorder %s6927_s0, %s6928_s1  ;;  %p6933_p0 = scmp.lt.s32.totalorder %s6927_s0, %s8451_s11 }
  0x20   : > { %v6725_v13 = vld [vmem:[%s7113_s29 + $0x8] sm:$0xff]  ;;  %v6746_v14 = vld [vmem:[%s7113_s29 + $0x70] sm:$0xff]  ;;  %v6759_v15 = vld [vmem:[%s7113_s29 + $0xd8] sm:$0xff]  ;;  %p6934_p1 = scmp.lt.s32.totalorder %s6932_s15, %s6928_s1 }
  0x21   : > { %558 = vmatpush.bf16.msra.mxu0 %v6743_v1  ;;  %762 = vmatpush.bf16.msra.mxu1 %v6743_v1  ;;  %v6772_v16 = vld [vmem:[%s7113_s29 + $0x140] sm:$0xff]  ;;  %v6726_v17 = vld [vmem:[%s7113_s29 + $0x10] sm:$0xff]  ;;  %v6747_v18 = vld [vmem:[%s7113_s29 + $0x78] sm:$0xff]  ;;  %p6930_p12 = pnand %p6929_p11, %p7074_p5 }
  0x22   : > { %992 = vmatpush.bf16.msra.mxu2 %v6743_v1  ;;  %1222 = vmatpush.bf16.msra.mxu3 %v6743_v1  ;;  %v6760_v19 = vld [vmem:[%s7113_s29 + $0xe0] sm:$0xff]  ;;  %v6773_v20 = vld [vmem:[%s7113_s29 + $0x148] sm:$0xff]  ;;  %v6727_v21 = vld [vmem:[%s7113_s29 + $0x18] sm:$0xff]  ;;  %p6935_p2 = por %p6934_p1, %p6933_p0 }
  0x23   : > { %v6748_v22 = vld [vmem:[%s7113_s29 + $0x80] sm:$0xff]  ;;  %v6761_v23 = vld [vmem:[%s7113_s29 + $0xe8] sm:$0xff]  ;;  %v6774_v24 = vld [vmem:[%s7113_s29 + $0x150] sm:$0xff]  ;;  %p6931_p13 = pneg %p6930_p12 }
  0x24   : > { %v6728_v25 = vld [vmem:[%s7113_s29 + $0x20] sm:$0xff]  ;;  %v6749_v26 = vld [vmem:[%s7113_s29 + $0x88] sm:$0xff]  ;;  %v6762_v27 = vld [vmem:[%s7113_s29 + $0xf0] sm:$0xff] }
  0x25   : > { %559 = vmatpush.bf16.msra.mxu0 %v6742_v2  ;;  %763 = vmatpush.bf16.msra.mxu1 %v6742_v2  ;;  %v6775_v28 = vld [vmem:[%s7113_s29 + $0x158] sm:$0xff]  ;;  %v6729_v29 = vld [vmem:[%s7113_s29 + $0x28] sm:$0xff]  ;;  %v6750_v30 = vld [vmem:[%s7113_s29 + $0x90] sm:$0xff]  ;;  %p6936_p3 = pnand %p6935_p2, %p6931_p13 }
  0x26   : > { %993 = vmatpush.bf16.msra.mxu2 %v6742_v2  ;;  %1223 = vmatpush.bf16.msra.mxu3 %v6742_v2  ;;  %v6763_v31 = vld [vmem:[%s7113_s29 + $0xf8] sm:$0xff]  ;;  %v6776_v32 = vld [vmem:[%s7113_s29 + $0x160] sm:$0xff]  ;;  %v6730_v33 = vld [vmem:[%s7113_s29 + $0x30] sm:$0xff] }
  0x27   : > { %v6751_v34 = vld [vmem:[%s7113_s29 + $0x98] sm:$0xff]  ;;  %v6764_v35 = vld [vmem:[%s7113_s29 + $0x100] sm:$0xff]  ;;  %v6777_v36 = vld [vmem:[%s7113_s29 + $0x168] sm:$0xff] }
  0x28   : > { %v6731_v37 = vld [vmem:[%s7113_s29 + $0x38] sm:$0xff]  ;;  %v6752_v38 = vld [vmem:[%s7113_s29 + $0xa0] sm:$0xff]  ;;  %v6765_v39 = vld [vmem:[%s7113_s29 + $0x108] sm:$0xff] }
  0x29   : > { %560 = vmatpush.bf16.msra.mxu0 %v6741_v3  ;;  %764 = vmatpush.bf16.msra.mxu1 %v6741_v3  ;;  %v6778_v40 = vld [vmem:[%s7113_s29 + $0x170] sm:$0xff]  ;;  %v6732_v45 = vld [vmem:[%s7113_s29 + $0x40] sm:$0xff]  ;;  %v6753_v46 = vld [vmem:[%s7113_s29 + $0xa8] sm:$0xff] }
  0x2a   : > { %994 = vmatpush.bf16.msra.mxu2 %v6741_v3  ;;  %1224 = vmatpush.bf16.msra.mxu3 %v6741_v3  ;;  %v6766_v49 = vld [vmem:[%s7113_s29 + $0x110] sm:$0xff]  ;;  %v6779_v50 = vld [vmem:[%s7113_s29 + $0x178] sm:$0xff] }
  0x2d   : > { %561 = vmatpush.bf16.msra.mxu0 %v6740_v4  ;;  %765 = vmatpush.bf16.msra.mxu1 %v6740_v4 }
  0x2e   : > { %995 = vmatpush.bf16.msra.mxu2 %v6740_v4  ;;  %1225 = vmatpush.bf16.msra.mxu3 %v6740_v4 }
  0x31   : > { %562 = vmatpush.bf16.msra.mxu0 %v6739_v5  ;;  %766 = vmatpush.bf16.msra.mxu1 %v6739_v5 }
  0x32   : > { %996 = vmatpush.bf16.msra.mxu2 %v6739_v5  ;;  %1226 = vmatpush.bf16.msra.mxu3 %v6739_v5 }
  0x35   : > { %563 = vmatpush.bf16.msra.mxu0 %v6738_v6  ;;  %767 = vmatpush.bf16.msra.mxu1 %v6738_v6 }
  0x36   : > { %997 = vmatpush.bf16.msra.mxu2 %v6738_v6  ;;  %1227 = vmatpush.bf16.msra.mxu3 %v6738_v6 }
  0x39   : > { %564 = vmatpush.bf16.msra.mxu0 %v6737_v7  ;;  %768 = vmatpush.bf16.msra.mxu1 %v6737_v7 }
  0x3a   : > { %998 = vmatpush.bf16.msra.mxu2 %v6737_v7  ;;  %1228 = vmatpush.bf16.msra.mxu3 %v6737_v7 }
  0x3c   : > { %565 = vmatmul.bf16.vlgmr.msra.gmra.mxu0 %v6724_v9  ;;  %769 = vmatmul.bf16.vlgmr.msra.gmra.mxu1 %v6745_v10  ;;  %v6754_v9 = vld [vmem:[%s7113_s29 + $0xb0] sm:$0xff] }
  0x3d   : > { %1447 = vmatpush.bf16.msrb.mxu0 %v6784_v8  ;;  %999 = vmatmul.bf16.vlgmr.msra.gmra.mxu2 %v6758_v11  ;;  %v6733_v8 = vld [vmem:[%s7113_s29 + $0x48] sm:$0xff] }
  0x3e   : > { %1229 = vmatmul.bf16.vlgmr.msra.gmra.mxu3 %v6771_v12  ;;  %1717 = vmatpush.bf16.msrb.mxu2 %v6786_v41 }
  0x3f   : > { %1852 = vmatpush.bf16.msrb.mxu3 %v6787_v42  ;;  %1582 = vmatpush.bf16.msrb.mxu1 %v6785_v43  ;;  %v6734_v42 = vld [vmem:[%s7113_s29 + $0x50] sm:$0xff]  ;;  %v6755_v43 = vld [vmem:[%s7113_s29 + $0xb8] sm:$0xff] }
  0x4c   : > { %570 = vmatmul.bf16.gmra.mxu0 %v6725_v13  ;;  %774 = vmatmul.bf16.gmra.mxu1 %v6746_v14  ;;  %v6767_v14 = vld [vmem:[%s7113_s29 + $0x118] sm:$0xff] }
  0x4d   : > { %1004 = vmatmul.bf16.gmra.mxu2 %v6759_v15  ;;  %v6780_v15 = vld [vmem:[%s7113_s29 + $0x180] sm:$0xff] }
  0x4e   : > { %1234 = vmatmul.bf16.gmra.mxu3 %v6772_v16 }
  0x5c   : > { %575 = vmatmul.bf16.gmra.mxu0 %v6726_v17  ;;  %779 = vmatmul.bf16.gmra.mxu1 %v6747_v18 }
  0x5d   : > { %1009 = vmatmul.bf16.gmra.mxu2 %v6760_v19 }
  0x5e   : > { %1239 = vmatmul.bf16.gmra.mxu3 %v6773_v20 }
  0x6c   : > { %580 = vmatmul.bf16.gmra.mxu0 %v6727_v21  ;;  %784 = vmatmul.bf16.gmra.mxu1 %v6748_v22 }
  0x6d   : > { %1014 = vmatmul.bf16.gmra.mxu2 %v6761_v23 }
  0x6e   : > { %1244 = vmatmul.bf16.gmra.mxu3 %v6774_v24 }
  0x7c   : > { %585 = vmatmul.bf16.gmra.mxu0 %v6728_v25  ;;  %789 = vmatmul.bf16.gmra.mxu1 %v6749_v26 }
  0x7d   : > { %1019 = vmatmul.bf16.gmra.mxu2 %v6762_v27 }
  0x7e   : > { %1249 = vmatmul.bf16.gmra.mxu3 %v6775_v28 }
  0x8c   : > { %590 = vmatmul.bf16.gmra.mxu0 %v6729_v29  ;;  %794 = vmatmul.bf16.gmra.mxu1 %v6750_v30 }
  0x8d   : > { %1024 = vmatmul.bf16.gmra.mxu2 %v6763_v31 }
  0x8e   : > { %1254 = vmatmul.bf16.gmra.mxu3 %v6776_v32 }
  0x9c   : > { %595 = vmatmul.bf16.gmra.mxu0 %v6730_v33  ;;  %799 = vmatmul.bf16.gmra.mxu1 %v6751_v34 }
  0x9d   : > { %1029 = vmatmul.bf16.gmra.mxu2 %v6764_v35 }
  0x9e   : > { %1259 = vmatmul.bf16.gmra.mxu3 %v6777_v36 }
  0xac   : > { %600 = vmatmul.bf16.gmra.mxu0 %v6731_v37  ;;  %804 = vmatmul.bf16.gmra.mxu1 %v6752_v38 }
  0xad   : > { %1034 = vmatmul.bf16.gmra.mxu2 %v6765_v39 }
  0xae   : > { %1264 = vmatmul.bf16.gmra.mxu3 %v6778_v40 }
  0xb9   : > { %v566_v47 = vpop.f32.mrf.mxu0  ;;  %v770_v48 = vpop.f32.mrf.mxu1 }
  0xba   : > { %v567_v51 = vadd.f32 %v7162_v44, %v566_v47  ;;  %v771_v52 = vadd.f32 %v7162_v44, %v770_v48 }
  0xbc   : > { %605 = vmatmul.bf16.gmra.mxu0 %v6732_v45  ;;  %809 = vmatmul.bf16.gmra.mxu1 %v6753_v46  ;;  %v631_v53 = vmax.f32 %v567_v51, 0.0  ;;  %v835_v54 = vmax.f32 %v771_v52, 0.0 }
  0xbd   : > { %1039 = vmatmul.bf16.gmra.mxu2 %v6766_v49  ;;  %v6768_v49 = vld [vmem:[%s7113_s29 + $0x120] sm:$0xff] }
  0xbe   : > { %1269 = vmatmul.bf16.gmra.mxu3 %v6779_v50  ;;  %v861_v61 = vmax.f32 %v631_v53, %v835_v54  ;;  %v6781_v50 = vld [vmem:[%s7113_s29 + $0x188] sm:$0xff] }
  0xc0   : > { %v1000_v55 = vpop.f32.mrf.mxu2 }
  0xc1   : > { %v1230_v56 = vpop.f32.mrf.mxu3  ;;  %v1001_v57 = vadd.f32 %v7162_v44, %v1000_v55  ;;  %v568_v59 = vpop.f32.mrf.mxu0 }
  0xc2   : > { %v1231_v58 = vadd.f32 %v7162_v44, %v1230_v56  ;;  %v772_v60 = vpop.f32.mrf.mxu1  ;;  %v569_v0 = vadd.f32 %v7162_v44, %v568_v59 }
  0xc3   : > { %v1065_v62 = vmax.f32 %v1001_v57, 0.0  ;;  %v773_v1 = vadd.f32 %v7162_v44, %v772_v60 }
  0xc4   : > { %v1295_v63 = vmax.f32 %v1231_v58, 0.0  ;;  %v632_v4 = vmax.f32 %v569_v0, 0.0 }
  0xc5   : > { %v1091_v2 = vmax.f32 %v861_v61, %v1065_v62  ;;  %v836_v5 = vmax.f32 %v773_v1, 0.0 }
  0xc7   : > { %v1321_v3 = vmax.f32 %v1091_v2, %v1295_v63  ;;  %v862_v18 = vmax.f32 %v632_v4, %v836_v5 }
  0xc8   : > { %v1002_v6 = vpop.f32.mrf.mxu2 }
  0xc9   : > { %v1232_v7 = vpop.f32.mrf.mxu3  ;;  %1348 = vst.msk [vmem:[#allocation2] sm:$0xff] %vm1347_vm0, %v1321_v3  ;;  %v1003_v10 = vadd.f32 %v7162_v44, %v1002_v6  ;;  %v571_v12 = vpop.f32.mrf.mxu0 }
  0xca   : > { %v1233_v11 = vadd.f32 %v7162_v44, %v1232_v7  ;;  %v775_v13 = vpop.f32.mrf.mxu1  ;;  %v572_v16 = vadd.f32 %v7162_v44, %v571_v12 }
  0xcb   : > { %v776_v17 = vadd.f32 %v7162_v44, %v775_v13  ;;  %v1066_v19 = vmax.f32 %v1003_v10, 0.0  ;;  %v6735_v13 = vld [vmem:[%s7113_s29 + $0x58] sm:$0xff] }
  0xcc   : > { %v1296_v20 = vmax.f32 %v1233_v11, 0.0  ;;  %610 = vmatmul.bf16.gmra.mxu0 %v6733_v8  ;;  %814 = vmatmul.bf16.gmra.mxu1 %v6754_v9  ;;  %v633_v22 = vmax.f32 %v572_v16, 0.0 }
  0xcd   : > { %v1092_v21 = vmax.f32 %v862_v18, %v1066_v19  ;;  %1044 = vmatmul.bf16.gmra.mxu2 %v6767_v14  ;;  %v837_v23 = vmax.f32 %v776_v17, 0.0  ;;  %v6756_v14 = vld [vmem:[%s7113_s29 + $0xc0] sm:$0xff]  ;;  %v6769_v19 = vld [vmem:[%s7113_s29 + $0x128] sm:$0xff] }
  0xce   : > { %1274 = vmatmul.bf16.gmra.mxu3 %v6780_v15 }
  0xcf   : > { %v1322_v24 = vmax.f32 %v1092_v21, %v1296_v20  ;;  %v863_v31 = vmax.f32 %v633_v22, %v837_v23  ;;  %v6782_v20 = vld [vmem:[%s7113_s29 + $0x190] sm:$0xff] }
  0xd0   : > { %v1005_v25 = vpop.f32.mrf.mxu2 }
  0xd1   : > { %v1235_v26 = vpop.f32.mrf.mxu3  ;;  %1349 = vst.msk [vmem:[#allocation2 + $0x8] sm:$0xff] %vm1347_vm0, %v1322_v24  ;;  %v1006_v27 = vadd.f32 %v7162_v44, %v1005_v25  ;;  %v573_v29 = vpop.f32.mrf.mxu0 }
  0xd2   : > { %v1236_v28 = vadd.f32 %v7162_v44, %v1235_v26  ;;  %v777_v30 = vpop.f32.mrf.mxu1  ;;  %v574_v34 = vadd.f32 %v7162_v44, %v573_v29 }
  0xd3   : > { %v1067_v32 = vmax.f32 %v1006_v27, 0.0  ;;  %v778_v35 = vadd.f32 %v7162_v44, %v777_v30 }
  0xd4   : > { %v1297_v33 = vmax.f32 %v1236_v28, 0.0  ;;  %v634_v38 = vmax.f32 %v574_v34, 0.0 }
  0xd5   : > { %v1093_v36 = vmax.f32 %v863_v31, %v1067_v32  ;;  %v838_v39 = vmax.f32 %v778_v35, 0.0 }
  0xd7   : > { %v1323_v37 = vmax.f32 %v1093_v36, %v1297_v33  ;;  %v864_v53 = vmax.f32 %v634_v38, %v838_v39  ;;  %v6788_v36 = vld [vmem:[%s8443_s3 + $0x20] sm:$0xff] }
  0xd8   : > { %v1007_v40 = vpop.f32.mrf.mxu2  ;;  %1987 = vmatpush.bf16.msra.mxu0 %v6788_v36 }
  0xd9   : > { %v1237_v41 = vpop.f32.mrf.mxu3  ;;  %1350 = vst.msk [vmem:[#allocation2 + $0x10] sm:$0xff] %vm1347_vm0, %v1323_v37  ;;  %v1008_v45 = vadd.f32 %v7162_v44, %v1007_v40  ;;  %v576_v47 = vpop.f32.mrf.mxu0 }
  0xda   : > { %v1238_v46 = vadd.f32 %v7162_v44, %v1237_v41  ;;  %v780_v48 = vpop.f32.mrf.mxu1  ;;  %v577_v51 = vadd.f32 %v7162_v44, %v576_v47 }
  0xdb   : > { %v781_v52 = vadd.f32 %v7162_v44, %v780_v48  ;;  %v1068_v54 = vmax.f32 %v1008_v45, 0.0 }
  0xdc   : > { %v1298_v55 = vmax.f32 %v1238_v46, 0.0  ;;  %615 = vmatmul.bf16.gmra.mxu0 %v6734_v42  ;;  %819 = vmatmul.bf16.gmra.mxu1 %v6755_v43  ;;  %v635_v57 = vmax.f32 %v577_v51, 0.0 }
  0xdd   : > { %v1094_v56 = vmax.f32 %v864_v53, %v1068_v54  ;;  %1049 = vmatmul.bf16.gmra.mxu2 %v6768_v49  ;;  %v839_v58 = vmax.f32 %v781_v52, 0.0  ;;  %v6736_v49 = vld [vmem:[%s7113_s29 + $0x60] sm:$0xff] }
  0xde   : > { %1279 = vmatmul.bf16.gmra.mxu3 %v6781_v50  ;;  %v6757_v50 = vld [vmem:[%s7113_s29 + $0xc8] sm:$0xff] }
  0xdf   : > { %v1324_v59 = vmax.f32 %v1094_v56, %v1298_v55  ;;  %v865_v2 = vmax.f32 %v635_v57, %v839_v58  ;;  %v6770_v55 = vld [vmem:[%s7113_s29 + $0x130] sm:$0xff]  ;;  %v6783_v56 = vld [vmem:[%s7113_s29 + $0x198] sm:$0xff]  ;;  %s377_s29 = sand.u32 1, %s6966_s18  }
  0xe0   : > { %v1010_v60 = vpop.f32.mrf.mxu2  ;;  %s378_s25 = scalar_lea.vmem [#allocation4], %s377_s29  ;;  %s5800_s13 = scalar_lea.sflag [#allocation5], %s377_s29 }
  0xe1   : > { %v1240_v61 = vpop.f32.mrf.mxu3  ;;  %1351 = vst.msk [vmem:[#allocation2 + $0x18] sm:$0xff] %vm1347_vm0, %v1324_v59  ;;  %v1011_v62 = vadd.f32 %v7162_v44, %v1010_v60  ;;  %v578_v0 = vpop.f32.mrf.mxu0  ;;  %s5810_s30 = sshll.u32 %s378_s25, 4  ;;  %s5811_s30 = int_to_ptr.vmem [resolvable:$true] %s5810_s30 }
  0xe2   : > { %v1241_v63 = vadd.f32 %v7162_v44, %v1240_v61  ;;  %v782_v1 = vpop.f32.mrf.mxu1  ;;  %v579_v5 = vadd.f32 %v7162_v44, %v578_v0 }
  0xe3   : > { %v1069_v3 = vmax.f32 %v1011_v62, 0.0  ;;  %v783_v6 = vadd.f32 %v7162_v44, %v782_v1 }
  0xe4   : > { %v1299_v4 = vmax.f32 %v1241_v63, 0.0  ;;  %v636_v9 = vmax.f32 %v579_v5, 0.0 }
  0xe5   : > { %v1095_v7 = vmax.f32 %v865_v2, %v1069_v3  ;;  %v840_v10 = vmax.f32 %v783_v6, 0.0 }
  0xe7   : > { %v1325_v8 = vmax.f32 %v1095_v7, %v1299_v4  ;;  %v866_v23 = vmax.f32 %v636_v9, %v840_v10 }
  0xe8   : > { %v1012_v11 = vpop.f32.mrf.mxu2  ;;  %v2457_v0 = vld [vmem:[#allocation2 + $0x11] sm:$0xff] }
  0xe9   : > { %v1242_v12 = vpop.f32.mrf.mxu3  ;;  %1352 = vst.msk [vmem:[#allocation2 + $0x20] sm:$0xff] %vm1347_vm0, %v1325_v8  ;;  %v1013_v15 = vadd.f32 %v7162_v44, %v1012_v11  ;;  %v581_v17 = vpop.f32.mrf.mxu0 }
  0xea   : > { %v1243_v16 = vadd.f32 %v7162_v44, %v1242_v12  ;;  %v785_v18 = vpop.f32.mrf.mxu1  ;;  %v582_v21 = vadd.f32 %v7162_v44, %v581_v17  ;;  %v1379_v17 = vld [vmem:[#allocation2 + $0x8] sm:$0xff] }
  0xeb   : > { %v786_v22 = vadd.f32 %v7162_v44, %v785_v18  ;;  %v1070_v24 = vmax.f32 %v1013_v15, 0.0  ;;  %v1513_v18 = vld [vmem:[#allocation2 + $0x9] sm:$0xff] }
  0xec   : > { %v1300_v25 = vmax.f32 %v1243_v16, 0.0  ;;  %620 = vmatmul.bf16.gmra.mxu0 %v6735_v13  ;;  %824 = vmatmul.bf16.gmra.mxu1 %v6756_v14  ;;  %v637_v27 = vmax.f32 %v582_v21, 0.0 }
  0xed   : > { %v1096_v26 = vmax.f32 %v866_v23, %v1070_v24  ;;  %1054 = vmatmul.bf16.gmra.mxu2 %v6769_v19  ;;  %v841_v28 = vmax.f32 %v786_v22, 0.0  ;;  %v1648_v22 = vld [vmem:[#allocation2 + $0xa] sm:$0xff] }
  0xee   : > { %1284 = vmatmul.bf16.gmra.mxu3 %v6782_v20  ;;  %v1783_v23 = vld [vmem:[#allocation2 + $0xb] sm:$0xff] }
  0xef   : > { %v1326_v29 = vmax.f32 %v1096_v26, %v1300_v25  ;;  %v867_v37 = vmax.f32 %v637_v27, %v841_v28  ;;  %v1378_v26 = vld [vmem:[#allocation2] sm:$0xff] }
  0xf0   : > { %v1015_v30 = vpop.f32.mrf.mxu2  ;;  %v7228_v59 = vld [vmem:[#allocation2 + $0x1c] sm:$0xff] }
  0xf1   : > { %v1245_v31 = vpop.f32.mrf.mxu3  ;;  %1353 = vst.msk [vmem:[#allocation2 + $0x28] sm:$0xff] %vm1347_vm0, %v1326_v29  ;;  %v1016_v32 = vadd.f32 %v7162_v44, %v1015_v30  ;;  %v583_v34 = vpop.f32.mrf.mxu0  ;;  %v1512_v27 = vld [vmem:[#allocation2 + $0x1] sm:$0xff] }
  0xf2   : > { %v1246_v33 = vadd.f32 %v7162_v44, %v1245_v31  ;;  %v787_v35 = vpop.f32.mrf.mxu1  ;;  %v584_v40 = vadd.f32 %v7162_v44, %v583_v34  ;;  %v1647_v34 = vld [vmem:[#allocation2 + $0x2] sm:$0xff] }
  0xf3   : > { %v1071_v38 = vmax.f32 %v1016_v32, 0.0  ;;  %v788_v41 = vadd.f32 %v7162_v44, %v787_v35  ;;  %v1396_v32 = vpack.c.bf16 %v1379_v17, %v1378_v26  ;;  %v1782_v35 = vld [vmem:[#allocation2 + $0x3] sm:$0xff] }
  0xf4   : > { %v1301_v39 = vmax.f32 %v1246_v33, 0.0  ;;  %v638_v45 = vmax.f32 %v584_v40, 0.0  ;;  %v1530_v33 = vpack.c.bf16 %v1513_v18, %v1512_v27 }
  0xf5   : > { %v1097_v42 = vmax.f32 %v867_v37, %v1071_v38  ;;  %v842_v46 = vmax.f32 %v788_v41, 0.0  ;;  %v1665_v38 = vpack.c.bf16 %v1648_v22, %v1647_v34  ;;  %v1649_v22 = vld [vmem:[#allocation2 + $0x12] sm:$0xff] }
  0xf7   : > { %v1327_v43 = vmax.f32 %v1097_v42, %v1301_v39  ;;  %v868_v61 = vmax.f32 %v638_v45, %v842_v46  ;;  %v1800_v39 = vpack.c.bf16 %v1783_v23, %v1782_v35  ;;  %v1784_v23 = vld [vmem:[#allocation2 + $0x13] sm:$0xff] }
  0xf8   : > { %v1017_v47 = vpop.f32.mrf.mxu2  ;;  %v7230_v60 = vld [vmem:[#allocation2 + $0x24] sm:$0xff] }
  0xf9   : > { %v1247_v48 = vpop.f32.mrf.mxu3  ;;  %1354 = vst.msk [vmem:[#allocation2 + $0x30] sm:$0xff] %vm1347_vm0, %v1327_v43  ;;  %v1018_v51 = vadd.f32 %v7162_v44, %v1017_v47  ;;  %v586_v53 = vpop.f32.mrf.mxu0 }
  0xfa   : > { %v1248_v52 = vadd.f32 %v7162_v44, %v1247_v48  ;;  %v790_v54 = vpop.f32.mrf.mxu1  ;;  %v587_v57 = vadd.f32 %v7162_v44, %v586_v53 }
  0xfb   : > { %v791_v58 = vadd.f32 %v7162_v44, %v790_v54  ;;  %v1072_v62 = vmax.f32 %v1018_v51, 0.0 }
  0xfc   : > { %v1302_v63 = vmax.f32 %v1248_v52, 0.0  ;;  %625 = vmatmul.bf16.gmra.mxu0 %v6736_v49  ;;  %829 = vmatmul.bf16.gmra.mxu1 %v6757_v50  ;;  %v639_v2 = vmax.f32 %v587_v57, 0.0 }
  0xfd   : > { %v1098_v1 = vmax.f32 %v868_v61, %v1072_v62  ;;  %1059 = vmatmul.bf16.gmra.mxu2 %v6770_v55  ;;  %v843_v3 = vmax.f32 %v791_v58, 0.0 }
  0xfe   : > { %1289 = vmatmul.bf16.gmra.mxu3 %v6783_v56 }
  0xff   : > { %v1328_v4 = vmax.f32 %v1098_v1, %v1302_v63  ;;  %v869_v11 = vmax.f32 %v639_v2, %v843_v3 }
 0x100   : > { %v1020_v5 = vpop.f32.mrf.mxu2  ;;  %v7244_v40 = vld [vmem:[#allocation2 + $0x2c] sm:$0xff] }
 0x101   : > { %v1250_v6 = vpop.f32.mrf.mxu3  ;;  %1355 = vst.msk [vmem:[#allocation2 + $0x38] sm:$0xff] %vm1347_vm0, %v1328_v4  ;;  %v1021_v7 = vadd.f32 %v7162_v44, %v1020_v5  ;;  %v588_v9 = vpop.f32.mrf.mxu0  ;;  %v7248_v46 = vld [vmem:[#allocation2 + $0x2a] sm:$0xff]  ;;  %v1381_v5 = vld [vmem:[#allocation2 + $0x18] sm:$0xff] }
 0x102   : > { %v1251_v8 = vadd.f32 %v7162_v44, %v1250_v6  ;;  %v792_v10 = vpop.f32.mrf.mxu1  ;;  %v589_v14 = vadd.f32 %v7162_v44, %v588_v9  ;;  %v1515_v6 = vld [vmem:[#allocation2 + $0x19] sm:$0xff] }
 0x103   : > { %v1073_v12 = vmax.f32 %v1021_v7, 0.0  ;;  %v793_v15 = vadd.f32 %v7162_v44, %v792_v10  ;;  %v1650_v10 = vld [vmem:[#allocation2 + $0x1a] sm:$0xff] }
 0x104   : > { %v1303_v13 = vmax.f32 %v1251_v8, 0.0  ;;  %v640_v20 = vmax.f32 %v589_v14, 0.0  ;;  %v1380_v14 = vld [vmem:[#allocation2 + $0x10] sm:$0xff]  ;;  %v1666_v26 = vpack.c.bf16 %v1650_v10, %v1649_v22 }
 0x105   : > { %v1099_v16 = vmax.f32 %v869_v11, %v1073_v12  ;;  %v844_v21 = vmax.f32 %v793_v15, 0.0  ;;  %v1785_v11 = vld [vmem:[#allocation2 + $0x1b] sm:$0xff]  ;;  %v1514_v15 = vld [vmem:[#allocation2 + $0x11] sm:$0xff] }
 0x106   : > { %v1801_v27 = vpack.c.bf16 %v1785_v11, %v1784_v23 }
 0x107   : > { %v1329_v19 = vmax.f32 %v1099_v16, %v1303_v13  ;;  %v870_v42 = vmax.f32 %v640_v20, %v844_v21  ;;  %v7268_v20 = vpack.c.bf16 %v1381_v5, %v1380_v14  ;;  %v1531_v21 = vpack.c.bf16 %v1515_v6, %v1514_v15  ;;  %v1787_v5 = vld [vmem:[#allocation2 + $0x2b] sm:$0xff] }
 0x108   : > { %v1022_v24 = vpop.f32.mrf.mxu2  ;;  %v7246_v41 = vld [vmem:[#allocation2 + $0x34] sm:$0xff] }
 0x109   : > { %v1252_v25 = vpop.f32.mrf.mxu3  ;;  %1356 = vst.msk [vmem:[#allocation2 + $0x40] sm:$0xff] %vm1347_vm0, %v1329_v19  ;;  %v1023_v28 = vadd.f32 %v7162_v44, %v1022_v24  ;;  %v591_v30 = vpop.f32.mrf.mxu0  ;;  %v7252_v48 = vld [vmem:[#allocation2 + $0x32] sm:$0xff] }
 0x10a   : > { %v1253_v29 = vadd.f32 %v7162_v44, %v1252_v25  ;;  %v795_v31 = vpop.f32.mrf.mxu1  ;;  %v592_v36 = vadd.f32 %v7162_v44, %v591_v30 }
 0x10b   : > { %v796_v37 = vadd.f32 %v7162_v44, %v795_v31  ;;  %v1074_v43 = vmax.f32 %v1023_v28, 0.0 }
 0x10c   : > { %v1304_v45 = vmax.f32 %v1253_v29, 0.0  ;;  %6116 = vmatmul.msk.bf16.vlgmr.msrb.gmra.mxu0 %vm1347_vm0, %v1396_v32  ;;  %6131 = vmatmul.msk.bf16.vlgmr.msrb.gmra.mxu1 %vm1347_vm0, %v1530_v33  ;;  %v641_v51 = vmax.f32 %v592_v36, 0.0 }
 0x10d   : > { %v1100_v50 = vmax.f32 %v870_v42, %v1074_v43  ;;  %6146 = vmatmul.msk.bf16.vlgmr.msrb.gmra.mxu2 %vm1347_vm0, %v1665_v38  ;;  %v845_v52 = vmax.f32 %v796_v37, 0.0 }
 0x10e   : > { %6161 = vmatmul.msk.bf16.vlgmr.msrb.gmra.mxu3 %vm1347_vm0, %v1800_v39 }
 0x10f   : > { %v1330_v53 = vmax.f32 %v1100_v50, %v1304_v45  ;;  %v871_v62 = vmax.f32 %v641_v51, %v845_v52 }
 0x110   : > { %v1025_v54 = vpop.f32.mrf.mxu2  ;;  %v7272_v28 = vld [vmem:[#allocation2 + $0x3c] sm:$0xff] }
 0x111   : > { %v1255_v55 = vpop.f32.mrf.mxu3  ;;  %1357 = vst.msk [vmem:[#allocation2 + $0x48] sm:$0xff] %vm1347_vm0, %v1330_v53  ;;  %v1026_v56 = vadd.f32 %v7162_v44, %v1025_v54  ;;  %v593_v58 = vpop.f32.mrf.mxu0  ;;  %v7276_v33 = vld [vmem:[#allocation2 + $0x3a] sm:$0xff] }
 0x112   : > { %v1256_v57 = vadd.f32 %v7162_v44, %v1255_v55  ;;  %v797_v61 = vpop.f32.mrf.mxu1  ;;  %v594_v2 = vadd.f32 %v7162_v44, %v593_v58 }
 0x113   : > { %v1075_v63 = vmax.f32 %v1026_v56, 0.0  ;;  %v798_v3 = vadd.f32 %v7162_v44, %v797_v61 }
 0x114   : > { %v1305_v1 = vmax.f32 %v1256_v57, 0.0  ;;  %v642_v8 = vmax.f32 %v594_v2, 0.0 }
 0x115   : > { %v1101_v4 = vmax.f32 %v871_v62, %v1075_v63  ;;  %v846_v9 = vmax.f32 %v798_v3, 0.0  ;;  %v1383_v62 = vld [vmem:[#allocation2 + $0x28] sm:$0xff] }
 0x116   : > { %v1517_v63 = vld [vmem:[#allocation2 + $0x29] sm:$0xff] }
 0x117   : > { %v1331_v7 = vmax.f32 %v1101_v4, %v1305_v1  ;;  %v872_v30 = vmax.f32 %v642_v8, %v846_v9  ;;  %v1652_v4 = vld [vmem:[#allocation2 + $0x2a] sm:$0xff]  ;;  %v1382_v8 = vld [vmem:[#allocation2 + $0x20] sm:$0xff] }
 0x118   : > { %v1027_v12 = vpop.f32.mrf.mxu2  ;;  %v7274_v29 = vld [vmem:[#allocation2 + $0x44] sm:$0xff]  ;;  %v7297_v14 = vpack.c.bf16 %v1383_v62, %v1382_v8 }
 0x119   : > { %v1257_v13 = vpop.f32.mrf.mxu3  ;;  %1358 = vst.msk [vmem:[#allocation2 + $0x50] sm:$0xff] %vm1347_vm0, %v1331_v7  ;;  %v1028_v16 = vadd.f32 %v7162_v44, %v1027_v12  ;;  %v596_v18 = vpop.f32.mrf.mxu0  ;;  %v7280_v35 = vld [vmem:[#allocation2 + $0x42] sm:$0xff] }
 0x11a   : > { %v1258_v17 = vadd.f32 %v7162_v44, %v1257_v13  ;;  %v800_v19 = vpop.f32.mrf.mxu1  ;;  %v597_v24 = vadd.f32 %v7162_v44, %v596_v18  ;;  %v1516_v9 = vld [vmem:[#allocation2 + $0x21] sm:$0xff] }
 0x11b   : > { %v801_v25 = vadd.f32 %v7162_v44, %v800_v19  ;;  %v1076_v31 = vmax.f32 %v1028_v16, 0.0  ;;  %v1532_v15 = vpack.c.bf16 %v1517_v63, %v1516_v9  ;;  %v1651_v16 = vld [vmem:[#allocation2 + $0x22] sm:$0xff]  ;;  %v1385_v63 = vld [vmem:[#allocation2 + $0x38] sm:$0xff]  ;;  %v1384_v9 = vld [vmem:[#allocation2 + $0x30] sm:$0xff] }
 0x11c   : > { %v1306_v32 = vmax.f32 %v1258_v17, 0.0  ;;  %6117 = vmatmul.msk.bf16.gmra.mxu0 %vm1347_vm0, %v7268_v20  ;;  %6132 = vmatmul.msk.bf16.gmra.mxu1 %vm1347_vm0, %v1531_v21  ;;  %v643_v38 = vmax.f32 %v597_v24, 0.0  ;;  %v1786_v17 = vld [vmem:[#allocation2 + $0x23] sm:$0xff]  ;;  %v1667_v21 = vpack.c.bf16 %v1652_v4, %v1651_v16  ;;  %v7326_v16 = vpack.c.bf16 %v1385_v63, %v1384_v9 }
 0x11d   : > { %v1102_v37 = vmax.f32 %v872_v30, %v1076_v31  ;;  %6147 = vmatmul.msk.bf16.gmra.mxu2 %vm1347_vm0, %v1666_v26  ;;  %v847_v39 = vmax.f32 %v801_v25, 0.0  ;;  %v1802_v22 = vpack.c.bf16 %v1787_v5, %v1786_v17  ;;  %v1654_v5 = vld [vmem:[#allocation2 + $0x3a] sm:$0xff] }
 0x11e   : > { %6162 = vmatmul.msk.bf16.gmra.mxu3 %vm1347_vm0, %v1801_v27 }
 0x11f   : > { %v1332_v42 = vmax.f32 %v1102_v37, %v1306_v32  ;;  %v873_v54 = vmax.f32 %v643_v38, %v847_v39 }
 0x120   : > { %v1030_v43 = vpop.f32.mrf.mxu2  ;;  %v7301_v23 = vld [vmem:[#allocation2 + $0x4c] sm:$0xff] }
 0x121   : > { %v1260_v45 = vpop.f32.mrf.mxu3  ;;  %1359 = vst.msk [vmem:[#allocation2 + $0x58] sm:$0xff] %vm1347_vm0, %v1332_v42  ;;  %v1031_v50 = vadd.f32 %v7162_v44, %v1030_v43  ;;  %v598_v52 = vpop.f32.mrf.mxu0  ;;  %v7305_v30 = vld [vmem:[#allocation2 + $0x4a] sm:$0xff] }
 0x122   : > { %v1261_v51 = vadd.f32 %v7162_v44, %v1260_v45  ;;  %v802_v53 = vpop.f32.mrf.mxu1  ;;  %v599_v57 = vadd.f32 %v7162_v44, %v598_v52  ;;  %v1521_v9 = vld [vmem:[#allocation2 + $0x49] sm:$0xff] }
 0x123   : > { %v1077_v55 = vmax.f32 %v1031_v50, 0.0  ;;  %v803_v58 = vadd.f32 %v7162_v44, %v802_v53 }
 0x124   : > { %v1307_v56 = vmax.f32 %v1261_v51, 0.0  ;;  %v644_v2 = vmax.f32 %v599_v57, 0.0 }
 0x125   : > { %v1103_v61 = vmax.f32 %v873_v54, %v1077_v55  ;;  %v848_v3 = vmax.f32 %v803_v58, 0.0 }
 0x127   : > { %v1333_v1 = vmax.f32 %v1103_v61, %v1307_v56  ;;  %v874_v25 = vmax.f32 %v644_v2, %v848_v3 }
 0x128   : > { %v1032_v6 = vpop.f32.mrf.mxu2  ;;  %v7303_v24 = vld [vmem:[#allocation2 + $0x54] sm:$0xff] }
 0x129   : > { %v1262_v7 = vpop.f32.mrf.mxu3  ;;  %1360 = vst.msk [vmem:[#allocation2 + $0x60] sm:$0xff] %vm1347_vm0, %v1333_v1  ;;  %v1033_v10 = vadd.f32 %v7162_v44, %v1032_v6  ;;  %v601_v12 = vpop.f32.mrf.mxu0  ;;  %v7309_v32 = vld [vmem:[#allocation2 + $0x52] sm:$0xff]  ;;  %v1789_v6 = vld [vmem:[#allocation2 + $0x3b] sm:$0xff] }
 0x12a   : > { %v1263_v11 = vadd.f32 %v7162_v44, %v1262_v7  ;;  %v805_v13 = vpop.f32.mrf.mxu1  ;;  %v602_v18 = vadd.f32 %v7162_v44, %v601_v12  ;;  %v1519_v1 = vld [vmem:[#allocation2 + $0x39] sm:$0xff] }
 0x12b   : > { %v806_v19 = vadd.f32 %v7162_v44, %v805_v13  ;;  %v1078_v26 = vmax.f32 %v1033_v10, 0.0  ;;  %v1518_v10 = vld [vmem:[#allocation2 + $0x31] sm:$0xff] }
 0x12c   : > { %v1308_v27 = vmax.f32 %v1263_v11, 0.0  ;;  %6118 = vmatmul.msk.bf16.gmra.mxu0 %vm1347_vm0, %v7297_v14  ;;  %6133 = vmatmul.msk.bf16.gmra.mxu1 %vm1347_vm0, %v1532_v15  ;;  %v645_v39 = vmax.f32 %v602_v18, 0.0  ;;  %v1533_v17 = vpack.c.bf16 %v1519_v1, %v1518_v10  ;;  %v1653_v18 = vld [vmem:[#allocation2 + $0x32] sm:$0xff] }
 0x12d   : > { %v1104_v38 = vmax.f32 %v874_v25, %v1078_v26  ;;  %6148 = vmatmul.msk.bf16.gmra.mxu2 %vm1347_vm0, %v1667_v21  ;;  %v849_v42 = vmax.f32 %v806_v19, 0.0  ;;  %v1788_v19 = vld [vmem:[#allocation2 + $0x33] sm:$0xff]  ;;  %v1668_v25 = vpack.c.bf16 %v1654_v5, %v1653_v18 }
 0x12e   : > { %6163 = vmatmul.msk.bf16.gmra.mxu3 %vm1347_vm0, %v1802_v22  ;;  %v1803_v26 = vpack.c.bf16 %v1789_v6, %v1788_v19  ;;  %v1386_v19 = vld [vmem:[#allocation2 + $0x40] sm:$0xff] }
 0x12f   : > { %v1334_v43 = vmax.f32 %v1104_v38, %v1308_v27  ;;  %v875_v55 = vmax.f32 %v645_v39, %v849_v42 }
 0x130   : > { %v1035_v45 = vpop.f32.mrf.mxu2  ;;  %v7330_v27 = vld [vmem:[#allocation2 + $0x5c] sm:$0xff] }
 0x131   : > { %v1265_v50 = vpop.f32.mrf.mxu3  ;;  %1361 = vst.msk [vmem:[#allocation2 + $0x68] sm:$0xff] %vm1347_vm0, %v1334_v43  ;;  %v1036_v51 = vadd.f32 %v7162_v44, %v1035_v45  ;;  %v603_v53 = vpop.f32.mrf.mxu0  ;;  %v7334_v45 = vld [vmem:[#allocation2 + $0x5a] sm:$0xff] }
 0x132   : > { %v1266_v52 = vadd.f32 %v7162_v44, %v1265_v50  ;;  %v807_v54 = vpop.f32.mrf.mxu1  ;;  %v604_v58 = vadd.f32 %v7162_v44, %v603_v53 }
 0x133   : > { %v1079_v56 = vmax.f32 %v1036_v51, 0.0  ;;  %v808_v61 = vadd.f32 %v7162_v44, %v807_v54 }
 0x134   : > { %v1309_v57 = vmax.f32 %v1266_v52, 0.0  ;;  %v646_v3 = vmax.f32 %v604_v58, 0.0 }
 0x135   : > { %v1105_v62 = vmax.f32 %v875_v55, %v1079_v56  ;;  %v850_v4 = vmax.f32 %v808_v61, 0.0 }
 0x137   : > { %v1335_v2 = vmax.f32 %v1105_v62, %v1309_v57  ;;  %v876_v39 = vmax.f32 %v646_v3, %v850_v4 }
 0x138   : > { %v1037_v7 = vpop.f32.mrf.mxu2  ;;  %v7332_v38 = vld [vmem:[#allocation2 + $0x64] sm:$0xff] }
 0x139   : > { %v1267_v8 = vpop.f32.mrf.mxu3  ;;  %1362 = vst.msk [vmem:[#allocation2 + $0x70] sm:$0xff] %vm1347_vm0, %v1335_v2  ;;  %v1038_v11 = vadd.f32 %v7162_v44, %v1037_v7  ;;  %v606_v13 = vpop.f32.mrf.mxu0  ;;  %v7338_v51 = vld [vmem:[#allocation2 + $0x62] sm:$0xff] }
 0x13a   : > { %v1268_v12 = vadd.f32 %v7162_v44, %v1267_v8  ;;  %v810_v15 = vpop.f32.mrf.mxu1  ;;  %v607_v21 = vadd.f32 %v7162_v44, %v606_v13  ;;  %v1387_v8 = vld [vmem:[#allocation2 + $0x48] sm:$0xff] }
 0x13b   : > { %v811_v22 = vadd.f32 %v7162_v44, %v810_v15  ;;  %v1080_v42 = vmax.f32 %v1038_v11, 0.0  ;;  %v1656_v13 = vld [vmem:[#allocation2 + $0x4a] sm:$0xff] }
 0x13c   : > { %v1310_v43 = vmax.f32 %v1268_v12, 0.0  ;;  %6119 = vmatmul.msk.bf16.gmra.mxu0 %vm1347_vm0, %v7326_v16  ;;  %6134 = vmatmul.msk.bf16.gmra.mxu1 %vm1347_vm0, %v1533_v17  ;;  %v647_v54 = vmax.f32 %v607_v21, 0.0  ;;  %v1791_v15 = vld [vmem:[#allocation2 + $0x4b] sm:$0xff]  ;;  %v1520_v21 = vld [vmem:[#allocation2 + $0x41] sm:$0xff] }
 0x13d   : > { %v1106_v53 = vmax.f32 %v876_v39, %v1080_v42  ;;  %6149 = vmatmul.msk.bf16.gmra.mxu2 %vm1347_vm0, %v1668_v25  ;;  %v851_v55 = vmax.f32 %v811_v22, 0.0  ;;  %v7355_v42 = vpack.c.bf16 %v1387_v8, %v1386_v19 }
 0x13e   : > { %6164 = vmatmul.msk.bf16.gmra.mxu3 %vm1347_vm0, %v1803_v26 }
 0x13f   : > { %v1336_v56 = vmax.f32 %v1106_v53, %v1310_v43  ;;  %v877_v2 = vmax.f32 %v647_v54, %v851_v55  ;;  %v1534_v43 = vpack.c.bf16 %v1521_v9, %v1520_v21  ;;  %v1655_v53 = vld [vmem:[#allocation2 + $0x42] sm:$0xff] }
 0x140   : > { %v1040_v57 = vpop.f32.mrf.mxu2  ;;  %v1790_v54 = vld [vmem:[#allocation2 + $0x43] sm:$0xff] }
 0x141   : > { %v1270_v58 = vpop.f32.mrf.mxu3  ;;  %1363 = vst.msk [vmem:[#allocation2 + $0x78] sm:$0xff] %vm1347_vm0, %v1336_v56  ;;  %v1041_v61 = vadd.f32 %v7162_v44, %v1040_v57  ;;  %v608_v63 = vpop.f32.mrf.mxu0  ;;  %v1669_v57 = vpack.c.bf16 %v1656_v13, %v1655_v53  ;;  %v1523_v53 = vld [vmem:[#allocation2 + $0x59] sm:$0xff] }
 0x142   : > { %v1271_v62 = vadd.f32 %v7162_v44, %v1270_v58  ;;  %v812_v1 = vpop.f32.mrf.mxu1  ;;  %v609_v5 = vadd.f32 %v7162_v44, %v608_v63  ;;  %v1804_v58 = vpack.c.bf16 %v1791_v15, %v1790_v54 }
 0x143   : > { %v1081_v3 = vmax.f32 %v1041_v61, 0.0  ;;  %v813_v6 = vadd.f32 %v7162_v44, %v812_v1  ;;  %v7359_v61 = vld [vmem:[#allocation2 + $0x6c] sm:$0xff] }
 0x144   : > { %v1311_v4 = vmax.f32 %v1271_v62, 0.0  ;;  %v648_v11 = vmax.f32 %v609_v5, 0.0 }
 0x145   : > { %v1107_v7 = vmax.f32 %v877_v2, %v1081_v3  ;;  %v852_v12 = vmax.f32 %v813_v6, 0.0  ;;  %v7363_v3 = vld [vmem:[#allocation2 + $0x6a] sm:$0xff] }
 0x147   : > { %v1337_v10 = vmax.f32 %v1107_v7, %v1311_v4  ;;  %v878_v63 = vmax.f32 %v648_v11, %v852_v12 }
 0x148   : > { %v1042_v17 = vpop.f32.mrf.mxu2  ;;  %v7361_v62 = vld [vmem:[#allocation2 + $0x74] sm:$0xff] }
 0x149   : > { %v1272_v18 = vpop.f32.mrf.mxu3  ;;  %1364 = vst.msk [vmem:[#allocation2 + $0x80] sm:$0xff] %vm1347_vm0, %v1337_v10  ;;  %v1043_v22 = vadd.f32 %v7162_v44, %v1042_v17  ;;  %v611_v26 = vpop.f32.mrf.mxu0  ;;  %v7367_v5 = vld [vmem:[#allocation2 + $0x72] sm:$0xff] }
 0x14a   : > { %v1273_v25 = vadd.f32 %v7162_v44, %v1272_v18  ;;  %v815_v39 = vpop.f32.mrf.mxu1  ;;  %v612_v55 = vadd.f32 %v7162_v44, %v611_v26 }
 0x14b   : > { %v816_v56 = vadd.f32 %v7162_v44, %v815_v39  ;;  %v1082_v1 = vmax.f32 %v1043_v22, 0.0 }
 0x14c   : > { %v1312_v2 = vmax.f32 %v1273_v25, 0.0  ;;  %6120 = vmatmul.msk.bf16.gmra.mxu0 %vm1347_vm0, %v7355_v42  ;;  %6135 = vmatmul.msk.bf16.gmra.mxu1 %vm1347_vm0, %v1534_v43  ;;  %v649_v8 = vmax.f32 %v612_v55, 0.0  ;;  %v1389_v43 = vld [vmem:[#allocation2 + $0x58] sm:$0xff] }
 0x14d   : > { %v1108_v7 = vmax.f32 %v878_v63, %v1082_v1  ;;  %6150 = vmatmul.msk.bf16.gmra.mxu2 %vm1347_vm0, %v1669_v57  ;;  %v853_v9 = vmax.f32 %v816_v56, 0.0  ;;  %v1658_v57 = vld [vmem:[#allocation2 + $0x5a] sm:$0xff] }
 0x14e   : > { %6165 = vmatmul.msk.bf16.gmra.mxu3 %vm1347_vm0, %v1804_v58  ;;  %v1793_v58 = vld [vmem:[#allocation2 + $0x5b] sm:$0xff] }
 0x14f   : > { %v1338_v10 = vmax.f32 %v1108_v7, %v1312_v2  ;;  %v879_v19 = vmax.f32 %v649_v8, %v853_v9  ;;  %v1388_v2 = vld [vmem:[#allocation2 + $0x50] sm:$0xff] }
 0x150   : > { %v1045_v11 = vpop.f32.mrf.mxu2  ;;  %v1522_v7 = vld [vmem:[#allocation2 + $0x51] sm:$0xff] }
 0x151   : > { %v1275_v12 = vpop.f32.mrf.mxu3  ;;  %1365 = vst.msk [vmem:[#allocation2 + $0x88] sm:$0xff] %vm1347_vm0, %v1338_v10  ;;  %v1046_v13 = vadd.f32 %v7162_v44, %v1045_v11  ;;  %v613_v17 = vpop.f32.mrf.mxu0 }
 0x152   : > { %v1276_v15 = vadd.f32 %v7162_v44, %v1275_v12  ;;  %v817_v18 = vpop.f32.mrf.mxu1  ;;  %v614_v25 = vadd.f32 %v7162_v44, %v613_v17  ;;  %v7384_v12 = vpack.c.bf16 %v1389_v43, %v1388_v2  ;;  %v1792_v17 = vld [vmem:[#allocation2 + $0x53] sm:$0xff] }
 0x153   : > { %v1083_v21 = vmax.f32 %v1046_v13, 0.0  ;;  %v818_v26 = vadd.f32 %v7162_v44, %v817_v18  ;;  %v1535_v13 = vpack.c.bf16 %v1523_v53, %v1522_v7 }
 0x154   : > { %v1313_v22 = vmax.f32 %v1276_v15, 0.0  ;;  %v650_v55 = vmax.f32 %v614_v25, 0.0  ;;  %v1657_v15 = vld [vmem:[#allocation2 + $0x52] sm:$0xff]  ;;  %v7388_v25 = vld [vmem:[#allocation2 + $0x7c] sm:$0xff] }
 0x155   : > { %v1109_v39 = vmax.f32 %v879_v19, %v1083_v21  ;;  %v854_v56 = vmax.f32 %v818_v26, 0.0  ;;  %v1670_v21 = vpack.c.bf16 %v1658_v57, %v1657_v15 }
 0x157   : > { %v1339_v54 = vmax.f32 %v1109_v39, %v1313_v22  ;;  %v1805_v22 = vpack.c.bf16 %v1793_v58, %v1792_v17  ;;  %v880_v39 = vmax.f32 %v650_v55, %v854_v56 }
 0x158   : > { %v1047_v63 = vpop.f32.mrf.mxu2  ;;  %v7390_v26 = vld [vmem:[#allocation2 + $0x84] sm:$0xff] }
 0x159   : > { %v1277_v1 = vpop.f32.mrf.mxu3  ;;  %1366 = vst.msk [vmem:[#allocation2 + $0x90] sm:$0xff] %vm1347_vm0, %v1339_v54  ;;  %v1048_v8 = vadd.f32 %v7162_v44, %v1047_v63  ;;  %v616_v10 = vpop.f32.mrf.mxu0  ;;  %v7396_v53 = vld [vmem:[#allocation2 + $0x82] sm:$0xff] }
 0x15a   : > { %v1278_v9 = vadd.f32 %v7162_v44, %v1277_v1  ;;  %v820_v11 = vpop.f32.mrf.mxu1  ;;  %v617_v18 = vadd.f32 %v7162_v44, %v616_v10  ;;  %v7392_v1 = vld [vmem:[#allocation2 + $0x7a] sm:$0xff] }
 0x15b   : > { %v821_v19 = vadd.f32 %v7162_v44, %v820_v11  ;;  %v1084_v54 = vmax.f32 %v1048_v8, 0.0  ;;  %8461 = vst [vmem:[#allocation7_spill] sm:$0xff] %v7392_v1 }
 0x15c   : > { %v1314_v63 = vmax.f32 %v1278_v9, 0.0  ;;  %6121 = vmatmul.msk.bf16.gmra.mxu0 %vm1347_vm0, %v7384_v12  ;;  %6136 = vmatmul.msk.bf16.gmra.mxu1 %vm1347_vm0, %v1535_v13  ;;  %v651_v55 = vmax.f32 %v617_v18, 0.0 }
 0x15d   : > { %v1110_v58 = vmax.f32 %v880_v39, %v1084_v54  ;;  %6151 = vmatmul.msk.bf16.gmra.mxu2 %vm1347_vm0, %v1670_v21  ;;  %v855_v56 = vmax.f32 %v821_v19, 0.0  ;;  %v7411_v21 = vld [vmem:[%s8442_s2] ss:$0 sm:$0xff]  ;;  %v1391_v54 = vld [vmem:[#allocation2 + $0x68] sm:$0xff] }
 0x15e   : > { %6166 = vmatmul.msk.bf16.gmra.mxu3 %vm1347_vm0, %v1805_v22 }
 0x15f   : > { %v1340_v2 = vmax.f32 %v1110_v58, %v1314_v63  ;;  %v881_v15 = vmax.f32 %v651_v55, %v855_v56  ;;  %v1525_v63 = vld [vmem:[#allocation2 + $0x69] sm:$0xff] }
 0x160   : > { %v1050_v7 = vpop.f32.mrf.mxu2  ;;  %v7422_v36 = vld [vmem:[#allocation2 + $0x8a] sm:$0xff] }
 0x161   : > { %v1280_v8 = vpop.f32.mrf.mxu3  ;;  %1367 = vst.msk [vmem:[#allocation2 + $0x98] sm:$0xff] %vm1347_vm0, %v1340_v2  ;;  %v1051_v9 = vadd.f32 %v7162_v44, %v1050_v7  ;;  %v618_v11 = vpop.f32.mrf.mxu0  ;;  %v1660_v7 = vld [vmem:[#allocation2 + $0x6a] sm:$0xff] }
 0x162   : > { %v1281_v10 = vadd.f32 %v7162_v44, %v1280_v8  ;;  %v822_v13 = vpop.f32.mrf.mxu1  ;;  %v619_v18 = vadd.f32 %v7411_v21, %v618_v11  ;;  %v1795_v8 = vld [vmem:[#allocation2 + $0x6b] sm:$0xff]  ;;  %8462 = vst [vmem:[#allocation8_spill] sm:$0xff] %v7422_v36 }
 0x163   : > { %v1085_v17 = vmax.f32 %v1051_v9, 0.0  ;;  %v823_v19 = vadd.f32 %v7411_v21, %v822_v13  ;;  %v1390_v9 = vld [vmem:[#allocation2 + $0x60] sm:$0xff] }
 0x164   : > { %v1315_v39 = vmax.f32 %v1281_v10, 0.0  ;;  %v652_v2 = vmax.f32 %v619_v18, 0.0  ;;  %v1524_v10 = vld [vmem:[#allocation2 + $0x61] sm:$0xff] }
 0x165   : > { %v1111_v22 = vmax.f32 %v881_v15, %v1085_v17  ;;  %v856_v44 = vmax.f32 %v823_v19, 0.0  ;;  %v7418_v15 = vpack.c.bf16 %v1391_v54, %v1390_v9  ;;  %v1536_v17 = vpack.c.bf16 %v1525_v63, %v1524_v10  ;;  %v1794_v18 = vld [vmem:[#allocation2 + $0x63] sm:$0xff]  ;;  %v1796_v54 = vld [vmem:[#allocation2 + $0x73] sm:$0xff] }
 0x166   : > { %v1806_v37 = vpack.c.bf16 %v1795_v8, %v1794_v18  ;;  %v6791_v18 = vld [vmem:[%s8443_s3 + $0x38] sm:$0xff] }
 0x167   : > { %v1341_v58 = vmax.f32 %v1111_v22, %v1315_v39  ;;  %v1659_v39 = vld [vmem:[#allocation2 + $0x62] sm:$0xff]  ;;  %2392 = vmatpush.bf16.msra.mxu3 %v6791_v18 }
 0x168   : > { %v1052_v55 = vpop.f32.mrf.mxu2  ;;  %v1671_v52 = vpack.c.bf16 %v1660_v7, %v1659_v39  ;;  %v6790_v39 = vld [vmem:[%s8443_s3 + $0x30] sm:$0xff] }
 0x169   : > { %v1282_v56 = vpop.f32.mrf.mxu3  ;;  %1368 = vst.msk [vmem:[#allocation2 + $0xa0] sm:$0xff] %vm1347_vm0, %v1341_v58  ;;  %v1053_v57 = vadd.f32 %v7411_v21, %v1052_v55  ;;  %v621_v6 = vpop.f32.mrf.mxu0  ;;  %v7424_v58 = vld [vmem:[#allocation2 + $0x92] sm:$0xff]  ;;  %v882_v55 = vmax.f32 %v652_v2, %v856_v44  ;;  %2257 = vmatpush.bf16.msra.mxu2 %v6790_v39 }
 0x16a   : > { %v1283_v11 = vadd.f32 %v7411_v21, %v1282_v56  ;;  %v825_v13 = vpop.f32.mrf.mxu1  ;;  %v622_v19 = vadd.f32 %v7411_v21, %v621_v6  ;;  %8463 = vst [vmem:[#allocation9_spill] sm:$0xff] %v7424_v58  ;;  %v2862_v58 = vld [vmem:[#allocation2 + $0x1d] sm:$0xff] }
 0x16b   : > { %v826_v22 = vadd.f32 %v7411_v21, %v825_v13  ;;  %v1086_v49 = vmax.f32 %v1053_v57, 0.0 }
 0x16c   : > { %v1316_v56 = vmax.f32 %v1283_v11, 0.0  ;;  %6122 = vmatmul.msk.bf16.gmra.mxu0 %vm1347_vm0, %v7418_v15  ;;  %6137 = vmatmul.msk.bf16.gmra.mxu1 %vm1347_vm0, %v1536_v17  ;;  %v653_v63 = vmax.f32 %v622_v19, 0.0  ;;  %v6789_v19 = vld [vmem:[%s8443_s3 + $0x28] sm:$0xff] }
 0x16d   : > { %v1112_v6 = vmax.f32 %v882_v55, %v1086_v49  ;;  %6152 = vmatmul.msk.bf16.gmra.mxu2 %vm1347_vm0, %v1671_v52  ;;  %v857_v7 = vmax.f32 %v826_v22, 0.0  ;;  %v1393_v55 = vld [vmem:[#allocation2 + $0x78] sm:$0xff]  ;;  %2122 = vmatpush.bf16.msra.mxu1 %v6789_v19 }
 0x16e   : > { %6167 = vmatmul.msk.bf16.gmra.mxu3 %vm1347_vm0, %v1806_v37 }
 0x16f   : > { %v1342_v8 = vmax.f32 %v1112_v6, %v1316_v56  ;;  %v883_v13 = vmax.f32 %v653_v63, %v857_v7  ;;  %v1527_v7 = vld [vmem:[#allocation2 + $0x79] sm:$0xff] }
 0x170   : > { %v1055_v9 = vpop.f32.mrf.mxu2 }
 0x171   : > { %v1285_v2 = vpop.f32.mrf.mxu3  ;;  %1369 = vst.msk [vmem:[#allocation2 + $0xa8] sm:$0xff] %vm1347_vm0, %v1342_v8  ;;  %v1056_v57 = vadd.f32 %v7411_v21, %v1055_v9  ;;  %v623_v10 = vpop.f32.mrf.mxu0  ;;  %v1662_v8 = vld [vmem:[#allocation2 + $0x7a] sm:$0xff] }
 0x172   : > { %v1286_v44 = vadd.f32 %v7411_v21, %v1285_v2  ;;  %v827_v11 = vpop.f32.mrf.mxu1  ;;  %v624_v52 = vadd.f32 %v7411_v21, %v623_v10 }
 0x173   : > { %v1087_v17 = vmax.f32 %v1056_v57, 0.0  ;;  %v828_v37 = vadd.f32 %v7411_v21, %v827_v11  ;;  %v1392_v57 = vld [vmem:[#allocation2 + $0x70] sm:$0xff] }
 0x174   : > { %v1317_v49 = vmax.f32 %v1286_v44, 0.0  ;;  %v654_v6 = vmax.f32 %v624_v52, 0.0  ;;  %v1797_v44 = vld [vmem:[#allocation2 + $0x7b] sm:$0xff]  ;;  %v7450_v39 = vpack.c.bf16 %v1393_v55, %v1392_v57  ;;  %v1661_v52 = vld [vmem:[#allocation2 + $0x72] sm:$0xff] }
 0x175   : > { %v1113_v22 = vmax.f32 %v883_v13, %v1087_v17  ;;  %v858_v63 = vmax.f32 %v828_v37, 0.0  ;;  %v1807_v50 = vpack.c.bf16 %v1797_v44, %v1796_v54 }
 0x177   : > { %v1343_v56 = vmax.f32 %v1113_v22, %v1317_v49  ;;  %v1526_v49 = vld [vmem:[#allocation2 + $0x71] sm:$0xff]  ;;  %v1672_v22 = vpack.c.bf16 %v1662_v8, %v1661_v52  ;;  %v884_v43 = vmax.f32 %v654_v6, %v858_v63 }
 0x178   : > { %v1057_v9 = vpop.f32.mrf.mxu2  ;;  %v1537_v19 = vpack.c.bf16 %v1527_v7, %v1526_v49  ;;  %v6792_v7 = vld [vmem:[%s8443_s3 + $0x40] sm:$0xff] }
 0x179   : > { %v1287_v2 = vpop.f32.mrf.mxu3  ;;  %1370 = vst.msk [vmem:[#allocation2 + $0xb0] sm:$0xff] %vm1347_vm0, %v1343_v56  ;;  %v1058_v10 = vadd.f32 %v7411_v21, %v1057_v9  ;;  %v626_v13 = vpop.f32.mrf.mxu0  ;;  %2527 = vmatpush.bf16.msrb.mxu0 %v6792_v7  ;;  %v7470_v49 = vld [vmem:[%s8444_s4] ss:$0 sm:$0xff] }
 0x17a   : > { %v1288_v11 = vadd.f32 %v7411_v21, %v1287_v2  ;;  %v830_v17 = vpop.f32.mrf.mxu1  ;;  %v627_v37 = vadd.f32 %v7411_v21, %v626_v13 }
 0x17b   : > { %v831_v18 = vadd.f32 %v7411_v21, %v830_v17  ;;  %v1088_v4 = vmax.f32 %v1058_v10, 0.0 }
 0x17c   : > { %v1318_v56 = vmax.f32 %v1288_v11, 0.0  ;;  %6123 = vmatmul.msk.bf16.gmra.mxu0 %vm1347_vm0, %v7450_v39  ;;  %6138 = vmatmul.msk.bf16.gmra.mxu1 %vm1347_vm0, %v1537_v19  ;;  %v655_v8 = vmax.f32 %v627_v37, 0.0  ;;  %v1395_v19 = vld [vmem:[#allocation2 + $0x88] sm:$0xff] }
 0x17d   : > { %v1114_v55 = vmax.f32 %v884_v43, %v1088_v4  ;;  %6153 = vmatmul.msk.bf16.gmra.mxu2 %vm1347_vm0, %v1672_v22  ;;  %v859_v9 = vmax.f32 %v831_v18, 0.0  ;;  %v1529_v22 = vld [vmem:[#allocation2 + $0x89] sm:$0xff] }
 0x17e   : > { %6168 = vmatmul.msk.bf16.gmra.mxu3 %vm1347_vm0, %v1807_v50 }
 0x17f   : > { %v1344_v6 = vmax.f32 %v1114_v55, %v1318_v56  ;;  %v885_v44 = vmax.f32 %v655_v8, %v859_v9  ;;  %v1664_v56 = vld [vmem:[#allocation2 + $0x8a] sm:$0xff] }
 0x180   : > { %v1060_v63 = vpop.f32.mrf.mxu2  ;;  %v1799_v8 = vld [vmem:[#allocation2 + $0x8b] sm:$0xff] }
 0x181   : > { %v1290_v54 = vpop.f32.mrf.mxu3  ;;  %1371 = vst.msk [vmem:[#allocation2 + $0xb8] sm:$0xff] %vm1347_vm0, %v1344_v6  ;;  %v1061_v2 = vadd.f32 %v7411_v21, %v1060_v63  ;;  %v628_v43 = vpop.f32.mrf.mxu0 }
 0x182   : > { %v1291_v4 = vadd.f32 %v7411_v21, %v1290_v54  ;;  %v832_v57 = vpop.f32.mrf.mxu1  ;;  %v629_v11 = vadd.f32 %v7411_v21, %v628_v43  ;;  %v1663_v43 = vld [vmem:[#allocation2 + $0x82] sm:$0xff] }
 0x183   : > { %v1089_v50 = vmax.f32 %v1061_v2, 0.0  ;;  %v833_v13 = vadd.f32 %v7411_v21, %v832_v57  ;;  %v1394_v2 = vld [vmem:[#allocation2 + $0x80] sm:$0xff] }
 0x184   : > { %v1319_v10 = vmax.f32 %v1291_v4, 0.0  ;;  %v656_v37 = vmax.f32 %v629_v11, 0.0  ;;  %v1528_v4 = vld [vmem:[#allocation2 + $0x81] sm:$0xff] }
 0x185   : > { %v1115_v17 = vmax.f32 %v885_v44, %v1089_v50  ;;  %v860_v18 = vmax.f32 %v833_v13, 0.0  ;;  %v7476_v44 = vpack.c.bf16 %v1395_v19, %v1394_v2  ;;  %v1538_v50 = vpack.c.bf16 %v1529_v22, %v1528_v4  ;;  %v1798_v11 = vld [vmem:[#allocation2 + $0x83] sm:$0xff]  ;;  %v2188_v4 = vld [vmem:[#allocation2 + $0x17] sm:$0xff] }
 0x187   : > { %v1345_v52 = vmax.f32 %v1115_v17, %v1319_v10  ;;  %v1673_v10 = vpack.c.bf16 %v1664_v56, %v1663_v43  ;;  %v886_v13 = vmax.f32 %v656_v37, %v860_v18 }
 0x188   : > { %v1062_v55 = vpop.f32.mrf.mxu2 }
 0x189   : > { %v1292_v7 = vpop.f32.mrf.mxu3  ;;  %1372 = vst.msk [vmem:[#allocation2 + $0xc0] sm:$0xff] %vm1347_vm0, %v1345_v52  ;;  %v1063_v9 = vadd.f32 %v7411_v21, %v1062_v55  ;;  %v1449_v63 = vpop.f32.mrf.mxu0  ;;  %v1808_v52 = vpack.c.bf16 %v1799_v8, %v1798_v11 }
 0x18a   : > { %v1293_v6 = vadd.f32 %v7411_v21, %v1292_v7  ;;  %v1584_v54 = vpop.f32.mrf.mxu1  ;;  %v1494_v57 = vadd.f32 %v7470_v49, %v1449_v63  ;;  %v2053_v63 = vld [vmem:[#allocation2 + $0x16] sm:$0xff] }
 0x18b   : > { %v1090_v17 = vmax.f32 %v1063_v9, 0.0 }
 0x18c   : > { %v1320_v31 = vmax.f32 %v1293_v6, 0.0  ;;  %v1629_v34 = vadd.f32 %v1584_v54, %v1494_v57  ;;  %6124 = vmatmul.msk.bf16.gmra.mxu0 %vm1347_vm0, %v7476_v44  ;;  %6139 = vmatmul.msk.bf16.gmra.mxu1 %vm1347_vm0, %v1538_v50  ;;  %v1918_v6 = vld [vmem:[#allocation2 + $0xc] sm:$0xff]  ;;  %v1917_v50 = vld [vmem:[#allocation2 + $0x4] sm:$0xff] }
 0x18d   : > { %v1116_v21 = vmax.f32 %v886_v13, %v1090_v17  ;;  %6154 = vmatmul.msk.bf16.gmra.mxu2 %vm1347_vm0, %v1673_v10  ;;  %v2052_v10 = vld [vmem:[#allocation2 + $0xe] sm:$0xff] }
 0x18e   : > { %6169 = vmatmul.msk.bf16.gmra.mxu3 %vm1347_vm0, %v1808_v52  ;;  %v2070_v13 = vpack.c.bf16 %v2053_v63, %v2052_v10  ;;  %v2187_v17 = vld [vmem:[#allocation2 + $0xf] sm:$0xff]  ;;  %v2055_v63 = vld [vmem:[#allocation2 + $0x26] sm:$0xff]  ;;  %v2054_v10 = vld [vmem:[#allocation2 + $0x1e] sm:$0xff] }
 0x18f   : > { %v1346_v19 = vmax.f32 %v1116_v21, %v1320_v31  ;;  %v2205_v21 = vpack.c.bf16 %v2188_v4, %v2187_v17  ;;  %v2190_v4 = vld [vmem:[#allocation2 + $0x27] sm:$0xff]  ;;  %v2189_v17 = vld [vmem:[#allocation2 + $0x1f] sm:$0xff] }
 0x190   : > { %v1719_v55 = vpop.f32.mrf.mxu2 }
 0x191   : > { %v1854_v22 = vpop.f32.mrf.mxu3  ;;  %1373 = vst.msk [vmem:[#allocation2 + $0xc8] sm:$0xff] %vm1347_vm0, %v1346_v19  ;;  %v1764_v37 = vadd.f32 %v1719_v55, %v1629_v34  ;;  %v1451_v18 = vpop.f32.mrf.mxu0  ;;  %v1935_v34 = vpack.c.bf16 %v1918_v6, %v1917_v50  ;;  %v1919_v50 = vld [vmem:[#allocation2 + $0x14] sm:$0xff] }
 0x192   : > { %v1586_v56 = vpop.f32.mrf.mxu1  ;;  %v1495_v7 = vadd.f32 %v7470_v49, %v1451_v18 }
 0x193   : > { %v7485_v8 = vadd.f32 %v1854_v22, %v1764_v37 }
 0x194   : > { %v1630_v9 = vadd.f32 %v1586_v56, %v1495_v7 }
 0x198   : > { %v1721_v54 = vpop.f32.mrf.mxu2 }
 0x199   : > { %v1856_v2 = vpop.f32.mrf.mxu3  ;;  %v1765_v43 = vadd.f32 %v1721_v54, %v1630_v9  ;;  %v1454_v57 = vpop.f32.mrf.mxu0 }
 0x19a   : > { %v1589_v31 = vpop.f32.mrf.mxu1  ;;  %v1496_v11 = vadd.f32 %v7470_v49, %v1454_v57 }
 0x19b   : > { %v7488_v52 = vadd.f32 %v1856_v2, %v1765_v43 }
 0x19c   : > { %v1631_v19 = vadd.f32 %v1589_v31, %v1496_v11  ;;  %6176 = vmatmul.msk.bf16.vlgmr.msra.gmra.mxu0 %vm1347_vm0, %v1935_v34  ;;  %6191 = vmatmul.msk.bf16.vlgmr.msra.gmra.mxu1 %vm1347_vm0, %v2070_v13  ;;  %v6893_v11 = vld [vmem:[#allocation2 + $0x1c] sm:$0xff]  ;;  %v2071_v13 = vpack.c.bf16 %v2055_v63, %v2054_v10 }
 0x19d   : > { %6206 = vmatmul.msk.bf16.vlgmr.msra.gmra.mxu2 %vm1347_vm0, %v2205_v21  ;;  %v1936_v34 = vpack.c.bf16 %v6893_v11, %v1919_v50  ;;  %v6894_v11 = vld [vmem:[#allocation2 + $0x24] sm:$0xff] }
 0x19e   : > { %6221 = vmatmul.msk.bf16.vlgmr.msra.gmra.mxu3 %vm1347_vm0, %v7268_v20 }
 0x1a0   : > { %v1724_v55 = vpop.f32.mrf.mxu2 }
 0x1a1   : > { %v1859_v22 = vpop.f32.mrf.mxu3  ;;  %v1766_v37 = vadd.f32 %v1724_v55, %v1631_v19  ;;  %v1456_v18 = vpop.f32.mrf.mxu0  ;;  %v2206_v19 = vpack.c.bf16 %v2190_v4, %v2189_v17 }
 0x1a2   : > { %v1591_v56 = vpop.f32.mrf.mxu1  ;;  %v1497_v7 = vadd.f32 %v7470_v49, %v1456_v18 }
 0x1a3   : > { %v7496_v9 = vadd.f32 %v1859_v22, %v1766_v37 }
 0x1a4   : > { %v1632_v6 = vadd.f32 %v1591_v56, %v1497_v7 }
 0x1a8   : > { %v1726_v54 = vpop.f32.mrf.mxu2 }
 0x1a9   : > { %v1861_v2 = vpop.f32.mrf.mxu3  ;;  %v1767_v43 = vadd.f32 %v1726_v54, %v1632_v6  ;;  %v1459_v57 = vpop.f32.mrf.mxu0 }
 0x1aa   : > { %v1594_v31 = vpop.f32.mrf.mxu1  ;;  %v1498_v20 = vadd.f32 %v7470_v49, %v1459_v57  ;;  %v2192_v57 = vld [vmem:[#allocation2 + $0x37] sm:$0xff] }
 0x1ab   : > { %v7499_v21 = vadd.f32 %v1861_v2, %v1767_v43  ;;  %v2057_v2 = vld [vmem:[#allocation2 + $0x36] sm:$0xff] }
 0x1ac   : > { %v1633_v55 = vadd.f32 %v1594_v31, %v1498_v20  ;;  %6177 = vmatmul.msk.bf16.gmra.mxu0 %vm1347_vm0, %v1936_v34  ;;  %6192 = vmatmul.msk.bf16.gmra.mxu1 %vm1347_vm0, %v2071_v13  ;;  %v2056_v20 = vld [vmem:[#allocation2 + $0x2e] sm:$0xff] }
 0x1ad   : > { %6207 = vmatmul.msk.bf16.gmra.mxu2 %vm1347_vm0, %v2206_v19  ;;  %v6895_v34 = vld [vmem:[#allocation2 + $0x2c] sm:$0xff]  ;;  %v2072_v17 = vpack.c.bf16 %v2057_v2, %v2056_v20 }
 0x1ae   : > { %6222 = vmatmul.msk.bf16.gmra.mxu3 %vm1347_vm0, %v7297_v14  ;;  %v1937_v13 = vpack.c.bf16 %v6895_v34, %v6894_v11  ;;  %v2191_v19 = vld [vmem:[#allocation2 + $0x2f] sm:$0xff]  ;;  %v2058_v34 = vld [vmem:[#allocation2 + $0x3e] sm:$0xff] }
 0x1b0   : > { %v1729_v22 = vpop.f32.mrf.mxu2 }
 0x1b1   : > { %v1864_v37 = vpop.f32.mrf.mxu3  ;;  %v1768_v18 = vadd.f32 %v1729_v22, %v1633_v55  ;;  %v1461_v56 = vpop.f32.mrf.mxu0  ;;  %v2207_v22 = vpack.c.bf16 %v2192_v57, %v2191_v19  ;;  %v2059_v57 = vld [vmem:[#allocation2 + $0x46] sm:$0xff] }
 0x1b2   : > { %v1596_v7 = vpop.f32.mrf.mxu1  ;;  %v1499_v6 = vadd.f32 %v7470_v49, %v1461_v56  ;;  %v2073_v19 = vpack.c.bf16 %v2059_v57, %v2058_v34 }
 0x1b3   : > { %v7507_v63 = vadd.f32 %v1864_v37, %v1768_v18 }
 0x1b4   : > { %v1634_v54 = vadd.f32 %v1596_v7, %v1499_v6 }
 0x1b8   : > { %v1731_v4 = vpop.f32.mrf.mxu2 }
 0x1b9   : > { %v1866_v43 = vpop.f32.mrf.mxu3  ;;  %v1769_v31 = vadd.f32 %v1731_v4, %v1634_v54  ;;  %v1464_v50 = vpop.f32.mrf.mxu0 }
 0x1ba   : > { %v1599_v10 = vpop.f32.mrf.mxu1  ;;  %v1500_v14 = vadd.f32 %v7470_v49, %v1464_v50 }
 0x1bb   : > { %v7510_v55 = vadd.f32 %v1866_v43, %v1769_v31 }
 0x1bc   : > { %v1635_v37 = vadd.f32 %v1599_v10, %v1500_v14  ;;  %6178 = vmatmul.msk.bf16.gmra.mxu0 %vm1347_vm0, %v1937_v13  ;;  %6193 = vmatmul.msk.bf16.gmra.mxu1 %vm1347_vm0, %v2072_v17  ;;  %v2194_v10 = vld [vmem:[#allocation2 + $0x47] sm:$0xff]  ;;  %v6896_v13 = vld [vmem:[#allocation2 + $0x34] sm:$0xff] }
 0x1bd   : > { %6208 = vmatmul.msk.bf16.gmra.mxu2 %vm1347_vm0, %v2207_v22  ;;  %v1938_v17 = vpack.c.bf16 %v7272_v28, %v6896_v13  ;;  %v2193_v22 = vld [vmem:[#allocation2 + $0x3f] sm:$0xff] }
 0x1be   : > { %6223 = vmatmul.msk.bf16.gmra.mxu3 %vm1347_vm0, %v7326_v16 }
 0x1c0   : > { %v1734_v18 = vpop.f32.mrf.mxu2 }
 0x1c1   : > { %v1869_v56 = vpop.f32.mrf.mxu3  ;;  %v1770_v7 = vadd.f32 %v1734_v18, %v1635_v37  ;;  %v1466_v6 = vpop.f32.mrf.mxu0  ;;  %v2208_v18 = vpack.c.bf16 %v2194_v10, %v2193_v22  ;;  %v2061_v10 = vld [vmem:[#allocation2 + $0x56] sm:$0xff] }
 0x1c2   : > { %v1601_v54 = vpop.f32.mrf.mxu1  ;;  %v1501_v2 = vadd.f32 %v7470_v49, %v1466_v6 }
 0x1c3   : > { %v7518_v4 = vadd.f32 %v1869_v56, %v1770_v7 }
 0x1c4   : > { %v1636_v43 = vadd.f32 %v1601_v54, %v1501_v2 }
 0x1c8   : > { %v1736_v31 = vpop.f32.mrf.mxu2 }
 0x1c9   : > { %v1871_v50 = vpop.f32.mrf.mxu3  ;;  %v1771_v20 = vadd.f32 %v1736_v31, %v1636_v43  ;;  %v1469_v14 = vpop.f32.mrf.mxu0 }
 0x1ca   : > { %v1604_v11 = vpop.f32.mrf.mxu1  ;;  %v1502_v16 = vadd.f32 %v7470_v49, %v1469_v14 }
 0x1cb   : > { %v7522_v37 = vadd.f32 %v1871_v50, %v1771_v20 }
 0x1cc   : > { %v1637_v56 = vadd.f32 %v1604_v11, %v1502_v16  ;;  %6179 = vmatmul.msk.bf16.gmra.mxu0 %vm1347_vm0, %v1938_v17  ;;  %6194 = vmatmul.msk.bf16.gmra.mxu1 %vm1347_vm0, %v2073_v19  ;;  %v2196_v11 = vld [vmem:[#allocation2 + $0x57] sm:$0xff]  ;;  %v2060_v17 = vld [vmem:[#allocation2 + $0x4e] sm:$0xff]  ;;  %v6897_v19 = vld [vmem:[#allocation2 + $0x44] sm:$0xff] }
 0x1cd   : > { %6209 = vmatmul.msk.bf16.gmra.mxu2 %vm1347_vm0, %v2208_v18  ;;  %v1939_v22 = vpack.c.bf16 %v7301_v23, %v6897_v19  ;;  %v2074_v18 = vpack.c.bf16 %v2061_v10, %v2060_v17  ;;  %v2198_v17 = vld [vmem:[#allocation2 + $0x67] sm:$0xff] }
 0x1ce   : > { %6224 = vmatmul.msk.bf16.gmra.mxu3 %vm1347_vm0, %v7355_v42 }
 0x1d0   : > { %v1739_v7 = vpop.f32.mrf.mxu2 }
 0x1d1   : > { %v1874_v6 = vpop.f32.mrf.mxu3  ;;  %v1772_v54 = vadd.f32 %v1739_v7, %v1637_v56  ;;  %v1471_v2 = vpop.f32.mrf.mxu0  ;;  %v2195_v56 = vld [vmem:[#allocation2 + $0x4f] sm:$0xff] }
 0x1d2   : > { %v1606_v43 = vpop.f32.mrf.mxu1  ;;  %v1503_v57 = vadd.f32 %v7470_v49, %v1471_v2 }
 0x1d3   : > { %v7530_v31 = vadd.f32 %v1874_v6, %v1772_v54  ;;  %v2209_v6 = vpack.c.bf16 %v2196_v11, %v2195_v56  ;;  %v1940_v56 = vpack.c.bf16 %v7330_v27, %v7303_v24 }
 0x1d4   : > { %v1638_v50 = vadd.f32 %v1606_v43, %v1503_v57 }
 0x1d8   : > { %v1741_v20 = vpop.f32.mrf.mxu2 }
 0x1d9   : > { %v1876_v14 = vpop.f32.mrf.mxu3  ;;  %v1773_v34 = vadd.f32 %v1741_v20, %v1638_v50  ;;  %v1474_v16 = vpop.f32.mrf.mxu0 }
 0x1da   : > { %v1609_v13 = vpop.f32.mrf.mxu1  ;;  %v1504_v42 = vadd.f32 %v7470_v49, %v1474_v16 }
 0x1db   : > { %v7534_v7 = vadd.f32 %v1876_v14, %v1773_v34  ;;  %v2063_v34 = vld [vmem:[#allocation2 + $0x66] sm:$0xff] }
 0x1dc   : > { %v1639_v54 = vadd.f32 %v1609_v13, %v1504_v42  ;;  %6180 = vmatmul.msk.bf16.gmra.mxu0 %vm1347_vm0, %v1939_v22  ;;  %6195 = vmatmul.msk.bf16.gmra.mxu1 %vm1347_vm0, %v2074_v18  ;;  %v2062_v18 = vld [vmem:[#allocation2 + $0x5e] sm:$0xff] }
 0x1dd   : > { %6210 = vmatmul.msk.bf16.gmra.mxu2 %vm1347_vm0, %v2209_v6  ;;  %v2075_v6 = vpack.c.bf16 %v2063_v34, %v2062_v18  ;;  %v2200_v18 = vld [vmem:[#allocation2 + $0x77] sm:$0xff] }
 0x1de   : > { %6225 = vmatmul.msk.bf16.gmra.mxu3 %vm1347_vm0, %v7384_v12 }
 0x1e0   : > { %v1744_v2 = vpop.f32.mrf.mxu2 }
 0x1e1   : > { %v1879_v43 = vpop.f32.mrf.mxu3  ;;  %v1774_v57 = vadd.f32 %v1744_v2, %v1639_v54  ;;  %v1476_v50 = vpop.f32.mrf.mxu0  ;;  %v2197_v54 = vld [vmem:[#allocation2 + $0x5f] sm:$0xff] }
 0x1e2   : > { %v1611_v20 = vpop.f32.mrf.mxu1  ;;  %v1505_v10 = vadd.f32 %v7470_v49, %v1476_v50 }
 0x1e3   : > { %v7542_v14 = vadd.f32 %v1879_v43, %v1774_v57  ;;  %v2210_v43 = vpack.c.bf16 %v2198_v17, %v2197_v54  ;;  %v2064_v54 = vld [vmem:[#allocation2 + $0x6e] sm:$0xff] }
 0x1e4   : > { %v1640_v11 = vadd.f32 %v1611_v20, %v1505_v10 }
 0x1e8   : > { %v1746_v16 = vpop.f32.mrf.mxu2 }
 0x1e9   : > { %v1881_v13 = vpop.f32.mrf.mxu3  ;;  %v1775_v42 = vadd.f32 %v1746_v16, %v1640_v11  ;;  %v1479_v19 = vpop.f32.mrf.mxu0 }
 0x1ea   : > { %v1614_v22 = vpop.f32.mrf.mxu1  ;;  %v1506_v12 = vadd.f32 %v7470_v49, %v1479_v19 }
 0x1eb   : > { %v7547_v2 = vadd.f32 %v1881_v13, %v1775_v42  ;;  %v2065_v42 = vld [vmem:[#allocation2 + $0x76] sm:$0xff] }
 0x1ec   : > { %v1641_v57 = vadd.f32 %v1614_v22, %v1506_v12  ;;  %6181 = vmatmul.msk.bf16.gmra.mxu0 %vm1347_vm0, %v1940_v56  ;;  %6196 = vmatmul.msk.bf16.gmra.mxu1 %vm1347_vm0, %v2075_v6 }
 0x1ed   : > { %6211 = vmatmul.msk.bf16.gmra.mxu2 %vm1347_vm0, %v2210_v43  ;;  %v1941_v43 = vpack.c.bf16 %v7359_v61, %v7332_v38 }
 0x1ee   : > { %6226 = vmatmul.msk.bf16.gmra.mxu3 %vm1347_vm0, %v7418_v15 }
 0x1f0   : > { %v1749_v50 = vpop.f32.mrf.mxu2 }
 0x1f1   : > { %v1884_v20 = vpop.f32.mrf.mxu3  ;;  %v1776_v10 = vadd.f32 %v1749_v50, %v1641_v57  ;;  %v1481_v11 = vpop.f32.mrf.mxu0  ;;  %v2076_v57 = vpack.c.bf16 %v2065_v42, %v2064_v54  ;;  %v2199_v50 = vld [vmem:[#allocation2 + $0x6f] sm:$0xff] }
 0x1f2   : > { %v1616_v16 = vpop.f32.mrf.mxu1  ;;  %v1507_v34 = vadd.f32 %v7470_v49, %v1481_v11 }
 0x1f3   : > { %v7555_v13 = vadd.f32 %v1884_v20, %v1776_v10  ;;  %v2211_v20 = vpack.c.bf16 %v2200_v18, %v2199_v50 }
 0x1f4   : > { %v1642_v17 = vadd.f32 %v1616_v16, %v1507_v34 }
 0x1f8   : > { %v1751_v19 = vpop.f32.mrf.mxu2 }
 0x1f9   : > { %v1886_v22 = vpop.f32.mrf.mxu3  ;;  %v1777_v12 = vadd.f32 %v1751_v19, %v1642_v17  ;;  %v1484_v56 = vpop.f32.mrf.mxu0 }
 0x1fa   : > { %v1619_v6 = vpop.f32.mrf.mxu1  ;;  %v1508_v15 = vadd.f32 %v7470_v49, %v1484_v56  ;;  %v6795_v56 = vld [vmem:[%s8443_s3 + $0x58] sm:$0xff] }
 0x1fb   : > { %v7560_v47 = vadd.f32 %v1886_v22, %v1777_v12  ;;  %v6794_v12 = vld [vmem:[%s8443_s3 + $0x50] sm:$0xff]  ;;  %2932 = vmatpush.bf16.msrb.mxu3 %v6795_v56 }
 0x1fc   : > { %v1643_v10 = vadd.f32 %v1619_v6, %v1508_v15  ;;  %6182 = vmatmul.msk.bf16.gmra.mxu0 %vm1347_vm0, %v1941_v43  ;;  %6197 = vmatmul.msk.bf16.gmra.mxu1 %vm1347_vm0, %v2076_v57  ;;  %v2067_v6 = vld [vmem:[#allocation2 + $0x86] sm:$0xff] }
 0x1fd   : > { %6212 = vmatmul.msk.bf16.gmra.mxu2 %vm1347_vm0, %v2211_v20  ;;  %v2202_v43 = vld [vmem:[#allocation2 + $0x87] sm:$0xff] }
 0x1fe   : > { %6227 = vmatmul.msk.bf16.gmra.mxu3 %vm1347_vm0, %v7450_v39  ;;  %v6793_v39 = vld [vmem:[%s8443_s3 + $0x48] sm:$0xff]  ;;  %2797 = vmatpush.bf16.msrb.mxu2 %v6794_v12 }
 0x1ff   : > { %2662 = vmatpush.bf16.msrb.mxu1 %v6793_v39 }
 0x200   : > { %v1754_v11 = vpop.f32.mrf.mxu2 }
 0x201   : > { %v1889_v16 = vpop.f32.mrf.mxu3  ;;  %v1778_v34 = vadd.f32 %v1754_v11, %v1643_v10  ;;  %v1486_v17 = vpop.f32.mrf.mxu0  ;;  %v2066_v10 = vld [vmem:[#allocation2 + $0x7e] sm:$0xff] }
 0x202   : > { %v1621_v19 = vpop.f32.mrf.mxu1  ;;  %v1509_v42 = vadd.f32 %v7470_v49, %v1486_v17  ;;  %v2201_v17 = vld [vmem:[#allocation2 + $0x7f] sm:$0xff] }
 0x203   : > { %v7568_v22 = vadd.f32 %v1889_v16, %v1778_v34  ;;  %v1942_v16 = vpack.c.bf16 %v7388_v25, %v7361_v62  ;;  %v2077_v34 = vpack.c.bf16 %v2067_v6, %v2066_v10  ;;  %v2204_v10 = vld [vmem:[#allocation2 + $0x97] sm:$0xff] }
 0x204   : > { %v1644_v18 = vadd.f32 %v1621_v19, %v1509_v42  ;;  %v2212_v42 = vpack.c.bf16 %v2202_v43, %v2201_v17  ;;  %v7594_v43 = vld [vmem:[#allocation2 + $0x8c] sm:$0xff] }
 0x208   : > { %v1756_v54 = vpop.f32.mrf.mxu2 }
 0x209   : > { %v1891_v15 = vpop.f32.mrf.mxu3  ;;  %v1779_v57 = vadd.f32 %v1756_v54, %v1644_v18  ;;  %v1489_v50 = vpop.f32.mrf.mxu0 }
 0x20a   : > { %v1624_v20 = vpop.f32.mrf.mxu1  ;;  %v1510_v11 = vadd.f32 %v7470_v49, %v1489_v50  ;;  %v6796_v49 = vld [vmem:[%s8443_s3 + $0x60] sm:$0xff] }
 0x20b   : > { %v7582_v19 = vadd.f32 %v1891_v15, %v1779_v57  ;;  %3067 = vmatpush.bf16.msra.mxu0 %v6796_v49  ;;  %v2069_v57 = vld [vmem:[#allocation2 + $0x96] sm:$0xff] }
 0x20c   : > { %v1645_v12 = vadd.f32 %v1624_v20, %v1510_v11  ;;  %6183 = vmatmul.msk.bf16.gmra.mxu0 %vm1347_vm0, %v1942_v16  ;;  %6198 = vmatmul.msk.bf16.gmra.mxu1 %vm1347_vm0, %v2077_v34  ;;  %v2339_v11 = vld [vmem:[#allocation2 + $0x98] sm:$0xff]  ;;  %v2068_v34 = vld [vmem:[#allocation2 + $0x8e] sm:$0xff] }
 0x20d   : > { %6213 = vmatmul.msk.bf16.gmra.mxu2 %vm1347_vm0, %v2212_v42  ;;  %v1943_v42 = vpack.c.bf16 %v7594_v43, %v7390_v26  ;;  %v2203_v49 = vld [vmem:[#allocation2 + $0x8f] sm:$0xff] }
 0x20e   : > { %6228 = vmatmul.msk.bf16.gmra.mxu3 %vm1347_vm0, %v7476_v44 }
 0x210   : > { %v1759_v18 = vpop.f32.mrf.mxu2 }
 0x211   : > { %v1894_v56 = vpop.f32.mrf.mxu3  ;;  %v1780_v39 = vadd.f32 %v1759_v18, %v1645_v12  ;;  %v1491_v6 = vpop.f32.mrf.mxu0  ;;  %v2078_v12 = vpack.c.bf16 %v2069_v57, %v2068_v34  ;;  %v2338_v18 = vld [vmem:[#allocation2 + $0x90] sm:$0xff] }
 0x212   : > { %v1626_v54 = vpop.f32.mrf.mxu1 }
 0x213   : > { %v7592_v15 = vadd.f32 %v1894_v56, %v1780_v39  ;;  %v2213_v56 = vpack.c.bf16 %v2204_v10, %v2203_v49  ;;  %v2348_v39 = vpack.c.bf16 %v2339_v11, %v2338_v18  ;;  %v2458_v11 = vld [vmem:[#allocation2 + $0x19] sm:$0xff]  ;;  %v2863_v49 = vld [vmem:[#allocation2 + $0x25] sm:$0xff] }
 0x218   : > { %v1761_v50 = vpop.f32.mrf.mxu2 }
 0x219   : > { %v1896_v20 = vpop.f32.mrf.mxu3  ;;  %v1989_v44 = vpop.f32.mrf.mxu0 }
 0x21a   : > { %v2124_v16 = vpop.f32.mrf.mxu1  ;;  %v2034_v17 = vadd.f32 %v1989_v44, %v7485_v8 }
 0x21c   : > { %v2169_v6 = vadd.f32 %v2124_v16, %v2034_v17  ;;  %6184 = vmatmul.msk.bf16.gmra.mxu0 %vm1347_vm0, %v1943_v42  ;;  %6199 = vmatmul.msk.bf16.gmra.mxu1 %vm1347_vm0, %v2078_v12  ;;  %v2593_v16 = vld [vmem:[#allocation2 + $0x1a] sm:$0xff] }
 0x21d   : > { %6214 = vmatmul.msk.bf16.gmra.mxu2 %vm1347_vm0, %v2213_v56 }
 0x21e   : > { %6229 = vmatmul.msk.bf16.gmra.mxu3 %vm1347_vm0, %v2348_v39  ;;  %v2592_v39 = vld [vmem:[#allocation2 + $0x12] sm:$0xff] }
 0x220   : > { %v2259_v54 = vpop.f32.mrf.mxu2 }
 0x221   : > { %v2394_v50 = vpop.f32.mrf.mxu3  ;;  %v2304_v8 = vadd.f32 %v2259_v54, %v2169_v6  ;;  %v1991_v20 = vpop.f32.mrf.mxu0  ;;  %v2475_v6 = vpack.c.bf16 %v2458_v11, %v2457_v0  ;;  %v2610_v54 = vpack.c.bf16 %v2593_v16, %v2592_v39  ;;  %v2460_v11 = vld [vmem:[#allocation2 + $0x29] sm:$0xff] }
 0x222   : > { %v2126_v44 = vpop.f32.mrf.mxu1  ;;  %v2035_v57 = vadd.f32 %v1991_v20, %v7488_v52  ;;  %v2880_v52 = vpack.c.bf16 %v2863_v49, %v2862_v58 }
 0x223   : > { %v7604_v34 = vadd.f32 %v2394_v50, %v2304_v8  ;;  %v8464_v8 = vpack.c.bf16 %v7230_v60, %v7228_v59 }
 0x224   : > { %v2170_v10 = vadd.f32 %v2126_v44, %v2035_v57 }
 0x228   : > { %v2261_v17 = vpop.f32.mrf.mxu2 }
 0x229   : > { %v2396_v42 = vpop.f32.mrf.mxu3  ;;  %v2305_v12 = vadd.f32 %v2261_v17, %v2170_v10  ;;  %v1994_v18 = vpop.f32.mrf.mxu0 }
 0x22a   : > { %v2129_v56 = vpop.f32.mrf.mxu1  ;;  %v2036_v36 = vadd.f32 %v1994_v18, %v7496_v9  ;;  %v2594_v18 = vld [vmem:[#allocation2 + $0x22] sm:$0xff] }
 0x22b   : > { %v7607_v1 = vadd.f32 %v2396_v42, %v2305_v12  ;;  %v2865_v42 = vld [vmem:[#allocation2 + $0x35] sm:$0xff]  ;;  %v2459_v12 = vld [vmem:[#allocation2 + $0x21] sm:$0xff] }
 0x22c   : > { %v2171_v50 = vadd.f32 %v2129_v56, %v2036_v36  ;;  %6236 = vmatmul.msk.bf16.vlgmr.msrb.gmra.mxu0 %vm1347_vm0, %v2475_v6  ;;  %6251 = vmatmul.msk.bf16.vlgmr.msrb.gmra.mxu1 %vm1347_vm0, %v2610_v54  ;;  %v2476_v39 = vpack.c.bf16 %v2460_v11, %v2459_v12  ;;  %v6898_v6 = vld [vmem:[#allocation2 + $0x2a] sm:$0xff] }
 0x22d   : > { %6266 = vmatmul.msk.bf16.vlgmr.msrb.gmra.mxu2 %vm1347_vm0, %v8464_v8  ;;  %v2611_v54 = vpack.c.bf16 %v6898_v6, %v2594_v18 }
 0x22e   : > { %6281 = vmatmul.msk.bf16.vlgmr.msrb.gmra.mxu3 %vm1347_vm0, %v2880_v52  ;;  %v2864_v52 = vld [vmem:[#allocation2 + $0x2d] sm:$0xff] }
 0x230   : > { %v2264_v20 = vpop.f32.mrf.mxu2 }
 0x231   : > { %v2399_v9 = vpop.f32.mrf.mxu3  ;;  %v2306_v0 = vadd.f32 %v2264_v20, %v2171_v50  ;;  %v1996_v44 = vpop.f32.mrf.mxu0  ;;  %v8465_v20 = vpack.c.bf16 %v7246_v41, %v7244_v40 }
 0x232   : > { %v2131_v57 = vpop.f32.mrf.mxu1  ;;  %v2037_v10 = vadd.f32 %v1996_v44, %v7499_v21  ;;  %v2881_v21 = vpack.c.bf16 %v2865_v42, %v2864_v52 }
 0x233   : > { %v7617_v58 = vadd.f32 %v2399_v9, %v2306_v0 }
 0x234   : > { %v2172_v36 = vadd.f32 %v2131_v57, %v2037_v10 }
 0x238   : > { %v2266_v16 = vpop.f32.mrf.mxu2 }
 0x239   : > { %v2401_v17 = vpop.f32.mrf.mxu3  ;;  %v2307_v49 = vadd.f32 %v2266_v16, %v2172_v36  ;;  %v1999_v59 = vpop.f32.mrf.mxu0  ;;  %v2462_v16 = vld [vmem:[#allocation2 + $0x39] sm:$0xff] }
 0x23a   : > { %v2134_v60 = vpop.f32.mrf.mxu1  ;;  %v2038_v56 = vadd.f32 %v1999_v59, %v7507_v63 }
 0x23b   : > { %v7620_v50 = vadd.f32 %v2401_v17, %v2307_v49  ;;  %v2867_v49 = vld [vmem:[#allocation2 + $0x45] sm:$0xff] }
 0x23c   : > { %v2173_v8 = vadd.f32 %v2134_v60, %v2038_v56  ;;  %6237 = vmatmul.msk.bf16.gmra.mxu0 %vm1347_vm0, %v2476_v39  ;;  %6252 = vmatmul.msk.bf16.gmra.mxu1 %vm1347_vm0, %v2611_v54  ;;  %v2461_v60 = vld [vmem:[#allocation2 + $0x31] sm:$0xff]  ;;  %v6900_v39 = vld [vmem:[#allocation2 + $0x3a] sm:$0xff] }
 0x23d   : > { %6267 = vmatmul.msk.bf16.gmra.mxu2 %vm1347_vm0, %v8465_v20  ;;  %v2477_v18 = vpack.c.bf16 %v2462_v16, %v2461_v60  ;;  %v6899_v56 = vld [vmem:[#allocation2 + $0x32] sm:$0xff]  ;;  %v2866_v54 = vld [vmem:[#allocation2 + $0x3d] sm:$0xff] }
 0x23e   : > { %6282 = vmatmul.msk.bf16.gmra.mxu3 %vm1347_vm0, %v2881_v21  ;;  %v2612_v6 = vpack.c.bf16 %v6900_v39, %v6899_v56  ;;  %v6901_v60 = vld [vmem:[#allocation2 + $0x42] sm:$0xff]  ;;  %v2868_v56 = vld [vmem:[#allocation2 + $0x4d] sm:$0xff] }
 0x240   : > { %v2269_v63 = vpop.f32.mrf.mxu2 }
 0x241   : > { %v2404_v9 = vpop.f32.mrf.mxu3  ;;  %v2308_v0 = vadd.f32 %v2269_v63, %v2173_v8  ;;  %v2001_v44 = vpop.f32.mrf.mxu0  ;;  %v8466_v8 = vpack.c.bf16 %v7274_v29, %v7272_v28 }
 0x242   : > { %v2136_v57 = vpop.f32.mrf.mxu1  ;;  %v2039_v10 = vadd.f32 %v2001_v44, %v7510_v55  ;;  %v2882_v55 = vpack.c.bf16 %v2867_v49, %v2866_v54  ;;  %v8467_v54 = vpack.c.bf16 %v7303_v24, %v7301_v23 }
 0x243   : > { %v7630_v36 = vadd.f32 %v2404_v9, %v2308_v0 }
 0x244   : > { %v2174_v11 = vadd.f32 %v2136_v57, %v2039_v10 }
 0x248   : > { %v2271_v17 = vpop.f32.mrf.mxu2 }
 0x249   : > { %v2406_v42 = vpop.f32.mrf.mxu3  ;;  %v2309_v59 = vadd.f32 %v2271_v17, %v2174_v11  ;;  %v2004_v40 = vpop.f32.mrf.mxu0  ;;  %v2464_v11 = vld [vmem:[#allocation2 + $0x49] sm:$0xff] }
 0x24a   : > { %v2139_v41 = vpop.f32.mrf.mxu1  ;;  %v2040_v12 = vadd.f32 %v2004_v40, %v7518_v4 }
 0x24b   : > { %v7633_v52 = vadd.f32 %v2406_v42, %v2309_v59  ;;  %v2869_v42 = vld [vmem:[#allocation2 + $0x55] sm:$0xff]  ;;  %v2463_v59 = vld [vmem:[#allocation2 + $0x41] sm:$0xff] }
 0x24c   : > { %v2175_v21 = vadd.f32 %v2139_v41, %v2040_v12  ;;  %6238 = vmatmul.msk.bf16.gmra.mxu0 %vm1347_vm0, %v2477_v18  ;;  %6253 = vmatmul.msk.bf16.gmra.mxu1 %vm1347_vm0, %v2612_v6  ;;  %v2478_v41 = vpack.c.bf16 %v2464_v11, %v2463_v59  ;;  %v6902_v12 = vld [vmem:[#allocation2 + $0x4a] sm:$0xff] }
 0x24d   : > { %6268 = vmatmul.msk.bf16.gmra.mxu2 %vm1347_vm0, %v8466_v8  ;;  %v2613_v18 = vpack.c.bf16 %v6902_v12, %v6901_v60  ;;  %v2871_v11 = vld [vmem:[#allocation2 + $0x65] sm:$0xff]  ;;  %v8468_v12 = vpack.c.bf16 %v7332_v38, %v7330_v27 }
 0x24e   : > { %6283 = vmatmul.msk.bf16.gmra.mxu3 %vm1347_vm0, %v2882_v55 }
 0x250   : > { %v2274_v4 = vpop.f32.mrf.mxu2 }
 0x251   : > { %v2409_v20 = vpop.f32.mrf.mxu3  ;;  %v2310_v63 = vadd.f32 %v2274_v4, %v2175_v21  ;;  %v2006_v9 = vpop.f32.mrf.mxu0 }
 0x252   : > { %v2141_v0 = vpop.f32.mrf.mxu1  ;;  %v2041_v44 = vadd.f32 %v2006_v9, %v7522_v37  ;;  %v2883_v37 = vpack.c.bf16 %v2869_v42, %v2868_v56 }
 0x253   : > { %v7643_v57 = vadd.f32 %v2409_v20, %v2310_v63 }
 0x254   : > { %v2176_v10 = vadd.f32 %v2141_v0, %v2041_v44  ;;  %v2466_v0 = vld [vmem:[#allocation2 + $0x59] sm:$0xff] }
 0x258   : > { %v2276_v16 = vpop.f32.mrf.mxu2 }
 0x259   : > { %v2411_v17 = vpop.f32.mrf.mxu3  ;;  %v2311_v49 = vadd.f32 %v2276_v16, %v2176_v10  ;;  %v2009_v28 = vpop.f32.mrf.mxu0 }
 0x25a   : > { %v2144_v29 = vpop.f32.mrf.mxu1  ;;  %v2042_v40 = vadd.f32 %v2009_v28, %v7530_v31  ;;  %v6903_v28 = vld [vmem:[#allocation2 + $0x52] sm:$0xff] }
 0x25b   : > { %v7646_v39 = vadd.f32 %v2411_v17, %v2311_v49  ;;  %v2465_v17 = vld [vmem:[#allocation2 + $0x51] sm:$0xff] }
 0x25c   : > { %v2177_v6 = vadd.f32 %v2144_v29, %v2042_v40  ;;  %6239 = vmatmul.msk.bf16.gmra.mxu0 %vm1347_vm0, %v2478_v41  ;;  %6254 = vmatmul.msk.bf16.gmra.mxu1 %vm1347_vm0, %v2613_v18  ;;  %v2479_v49 = vpack.c.bf16 %v2466_v0, %v2465_v17  ;;  %v6904_v29 = vld [vmem:[#allocation2 + $0x5a] sm:$0xff] }
 0x25d   : > { %6269 = vmatmul.msk.bf16.gmra.mxu2 %vm1347_vm0, %v8467_v54  ;;  %v2614_v59 = vpack.c.bf16 %v6904_v29, %v6903_v28  ;;  %v2870_v40 = vld [vmem:[#allocation2 + $0x5d] sm:$0xff] }
 0x25e   : > { %6284 = vmatmul.msk.bf16.gmra.mxu3 %vm1347_vm0, %v2883_v37  ;;  %v2467_v0 = vld [vmem:[#allocation2 + $0x61] sm:$0xff] }
 0x260   : > { %v2279_v31 = vpop.f32.mrf.mxu2 }
 0x261   : > { %v2414_v55 = vpop.f32.mrf.mxu3  ;;  %v2312_v21 = vadd.f32 %v2279_v31, %v2177_v6  ;;  %v2011_v8 = vpop.f32.mrf.mxu0 }
 0x262   : > { %v2146_v4 = vpop.f32.mrf.mxu1  ;;  %v2043_v20 = vadd.f32 %v2011_v8, %v7534_v7  ;;  %v2884_v7 = vpack.c.bf16 %v2871_v11, %v2870_v40  ;;  %v6905_v11 = vld [vmem:[#allocation2 + $0x62] sm:$0xff] }
 0x263   : > { %v7656_v63 = vadd.f32 %v2414_v55, %v2312_v21  ;;  %v2468_v21 = vld [vmem:[#allocation2 + $0x69] sm:$0xff] }
 0x264   : > { %v2178_v9 = vadd.f32 %v2146_v4, %v2043_v20  ;;  %v2873_v20 = vld [vmem:[#allocation2 + $0x75] sm:$0xff] }
 0x268   : > { %v2281_v44 = vpop.f32.mrf.mxu2 }
 0x269   : > { %v2416_v10 = vpop.f32.mrf.mxu3  ;;  %v2313_v16 = vadd.f32 %v2281_v44, %v2178_v9  ;;  %v2014_v23 = vpop.f32.mrf.mxu0 }
 0x26a   : > { %v2149_v24 = vpop.f32.mrf.mxu1  ;;  %v2044_v42 = vadd.f32 %v2014_v23, %v7542_v14 }
 0x26b   : > { %v7659_v41 = vadd.f32 %v2416_v10, %v2313_v16  ;;  %v2480_v10 = vpack.c.bf16 %v2468_v21, %v2467_v0  ;;  %v6906_v16 = vld [vmem:[#allocation2 + $0x6a] sm:$0xff]  ;;  %v8470_v0 = vpack.c.bf16 %v7390_v26, %v7388_v25  ;;  %v6799_v25 = vld [vmem:[%s8443_s3 + $0x78] sm:$0xff] }
 0x26c   : > { %v2179_v60 = vadd.f32 %v2149_v24, %v2044_v42  ;;  %6240 = vmatmul.msk.bf16.gmra.mxu0 %vm1347_vm0, %v2479_v49  ;;  %6255 = vmatmul.msk.bf16.gmra.mxu1 %vm1347_vm0, %v2614_v59  ;;  %v2615_v23 = vpack.c.bf16 %v6906_v16, %v6905_v11  ;;  %v2872_v24 = vld [vmem:[#allocation2 + $0x6d] sm:$0xff]  ;;  %v8469_v49 = vpack.c.bf16 %v7361_v62, %v7359_v61 }
 0x26d   : > { %6270 = vmatmul.msk.bf16.gmra.mxu2 %vm1347_vm0, %v8468_v12  ;;  %v6797_v26 = vld [vmem:[%s8443_s3 + $0x68] sm:$0xff]  ;;  %3472 = vmatpush.bf16.msra.mxu3 %v6799_v25 }
 0x26e   : > { %6285 = vmatmul.msk.bf16.gmra.mxu3 %vm1347_vm0, %v2884_v7  ;;  %3202 = vmatpush.bf16.msra.mxu1 %v6797_v26  ;;  %v6911_v26 = vld [vmem:[#allocation2 + $0x92] sm:$0xff] }
 0x270   : > { %v2284_v14 = vpop.f32.mrf.mxu2 }
 0x271   : > { %v2419_v18 = vpop.f32.mrf.mxu3  ;;  %v2314_v56 = vadd.f32 %v2284_v14, %v2179_v60  ;;  %v2016_v37 = vpop.f32.mrf.mxu0  ;;  %v2470_v14 = vld [vmem:[#allocation2 + $0x79] sm:$0xff] }
 0x272   : > { %v2151_v6 = vpop.f32.mrf.mxu1  ;;  %v2045_v54 = vadd.f32 %v2016_v37, %v7547_v2  ;;  %v2885_v2 = vpack.c.bf16 %v2873_v20, %v2872_v24  ;;  %v2875_v37 = vld [vmem:[#allocation2 + $0x85] sm:$0xff] }
 0x273   : > { %v7669_v31 = vadd.f32 %v2419_v18, %v2314_v56 }
 0x274   : > { %v2180_v55 = vadd.f32 %v2151_v6, %v2045_v54  ;;  %v2469_v54 = vld [vmem:[#allocation2 + $0x71] sm:$0xff] }
 0x275   : > { %v2481_v21 = vpack.c.bf16 %v2470_v14, %v2469_v54 }
 0x278   : > { %v2286_v8 = vpop.f32.mrf.mxu2 }
 0x279   : > { %v2421_v4 = vpop.f32.mrf.mxu3  ;;  %v2315_v9 = vadd.f32 %v2286_v8, %v2180_v55  ;;  %v2019_v27 = vpop.f32.mrf.mxu0  ;;  %v6907_v8 = vld [vmem:[#allocation2 + $0x72] sm:$0xff] }
 0x27a   : > { %v2154_v38 = vpop.f32.mrf.mxu1  ;;  %v2046_v44 = vadd.f32 %v2019_v27, %v7555_v13 }
 0x27b   : > { %v7672_v17 = vadd.f32 %v2421_v4, %v2315_v9  ;;  %v6908_v4 = vld [vmem:[#allocation2 + $0x7a] sm:$0xff] }
 0x27c   : > { %v2181_v42 = vadd.f32 %v2154_v38, %v2046_v44  ;;  %6241 = vmatmul.msk.bf16.gmra.mxu0 %vm1347_vm0, %v2480_v10  ;;  %6256 = vmatmul.msk.bf16.gmra.mxu1 %vm1347_vm0, %v2615_v23  ;;  %v2616_v20 = vpack.c.bf16 %v6908_v4, %v6907_v8  ;;  %v2874_v9 = vld [vmem:[#allocation2 + $0x7d] sm:$0xff] }
 0x27d   : > { %6271 = vmatmul.msk.bf16.gmra.mxu2 %vm1347_vm0, %v8469_v49  ;;  %v2472_v49 = vld [vmem:[#allocation2 + $0x89] sm:$0xff] }
 0x27e   : > { %6286 = vmatmul.msk.bf16.gmra.mxu3 %vm1347_vm0, %v2885_v2 }
 0x280   : > { %v2289_v13 = vpop.f32.mrf.mxu2 }
 0x281   : > { %v2424_v28 = vpop.f32.mrf.mxu3  ;;  %v2316_v29 = vadd.f32 %v2289_v13, %v2181_v42  ;;  %v2021_v59 = vpop.f32.mrf.mxu0  ;;  %v6798_v42 = vld [vmem:[%s8443_s3 + $0x70] sm:$0xff] }
 0x282   : > { %v2156_v40 = vpop.f32.mrf.mxu1  ;;  %v2047_v7 = vadd.f32 %v2021_v59, %v7560_v47  ;;  %v2886_v47 = vpack.c.bf16 %v2875_v37, %v2874_v9  ;;  %3337 = vmatpush.bf16.msra.mxu2 %v6798_v42  ;;  %v6910_v37 = vld [vmem:[#allocation2 + $0x8a] sm:$0xff] }
 0x283   : > { %v7682_v60 = vadd.f32 %v2424_v28, %v2316_v29  ;;  %v2742_v28 = vld [vmem:[#allocation2 + $0x94] sm:$0xff] }
 0x284   : > { %v2182_v12 = vadd.f32 %v2156_v40, %v2047_v7  ;;  %v2877_v29 = vld [vmem:[#allocation2 + $0x95] sm:$0xff]  ;;  %v2752_v54 = vpack.c.bf16 %v2742_v28, %v7594_v43 }
 0x288   : > { %v2291_v18 = vpop.f32.mrf.mxu2 }
 0x289   : > { %v2426_v56 = vpop.f32.mrf.mxu3  ;;  %v2317_v6 = vadd.f32 %v2291_v18, %v2182_v12  ;;  %v2024_v61 = vpop.f32.mrf.mxu0  ;;  %v2471_v12 = vld [vmem:[#allocation2 + $0x81] sm:$0xff] }
 0x28a   : > { %v2159_v62 = vpop.f32.mrf.mxu1  ;;  %v2048_v55 = vadd.f32 %v2024_v61, %v7568_v22  ;;  %v2482_v18 = vpack.c.bf16 %v2472_v49, %v2471_v12  ;;  %v2876_v61 = vld [vmem:[#allocation2 + $0x8d] sm:$0xff] }
 0x28b   : > { %v7685_v27 = vadd.f32 %v2426_v56, %v2317_v6  ;;  %v6909_v56 = vld [vmem:[#allocation2 + $0x82] sm:$0xff] }
 0x28c   : > { %v2183_v38 = vadd.f32 %v2159_v62, %v2048_v55  ;;  %6242 = vmatmul.msk.bf16.gmra.mxu0 %vm1347_vm0, %v2481_v21  ;;  %6257 = vmatmul.msk.bf16.gmra.mxu1 %vm1347_vm0, %v2616_v20  ;;  %v2617_v6 = vpack.c.bf16 %v6910_v37, %v6909_v56  ;;  %v2887_v55 = vpack.c.bf16 %v2877_v29, %v2876_v61  ;;  %v3133_v61 = vld [vmem:[#allocation2 + $0x27] sm:$0xff] }
 0x28d   : > { %6272 = vmatmul.msk.bf16.gmra.mxu2 %vm1347_vm0, %v8470_v0  ;;  %v7719_v0 = vld [vmem:[#allocation2 + $0x9a] sm:$0xff] }
 0x28e   : > { %6287 = vmatmul.msk.bf16.gmra.mxu3 %vm1347_vm0, %v2886_v47  ;;  %v2618_v49 = vpack.c.bf16 %v7719_v0, %v6911_v26 }
 0x290   : > { %v2294_v22 = vpop.f32.mrf.mxu2 }
 0x291   : > { %v2429_v44 = vpop.f32.mrf.mxu3  ;;  %v2318_v10 = vadd.f32 %v2294_v22, %v2183_v38  ;;  %v2026_v11 = vpop.f32.mrf.mxu0  ;;  %v2474_v38 = vld [vmem:[#allocation2 + $0x99] sm:$0xff] }
 0x292   : > { %v2161_v16 = vpop.f32.mrf.mxu1  ;;  %v2049_v23 = vadd.f32 %v2026_v11, %v7582_v19  ;;  %v2879_v11 = vld [vmem:[#allocation2 + $0xa5] sm:$0xff] }
 0x293   : > { %v7695_v24 = vadd.f32 %v2429_v44, %v2318_v10  ;;  %v2744_v10 = vld [vmem:[#allocation2 + $0xa4] sm:$0xff] }
 0x294   : > { %v2184_v2 = vadd.f32 %v2161_v16, %v2049_v23 }
 0x298   : > { %v2296_v19 = vpop.f32.mrf.mxu2 }
 0x299   : > { %v2431_v13 = vpop.f32.mrf.mxu3  ;;  %v2319_v59 = vadd.f32 %v2296_v19, %v2184_v2  ;;  %v2029_v40 = vpop.f32.mrf.mxu0  ;;  %v2473_v2 = vld [vmem:[#allocation2 + $0x91] sm:$0xff]  ;;  %v2743_v19 = vld [vmem:[#allocation2 + $0x9c] sm:$0xff] }
 0x29a   : > { %v2164_v7 = vpop.f32.mrf.mxu1  ;;  %v2050_v14 = vadd.f32 %v2029_v40, %v7592_v15  ;;  %v6800_v15 = vld [vmem:[%s8443_s3 + $0x80] sm:$0xff]  ;;  %v2483_v25 = vpack.c.bf16 %v2474_v38, %v2473_v2  ;;  %v2753_v28 = vpack.c.bf16 %v2744_v10, %v2743_v19 }
 0x29b   : > { %v7707_v62 = vadd.f32 %v2431_v13, %v2319_v59  ;;  %3607 = vmatpush.bf16.msrb.mxu0 %v6800_v15  ;;  %v2878_v13 = vld [vmem:[#allocation2 + $0x9d] sm:$0xff] }
 0x29c   : > { %v2185_v21 = vadd.f32 %v2164_v7, %v2050_v14  ;;  %6243 = vmatmul.msk.bf16.gmra.mxu0 %vm1347_vm0, %v2482_v18  ;;  %6258 = vmatmul.msk.bf16.gmra.mxu1 %vm1347_vm0, %v2617_v6  ;;  %v2888_v29 = vpack.c.bf16 %v2879_v11, %v2878_v13  ;;  %v2998_v6 = vld [vmem:[#allocation2 + $0x26] sm:$0xff]  ;;  %v3000_v13 = vld [vmem:[#allocation2 + $0x36] sm:$0xff] }
 0x29d   : > { %6273 = vmatmul.msk.bf16.gmra.mxu2 %vm1347_vm0, %v2752_v54 }
 0x29e   : > { %6288 = vmatmul.msk.bf16.gmra.mxu3 %vm1347_vm0, %v2887_v55 }
 0x2a0   : > { %v2299_v8 = vpop.f32.mrf.mxu2 }
 0x2a1   : > { %v2434_v4 = vpop.f32.mrf.mxu3  ;;  %v2320_v20 = vadd.f32 %v2299_v8, %v2185_v21  ;;  %v2031_v9 = vpop.f32.mrf.mxu0  ;;  %v3268_v21 = vld [vmem:[#allocation2 + $0x28] sm:$0xff] }
 0x2a2   : > { %v2166_v43 = vpop.f32.mrf.mxu1  ;;  %v3132_v9 = vld [vmem:[#allocation2 + $0x1f] sm:$0xff] }
 0x2a3   : > { %v7717_v47 = vadd.f32 %v2434_v4, %v2320_v20  ;;  %v2997_v20 = vld [vmem:[#allocation2 + $0x1e] sm:$0xff] }
 0x2a4   : > { %v3015_v38 = vpack.c.bf16 %v2998_v6, %v2997_v20  ;;  %v3269_v6 = vld [vmem:[#allocation2 + $0x30] sm:$0xff] }
 0x2a8   : > { %v2301_v22 = vpop.f32.mrf.mxu2 }
 0x2a9   : > { %v2436_v44 = vpop.f32.mrf.mxu3  ;;  %v2529_v16 = vpop.f32.mrf.mxu0  ;;  %v3150_v22 = vpack.c.bf16 %v3133_v61, %v3132_v9 }
 0x2aa   : > { %v2664_v23 = vpop.f32.mrf.mxu1  ;;  %v2574_v42 = vadd.f32 %v2529_v16, %v7604_v34  ;;  %v3267_v44 = vld [vmem:[#allocation2 + $0x20] sm:$0xff]  ;;  %v8471_v16 = vpack.c.bf16 %v7252_v48, %v7248_v46  ;;  %v2999_v48 = vld [vmem:[#allocation2 + $0x2e] sm:$0xff] }
 0x2ac   : > { %v2709_v59 = vadd.f32 %v2664_v23, %v2574_v42  ;;  %6244 = vmatmul.msk.bf16.gmra.mxu0 %vm1347_vm0, %v2483_v25  ;;  %6259 = vmatmul.msk.bf16.gmra.mxu1 %vm1347_vm0, %v2618_v49 }
 0x2ad   : > { %6274 = vmatmul.msk.bf16.gmra.mxu2 %vm1347_vm0, %v2753_v28  ;;  %v3135_v28 = vld [vmem:[#allocation2 + $0x37] sm:$0xff] }
 0x2ae   : > { %6289 = vmatmul.msk.bf16.gmra.mxu3 %vm1347_vm0, %v2888_v29 }
 0x2b0   : > { %v2799_v40 = vpop.f32.mrf.mxu2 }
 0x2b1   : > { %v2934_v7 = vpop.f32.mrf.mxu3  ;;  %v2844_v34 = vadd.f32 %v2799_v40, %v2709_v59  ;;  %v2531_v12 = vpop.f32.mrf.mxu0  ;;  %v3270_v40 = vld [vmem:[#allocation2 + $0x38] sm:$0xff] }
 0x2b2   : > { %v2666_v14 = vpop.f32.mrf.mxu1  ;;  %v2575_v18 = vadd.f32 %v2531_v12, %v7607_v1  ;;  %v3285_v1 = vpack.c.bf16 %v3268_v21, %v3267_v44  ;;  %v3134_v12 = vld [vmem:[#allocation2 + $0x2f] sm:$0xff]  ;;  %v3286_v61 = vpack.c.bf16 %v3270_v40, %v3269_v6 }
 0x2b3   : > { %v7728_v56 = vadd.f32 %v2934_v7, %v2844_v34 }
 0x2b4   : > { %v2710_v37 = vadd.f32 %v2666_v14, %v2575_v18  ;;  %v7744_v18 = vpack.c.bf16 %v3000_v13, %v2999_v48 }
 0x2b8   : > { %v2801_v54 = vpop.f32.mrf.mxu2 }
 0x2b9   : > { %v2936_v55 = vpop.f32.mrf.mxu3  ;;  %v2845_v15 = vadd.f32 %v2801_v54, %v2710_v37  ;;  %v2534_v8 = vpop.f32.mrf.mxu0  ;;  %v3151_v37 = vpack.c.bf16 %v3135_v28, %v3134_v12  ;;  %v8473_v28 = vpack.c.bf16 %v7309_v32, %v7305_v30  ;;  %v3004_v12 = vld [vmem:[#allocation2 + $0x56] sm:$0xff]  ;;  %v3003_v32 = vld [vmem:[#allocation2 + $0x4e] sm:$0xff] }
 0x2ba   : > { %v2669_v4 = vpop.f32.mrf.mxu1  ;;  %v2576_v43 = vadd.f32 %v2534_v8, %v7617_v58 }
 0x2bb   : > { %v7731_v10 = vadd.f32 %v2936_v55, %v2845_v15  ;;  %v8472_v55 = vpack.c.bf16 %v7280_v35, %v7276_v33  ;;  %v3001_v35 = vld [vmem:[#allocation2 + $0x3e] sm:$0xff] }
 0x2bc   : > { %v2711_v11 = vadd.f32 %v2669_v4, %v2576_v43  ;;  %6296 = vmatmul.msk.bf16.vlgmr.msra.gmra.mxu0 %vm1347_vm0, %v3015_v38  ;;  %6311 = vmatmul.msk.bf16.vlgmr.msra.gmra.mxu1 %vm1347_vm0, %v3150_v22  ;;  %v3002_v38 = vld [vmem:[#allocation2 + $0x46] sm:$0xff] }
 0x2bd   : > { %6326 = vmatmul.msk.bf16.vlgmr.msra.gmra.mxu2 %vm1347_vm0, %v3285_v1  ;;  %v3137_v22 = vld [vmem:[#allocation2 + $0x47] sm:$0xff] }
 0x2be   : > { %6341 = vmatmul.msk.bf16.vlgmr.msra.gmra.mxu3 %vm1347_vm0, %v8471_v16 }
 0x2c0   : > { %v2804_v23 = vpop.f32.mrf.mxu2 }
 0x2c1   : > { %v2939_v58 = vpop.f32.mrf.mxu3  ;;  %v2846_v2 = vadd.f32 %v2804_v23, %v2711_v11  ;;  %v2536_v42 = vpop.f32.mrf.mxu0  ;;  %v3272_v11 = vld [vmem:[#allocation2 + $0x48] sm:$0xff] }
 0x2c2   : > { %v2671_v25 = vpop.f32.mrf.mxu1  ;;  %v2577_v26 = vadd.f32 %v2536_v42, %v7620_v50  ;;  %v7760_v42 = vpack.c.bf16 %v3002_v38, %v3001_v35  ;;  %v8474_v38 = vpack.c.bf16 %v7338_v51, %v7334_v45  ;;  %v3006_v35 = vld [vmem:[#allocation2 + $0x66] sm:$0xff]  ;;  %v3005_v51 = vld [vmem:[#allocation2 + $0x5e] sm:$0xff] }
 0x2c3   : > { %v7741_v49 = vadd.f32 %v2939_v58, %v2846_v2  ;;  %v3136_v58 = vld [vmem:[#allocation2 + $0x3f] sm:$0xff] }
 0x2c4   : > { %v2712_v19 = vadd.f32 %v2671_v25, %v2577_v26  ;;  %v3152_v25 = vpack.c.bf16 %v3137_v22, %v3136_v58  ;;  %v3271_v26 = vld [vmem:[#allocation2 + $0x40] sm:$0xff] }
 0x2c5   : > { %v3141_v58 = vld [vmem:[#allocation2 + $0x67] sm:$0xff] }
 0x2c8   : > { %v2806_v29 = vpop.f32.mrf.mxu2 }
 0x2c9   : > { %v2941_v59 = vpop.f32.mrf.mxu3  ;;  %v2847_v7 = vadd.f32 %v2806_v29, %v2712_v19  ;;  %v2539_v34 = vpop.f32.mrf.mxu0  ;;  %v3287_v19 = vpack.c.bf16 %v3272_v11, %v3271_v26  ;;  %v3276_v26 = vld [vmem:[#allocation2 + $0x68] sm:$0xff] }
 0x2ca   : > { %v2674_v46 = vpop.f32.mrf.mxu1  ;;  %v2578_v14 = vadd.f32 %v2539_v34, %v7630_v36 }
 0x2cb   : > { %v7746_v50 = vadd.f32 %v2941_v59, %v2847_v7 }
 0x2cc   : > { %v2713_v54 = vadd.f32 %v2674_v46, %v2578_v14  ;;  %6297 = vmatmul.msk.bf16.gmra.mxu0 %vm1347_vm0, %v7744_v18  ;;  %6312 = vmatmul.msk.bf16.gmra.mxu1 %vm1347_vm0, %v3151_v37  ;;  %v3139_v14 = vld [vmem:[#allocation2 + $0x57] sm:$0xff] }
 0x2cd   : > { %6327 = vmatmul.msk.bf16.gmra.mxu2 %vm1347_vm0, %v3286_v61  ;;  %v3274_v61 = vld [vmem:[#allocation2 + $0x58] sm:$0xff] }
 0x2ce   : > { %6342 = vmatmul.msk.bf16.gmra.mxu3 %vm1347_vm0, %v8472_v55 }
 0x2d0   : > { %v2809_v36 = vpop.f32.mrf.mxu2 }
 0x2d1   : > { %v2944_v21 = vpop.f32.mrf.mxu3  ;;  %v2848_v15 = vadd.f32 %v2809_v36, %v2713_v54  ;;  %v2541_v8 = vpop.f32.mrf.mxu0  ;;  %v3138_v36 = vld [vmem:[#allocation2 + $0x4f] sm:$0xff] }
 0x2d2   : > { %v2676_v4 = vpop.f32.mrf.mxu1  ;;  %v2579_v20 = vadd.f32 %v2541_v8, %v7633_v52  ;;  %v3153_v8 = vpack.c.bf16 %v3139_v14, %v3138_v36 }
 0x2d3   : > { %v7757_v9 = vadd.f32 %v2944_v21, %v2848_v15  ;;  %v7776_v15 = vpack.c.bf16 %v3004_v12, %v3003_v32  ;;  %v3143_v32 = vld [vmem:[#allocation2 + $0x77] sm:$0xff] }
 0x2d4   : > { %v2714_v43 = vadd.f32 %v2676_v4, %v2579_v20  ;;  %v3273_v4 = vld [vmem:[#allocation2 + $0x50] sm:$0xff] }
 0x2d5   : > { %v3288_v20 = vpack.c.bf16 %v3274_v61, %v3273_v4 }
 0x2d8   : > { %v2811_v44 = vpop.f32.mrf.mxu2 }
 0x2d9   : > { %v2946_v1 = vpop.f32.mrf.mxu3  ;;  %v2849_v16 = vadd.f32 %v2811_v44, %v2714_v43  ;;  %v2544_v23 = vpop.f32.mrf.mxu0 }
 0x2da   : > { %v2679_v33 = vpop.f32.mrf.mxu1  ;;  %v2580_v2 = vadd.f32 %v2544_v23, %v7643_v57 }
 0x2db   : > { %v7762_v52 = vadd.f32 %v2946_v1, %v2849_v16 }
 0x2dc   : > { %v2715_v13 = vadd.f32 %v2679_v33, %v2580_v2  ;;  %6298 = vmatmul.msk.bf16.gmra.mxu0 %vm1347_vm0, %v7760_v42  ;;  %6313 = vmatmul.msk.bf16.gmra.mxu1 %vm1347_vm0, %v3152_v25 }
 0x2dd   : > { %6328 = vmatmul.msk.bf16.gmra.mxu2 %vm1347_vm0, %v3287_v19 }
 0x2de   : > { %6343 = vmatmul.msk.bf16.gmra.mxu3 %vm1347_vm0, %v8473_v28  ;;  %v3140_v28 = vld [vmem:[#allocation2 + $0x5f] sm:$0xff] }
 0x2e0   : > { %v2814_v57 = vpop.f32.mrf.mxu2 }
 0x2e1   : > { %v2949_v29 = vpop.f32.mrf.mxu3  ;;  %v2850_v59 = vadd.f32 %v2814_v57, %v2715_v13  ;;  %v2546_v40 = vpop.f32.mrf.mxu0 }
 0x2e2   : > { %v2681_v7 = vpop.f32.mrf.mxu1  ;;  %v2581_v34 = vadd.f32 %v2546_v40, %v7646_v39  ;;  %v3275_v40 = vld [vmem:[#allocation2 + $0x60] sm:$0xff] }
 0x2e3   : > { %v7773_v46 = vadd.f32 %v2949_v29, %v2850_v59  ;;  %v7792_v29 = vpack.c.bf16 %v3006_v35, %v3005_v51  ;;  %v3154_v59 = vpack.c.bf16 %v3141_v58, %v3140_v28  ;;  %v3145_v51 = vld [vmem:[#allocation2 + $0x87] sm:$0xff] }
 0x2e4   : > { %v2716_v48 = vadd.f32 %v2681_v7, %v2581_v34  ;;  %v3289_v7 = vpack.c.bf16 %v3276_v26, %v3275_v40 }
 0x2e8   : > { %v2816_v37 = vpop.f32.mrf.mxu2 }
 0x2e9   : > { %v2951_v6 = vpop.f32.mrf.mxu3  ;;  %v2851_v54 = vadd.f32 %v2816_v37, %v2716_v48  ;;  %v2549_v55 = vpop.f32.mrf.mxu0  ;;  %v8475_v48 = vpack.c.bf16 %v7367_v5, %v7363_v3  ;;  %v3007_v5 = vld [vmem:[#allocation2 + $0x6e] sm:$0xff] }
 0x2ea   : > { %v2684_v30 = vpop.f32.mrf.mxu1  ;;  %v2582_v21 = vadd.f32 %v2549_v55, %v7656_v63 }
 0x2eb   : > { %v7778_v39 = vadd.f32 %v2951_v6, %v2851_v54 }
 0x2ec   : > { %v2717_v43 = vadd.f32 %v2684_v30, %v2582_v21  ;;  %6299 = vmatmul.msk.bf16.gmra.mxu0 %vm1347_vm0, %v7776_v15  ;;  %6314 = vmatmul.msk.bf16.gmra.mxu1 %vm1347_vm0, %v3153_v8  ;;  %v3008_v30 = vld [vmem:[#allocation2 + $0x76] sm:$0xff] }
 0x2ed   : > { %6329 = vmatmul.msk.bf16.gmra.mxu2 %vm1347_vm0, %v3288_v20  ;;  %v3278_v8 = vld [vmem:[#allocation2 + $0x78] sm:$0xff] }
 0x2ee   : > { %6344 = vmatmul.msk.bf16.gmra.mxu3 %vm1347_vm0, %v8474_v38 }
 0x2f0   : > { %v2819_v63 = vpop.f32.mrf.mxu2 }
 0x2f1   : > { %v2954_v22 = vpop.f32.mrf.mxu3  ;;  %v2852_v44 = vadd.f32 %v2819_v63, %v2717_v43  ;;  %v2551_v1 = vpop.f32.mrf.mxu0  ;;  %v3142_v43 = vld [vmem:[#allocation2 + $0x6f] sm:$0xff]  ;;  %v7808_v63 = vpack.c.bf16 %v3008_v30, %v3007_v5 }
 0x2f2   : > { %v2686_v11 = vpop.f32.mrf.mxu1  ;;  %v2583_v16 = vadd.f32 %v2551_v1, %v7659_v41  ;;  %v8479_v30 = vld [vmem:[#allocation8_spill] sm:$0xff] }
 0x2f3   : > { %v7789_v23 = vadd.f32 %v2954_v22, %v2852_v44  ;;  %v3155_v22 = vpack.c.bf16 %v3143_v32, %v3142_v43  ;;  %v3277_v44 = vld [vmem:[#allocation2 + $0x70] sm:$0xff] }
 0x2f4   : > { %v2718_v33 = vadd.f32 %v2686_v11, %v2583_v16  ;;  %v3290_v1 = vpack.c.bf16 %v3278_v8, %v3277_v44  ;;  %v8476_v16 = vld [vmem:[#allocation7_spill] sm:$0xff]  ;;  %v6802_v43 = vld [vmem:[%s8443_s3 + $0x90] sm:$0xff] }
 0x2f5   : > { %3877 = vmatpush.bf16.msrb.mxu2 %v6802_v43  ;;  %v3012_v44 = vld [vmem:[#allocation2 + $0x96] sm:$0xff]  ;;  %v3418_v43 = vld [vmem:[#allocation2 + $0xaa] sm:$0xff] }
 0x2f8   : > { %v2821_v2 = vpop.f32.mrf.mxu2 }
 0x2f9   : > { %v2956_v25 = vpop.f32.mrf.mxu3  ;;  %v2853_v19 = vadd.f32 %v2821_v2, %v2718_v33  ;;  %v2554_v13 = vpop.f32.mrf.mxu0  ;;  %v8477_v33 = vpack.c.bf16 %v7396_v53, %v8476_v16  ;;  %v3282_v16 = vld [vmem:[#allocation2 + $0x98] sm:$0xff] }
 0x2fa   : > { %v2689_v45 = vpop.f32.mrf.mxu1  ;;  %v2584_v57 = vadd.f32 %v2554_v13, %v7669_v31 }
 0x2fb   : > { %v7794_v41 = vadd.f32 %v2956_v25, %v2853_v19 }
 0x2fc   : > { %v2719_v34 = vadd.f32 %v2689_v45, %v2584_v57  ;;  %6300 = vmatmul.msk.bf16.gmra.mxu0 %vm1347_vm0, %v7792_v29  ;;  %6315 = vmatmul.msk.bf16.gmra.mxu1 %vm1347_vm0, %v3154_v59  ;;  %v3010_v45 = vld [vmem:[#allocation2 + $0x86] sm:$0xff] }
 0x2fd   : > { %6330 = vmatmul.msk.bf16.gmra.mxu2 %vm1347_vm0, %v3289_v7  ;;  %v3280_v59 = vld [vmem:[#allocation2 + $0x88] sm:$0xff] }
 0x2fe   : > { %6345 = vmatmul.msk.bf16.gmra.mxu3 %vm1347_vm0, %v8475_v48  ;;  %v3144_v48 = vld [vmem:[#allocation2 + $0x7f] sm:$0xff] }
 0x300   : > { %v2824_v31 = vpop.f32.mrf.mxu2 }
 0x301   : > { %v2959_v12 = vpop.f32.mrf.mxu3  ;;  %v2854_v14 = vadd.f32 %v2824_v31, %v2719_v34  ;;  %v2556_v37 = vpop.f32.mrf.mxu0  ;;  %v3009_v34 = vld [vmem:[#allocation2 + $0x7e] sm:$0xff] }
 0x302   : > { %v2691_v6 = vpop.f32.mrf.mxu1  ;;  %v2585_v61 = vadd.f32 %v2556_v37, %v7672_v17  ;;  %v3279_v37 = vld [vmem:[#allocation2 + $0x80] sm:$0xff] }
 0x303   : > { %v7805_v54 = vadd.f32 %v2959_v12, %v2854_v14  ;;  %v7824_v12 = vpack.c.bf16 %v3010_v45, %v3009_v34  ;;  %v3156_v14 = vpack.c.bf16 %v3145_v51, %v3144_v48  ;;  %v3281_v51 = vld [vmem:[#allocation2 + $0x90] sm:$0xff] }
 0x304   : > { %v2720_v55 = vadd.f32 %v2691_v6, %v2585_v61  ;;  %v3291_v6 = vpack.c.bf16 %v3280_v59, %v3279_v37  ;;  %v3149_v37 = vld [vmem:[#allocation2 + $0xa7] sm:$0xff] }
 0x308   : > { %v2826_v36 = vpop.f32.mrf.mxu2 }
 0x309   : > { %v2961_v21 = vpop.f32.mrf.mxu3  ;;  %v2855_v4 = vadd.f32 %v2826_v36, %v2720_v55  ;;  %v2559_v20 = vpop.f32.mrf.mxu0  ;;  %v8478_v55 = vld [vmem:[#allocation9_spill] sm:$0xff] }
 0x30a   : > { %v2694_v3 = vpop.f32.mrf.mxu1  ;;  %v2586_v38 = vadd.f32 %v2559_v20, %v7682_v60  ;;  %v8480_v32 = vpack.c.bf16 %v8478_v55, %v8479_v30  ;;  %v3284_v55 = vld [vmem:[#allocation2 + $0xa8] sm:$0xff]  ;;  %v3419_v30 = vld [vmem:[#allocation2 + $0xb2] sm:$0xff] }
 0x30b   : > { %v7810_v17 = vadd.f32 %v2961_v21, %v2855_v4 }
 0x30c   : > { %v2721_v11 = vadd.f32 %v2694_v3, %v2586_v38  ;;  %6301 = vmatmul.msk.bf16.gmra.mxu0 %vm1347_vm0, %v7808_v63  ;;  %6316 = vmatmul.msk.bf16.gmra.mxu1 %vm1347_vm0, %v3155_v22  ;;  %v6803_v38 = vld [vmem:[%s8443_s3 + $0x98] sm:$0xff]  ;;  %v6801_v22 = vld [vmem:[%s8443_s3 + $0x88] sm:$0xff] }
 0x30d   : > { %6331 = vmatmul.msk.bf16.gmra.mxu2 %vm1347_vm0, %v3290_v1  ;;  %4012 = vmatpush.bf16.msrb.mxu3 %v6803_v38  ;;  %v3147_v1 = vld [vmem:[#allocation2 + $0x97] sm:$0xff] }
 0x30e   : > { %6346 = vmatmul.msk.bf16.gmra.mxu3 %vm1347_vm0, %v8477_v33  ;;  %3742 = vmatpush.bf16.msrb.mxu1 %v6801_v22  ;;  %v3417_v33 = vld [vmem:[#allocation2 + $0xa2] sm:$0xff]  ;;  %v3428_v22 = vpack.c.bf16 %v3419_v30, %v3418_v43 }
 0x30f   : > { %v3427_v59 = vpack.c.bf16 %v3417_v33, %v7719_v0 }
 0x310   : > { %v2829_v60 = vpop.f32.mrf.mxu2 }
 0x311   : > { %v2964_v35 = vpop.f32.mrf.mxu3  ;;  %v2856_v58 = vadd.f32 %v2829_v60, %v2721_v11  ;;  %v2561_v2 = vpop.f32.mrf.mxu0 }
 0x312   : > { %v2696_v25 = vpop.f32.mrf.mxu1  ;;  %v2587_v26 = vadd.f32 %v2561_v2, %v7685_v27  ;;  %v3011_v2 = vld [vmem:[#allocation2 + $0x8e] sm:$0xff] }
 0x313   : > { %v7821_v19 = vadd.f32 %v2964_v35, %v2856_v58 }
 0x314   : > { %v2722_v13 = vadd.f32 %v2696_v25, %v2587_v26  ;;  %v3146_v25 = vld [vmem:[#allocation2 + $0x8f] sm:$0xff] }
 0x315   : > { %v3157_v45 = vpack.c.bf16 %v3147_v1, %v3146_v25 }
 0x318   : > { %v2831_v28 = vpop.f32.mrf.mxu2 }
 0x319   : > { %v2966_v57 = vpop.f32.mrf.mxu3  ;;  %v2857_v40 = vadd.f32 %v2831_v28, %v2722_v13  ;;  %v2564_v7 = vpop.f32.mrf.mxu0  ;;  %v7849_v13 = vpack.c.bf16 %v3012_v44, %v3011_v2  ;;  %v3673_v2 = vld [vmem:[#allocation2 + $0x34] sm:$0xff] }
 0x31a   : > { %v2699_v53 = vpop.f32.mrf.mxu1  ;;  %v2588_v31 = vadd.f32 %v2564_v7, %v7695_v24 }
 0x31b   : > { %v7826_v27 = vadd.f32 %v2966_v57, %v2857_v40  ;;  %v3292_v57 = vpack.c.bf16 %v3282_v16, %v3281_v51 }
 0x31c   : > { %v2723_v61 = vadd.f32 %v2699_v53, %v2588_v31  ;;  %6302 = vmatmul.msk.bf16.gmra.mxu0 %vm1347_vm0, %v7824_v12  ;;  %6317 = vmatmul.msk.bf16.gmra.mxu1 %vm1347_vm0, %v3156_v14  ;;  %v3014_v14 = vld [vmem:[#allocation2 + $0xa6] sm:$0xff] }
 0x31d   : > { %6332 = vmatmul.msk.bf16.gmra.mxu2 %vm1347_vm0, %v3291_v6 }
 0x31e   : > { %6347 = vmatmul.msk.bf16.gmra.mxu3 %vm1347_vm0, %v8480_v32 }
 0x320   : > { %v2834_v24 = vpop.f32.mrf.mxu2 }
 0x321   : > { %v2969_v36 = vpop.f32.mrf.mxu3  ;;  %v2858_v21 = vadd.f32 %v2834_v24, %v2723_v61  ;;  %v2566_v8 = vpop.f32.mrf.mxu0 }
 0x322   : > { %v2701_v4 = vpop.f32.mrf.mxu1  ;;  %v2589_v20 = vadd.f32 %v2566_v8, %v7707_v62 }
 0x323   : > { %v7837_v3 = vadd.f32 %v2969_v36, %v2858_v21  ;;  %v3013_v36 = vld [vmem:[#allocation2 + $0x9e] sm:$0xff] }
 0x324   : > { %v2724_v5 = vadd.f32 %v2701_v4, %v2589_v20  ;;  %v3148_v21 = vld [vmem:[#allocation2 + $0x9f] sm:$0xff]  ;;  %v7865_v4 = vpack.c.bf16 %v3014_v14, %v3013_v36 }
 0x325   : > { %v3158_v20 = vpack.c.bf16 %v3149_v37, %v3148_v21  ;;  %v3540_v36 = vld [vmem:[#allocation2 + $0x43] sm:$0xff] }
 0x326   : > { %v3675_v21 = vld [vmem:[#allocation2 + $0x44] sm:$0xff] }
 0x328   : > { %v2836_v62 = vpop.f32.mrf.mxu2 }
 0x329   : > { %v2971_v11 = vpop.f32.mrf.mxu3  ;;  %v2859_v60 = vadd.f32 %v2836_v62, %v2724_v5  ;;  %v2569_v35 = vpop.f32.mrf.mxu0  ;;  %v3283_v5 = vld [vmem:[#allocation2 + $0xa0] sm:$0xff] }
 0x32a   : > { %v2704_v58 = vpop.f32.mrf.mxu1  ;;  %v2590_v26 = vadd.f32 %v2569_v35, %v7717_v47  ;;  %v6804_v47 = vld [vmem:[%s8443_s3 + $0xa0] sm:$0xff]  ;;  %v3293_v38 = vpack.c.bf16 %v3284_v55, %v3283_v5 }
 0x32b   : > { %v7851_v28 = vadd.f32 %v2971_v11, %v2859_v60  ;;  %4147 = vmatpush.bf16.msra.mxu0 %v6804_v47  ;;  %v3672_v47 = vld [vmem:[#allocation2 + $0x2c] sm:$0xff] }
 0x32c   : > { %v2725_v40 = vadd.f32 %v2704_v58, %v2590_v26  ;;  %6303 = vmatmul.msk.bf16.gmra.mxu0 %vm1347_vm0, %v7849_v13  ;;  %6318 = vmatmul.msk.bf16.gmra.mxu1 %vm1347_vm0, %v3157_v45  ;;  %v3538_v58 = vld [vmem:[#allocation2 + $0x33] sm:$0xff]  ;;  %v3810_v5 = vld [vmem:[#allocation2 + $0x45] sm:$0xff] }
 0x32d   : > { %6333 = vmatmul.msk.bf16.gmra.mxu2 %vm1347_vm0, %v3292_v57  ;;  %v3808_v45 = vld [vmem:[#allocation2 + $0x35] sm:$0xff] }
 0x32e   : > { %6348 = vmatmul.msk.bf16.gmra.mxu3 %vm1347_vm0, %v3427_v59 }
 0x330   : > { %v2839_v7 = vpop.f32.mrf.mxu2 }
 0x331   : > { %v2974_v53 = vpop.f32.mrf.mxu3  ;;  %v2860_v34 = vadd.f32 %v2839_v7, %v2725_v40  ;;  %v2571_v48 = vpop.f32.mrf.mxu0  ;;  %v3537_v40 = vld [vmem:[#allocation2 + $0x2b] sm:$0xff] }
 0x332   : > { %v2706_v0 = vpop.f32.mrf.mxu1  ;;  %v3807_v48 = vld [vmem:[#allocation2 + $0x2d] sm:$0xff] }
 0x333   : > { %v7862_v31 = vadd.f32 %v2974_v53, %v2860_v34  ;;  %v3555_v53 = vpack.c.bf16 %v3538_v58, %v3537_v40  ;;  %v3690_v34 = vpack.c.bf16 %v3673_v2, %v3672_v47 }
 0x338   : > { %v2841_v6 = vpop.f32.mrf.mxu2 }
 0x339   : > { %v2976_v61 = vpop.f32.mrf.mxu3  ;;  %v3069_v32 = vpop.f32.mrf.mxu0 }
 0x33a   : > { %v3204_v24 = vpop.f32.mrf.mxu1  ;;  %v3114_v8 = vadd.f32 %v3069_v32, %v7728_v56 }
 0x33c   : > { %v3249_v44 = vadd.f32 %v3204_v24, %v3114_v8  ;;  %6304 = vmatmul.msk.bf16.gmra.mxu0 %vm1347_vm0, %v7865_v4  ;;  %6319 = vmatmul.msk.bf16.gmra.mxu1 %vm1347_vm0, %v3158_v20 }
 0x33d   : > { %6334 = vmatmul.msk.bf16.gmra.mxu2 %vm1347_vm0, %v3293_v38 }
 0x33e   : > { %6349 = vmatmul.msk.bf16.gmra.mxu3 %vm1347_vm0, %v3428_v22 }
 0x340   : > { %v3339_v1 = vpop.f32.mrf.mxu2 }
 0x341   : > { %v3474_v62 = vpop.f32.mrf.mxu3  ;;  %v3384_v56 = vadd.f32 %v3339_v1, %v3249_v44  ;;  %v3071_v11 = vpop.f32.mrf.mxu0  ;;  %v3539_v44 = vld [vmem:[#allocation2 + $0x3b] sm:$0xff] }
 0x342   : > { %v3206_v16 = vpop.f32.mrf.mxu1  ;;  %v3115_v33 = vadd.f32 %v3071_v11, %v7731_v10  ;;  %v3825_v10 = vpack.c.bf16 %v3808_v45, %v3807_v48  ;;  %v3809_v11 = vld [vmem:[#allocation2 + $0x3d] sm:$0xff] }
 0x343   : > { %v7873_v60 = vadd.f32 %v3474_v62, %v3384_v56  ;;  %v7887_v62 = vpack.c.bf16 %v3540_v36, %v3539_v44 }
 0x344   : > { %v3250_v35 = vadd.f32 %v3206_v16, %v3115_v33  ;;  %v3826_v16 = vpack.c.bf16 %v3810_v5, %v3809_v11 }
 0x348   : > { %v3341_v25 = vpop.f32.mrf.mxu2 }
 0x349   : > { %v3476_v26 = vpop.f32.mrf.mxu3  ;;  %v3385_v51 = vadd.f32 %v3341_v25, %v3250_v35  ;;  %v3074_v57 = vpop.f32.mrf.mxu0 }
 0x34a   : > { %v3209_v59 = vpop.f32.mrf.mxu1  ;;  %v3116_v7 = vadd.f32 %v3074_v57, %v7741_v49  ;;  %v3542_v57 = vld [vmem:[#allocation2 + $0x53] sm:$0xff] }
 0x34b   : > { %v7876_v0 = vadd.f32 %v3476_v26, %v3385_v51 }
 0x34c   : > { %v3251_v14 = vadd.f32 %v3209_v59, %v3116_v7  ;;  %6356 = vmatmul.msk.bf16.vlgmr.msrb.gmra.mxu0 %vm1347_vm0, %v3555_v53  ;;  %6371 = vmatmul.msk.bf16.vlgmr.msrb.gmra.mxu1 %vm1347_vm0, %v3690_v34  ;;  %v3677_v59 = vld [vmem:[#allocation2 + $0x54] sm:$0xff] }
 0x34d   : > { %6386 = vmatmul.msk.bf16.vlgmr.msrb.gmra.mxu2 %vm1347_vm0, %v3825_v10  ;;  %v3812_v7 = vld [vmem:[#allocation2 + $0x55] sm:$0xff]  ;;  %v3541_v10 = vld [vmem:[#allocation2 + $0x4b] sm:$0xff] }
 0x34e   : > { %6401 = vmatmul.msk.bf16.vlgmr.msrb.gmra.mxu3 %vm1347_vm0, %v7744_v18  ;;  %v3674_v18 = vld [vmem:[#allocation2 + $0x3c] sm:$0xff] }
 0x34f   : > { %v3691_v56 = vpack.c.bf16 %v3675_v21, %v3674_v18  ;;  %v3814_v18 = vld [vmem:[#allocation2 + $0x65] sm:$0xff] }
 0x350   : > { %v3344_v37 = vpop.f32.mrf.mxu2 }
 0x351   : > { %v3479_v6 = vpop.f32.mrf.mxu3  ;;  %v3386_v61 = vadd.f32 %v3344_v37, %v3251_v14  ;;  %v3076_v49 = vpop.f32.mrf.mxu0  ;;  %v7901_v37 = vpack.c.bf16 %v3542_v57, %v3541_v10 }
 0x352   : > { %v3211_v55 = vpop.f32.mrf.mxu1  ;;  %v3117_v30 = vadd.f32 %v3076_v49, %v7746_v50 }
 0x353   : > { %v7884_v32 = vadd.f32 %v3479_v6, %v3386_v61  ;;  %v3811_v61 = vld [vmem:[#allocation2 + $0x4d] sm:$0xff] }
 0x354   : > { %v3252_v24 = vadd.f32 %v3211_v55, %v3117_v30  ;;  %v3827_v49 = vpack.c.bf16 %v3812_v7, %v3811_v61 }
 0x358   : > { %v3346_v8 = vpop.f32.mrf.mxu2 }
 0x359   : > { %v3481_v20 = vpop.f32.mrf.mxu3  ;;  %v3387_v43 = vadd.f32 %v3346_v8, %v3252_v24  ;;  %v3079_v38 = vpop.f32.mrf.mxu0 }
 0x35a   : > { %v3214_v22 = vpop.f32.mrf.mxu1  ;;  %v3118_v1 = vadd.f32 %v3079_v38, %v7757_v9  ;;  %v3679_v38 = vld [vmem:[#allocation2 + $0x64] sm:$0xff] }
 0x35b   : > { %v7889_v50 = vadd.f32 %v3481_v20, %v3387_v43  ;;  %v3544_v43 = vld [vmem:[#allocation2 + $0x63] sm:$0xff] }
 0x35c   : > { %v3253_v33 = vadd.f32 %v3214_v22, %v3118_v1  ;;  %6357 = vmatmul.msk.bf16.gmra.mxu0 %vm1347_vm0, %v7887_v62  ;;  %6372 = vmatmul.msk.bf16.gmra.mxu1 %vm1347_vm0, %v3691_v56 }
 0x35d   : > { %6387 = vmatmul.msk.bf16.gmra.mxu2 %vm1347_vm0, %v3826_v16  ;;  %v3543_v16 = vld [vmem:[#allocation2 + $0x5b] sm:$0xff] }
 0x35e   : > { %6402 = vmatmul.msk.bf16.gmra.mxu3 %vm1347_vm0, %v7760_v42  ;;  %v3676_v42 = vld [vmem:[#allocation2 + $0x4c] sm:$0xff] }
 0x35f   : > { %v3692_v6 = vpack.c.bf16 %v3677_v59, %v3676_v42  ;;  %v3816_v42 = vld [vmem:[#allocation2 + $0x75] sm:$0xff] }
 0x360   : > { %v3349_v35 = vpop.f32.mrf.mxu2 }
 0x361   : > { %v3484_v9 = vpop.f32.mrf.mxu3  ;;  %v3388_v58 = vadd.f32 %v3349_v35, %v3253_v33  ;;  %v3081_v2 = vpop.f32.mrf.mxu0  ;;  %v7915_v35 = vpack.c.bf16 %v3544_v43, %v3543_v16 }
 0x362   : > { %v3216_v25 = vpop.f32.mrf.mxu1  ;;  %v3119_v26 = vadd.f32 %v3081_v2, %v7762_v52 }
 0x363   : > { %v7898_v45 = vadd.f32 %v3484_v9, %v3388_v58  ;;  %v3813_v58 = vld [vmem:[#allocation2 + $0x5d] sm:$0xff] }
 0x364   : > { %v3254_v51 = vadd.f32 %v3216_v25, %v3119_v26  ;;  %v3828_v2 = vpack.c.bf16 %v3814_v18, %v3813_v58 }
 0x368   : > { %v3351_v40 = vpop.f32.mrf.mxu2 }
 0x369   : > { %v3486_v47 = vpop.f32.mrf.mxu3  ;;  %v3389_v53 = vadd.f32 %v3351_v40, %v3254_v51  ;;  %v3084_v34 = vpop.f32.mrf.mxu0 }
 0x36a   : > { %v3219_v48 = vpop.f32.mrf.mxu1  ;;  %v3120_v14 = vadd.f32 %v3084_v34, %v7773_v46  ;;  %v3681_v34 = vld [vmem:[#allocation2 + $0x74] sm:$0xff] }
 0x36b   : > { %v7903_v52 = vadd.f32 %v3486_v47, %v3389_v53  ;;  %v3546_v53 = vld [vmem:[#allocation2 + $0x73] sm:$0xff] }
 0x36c   : > { %v3255_v55 = vadd.f32 %v3219_v48, %v3120_v14  ;;  %6358 = vmatmul.msk.bf16.gmra.mxu0 %vm1347_vm0, %v7901_v37  ;;  %6373 = vmatmul.msk.bf16.gmra.mxu1 %vm1347_vm0, %v3692_v6 }
 0x36d   : > { %6388 = vmatmul.msk.bf16.gmra.mxu2 %vm1347_vm0, %v3827_v49  ;;  %v3545_v49 = vld [vmem:[#allocation2 + $0x6b] sm:$0xff] }
 0x36e   : > { %6403 = vmatmul.msk.bf16.gmra.mxu3 %vm1347_vm0, %v7776_v15  ;;  %v3678_v15 = vld [vmem:[#allocation2 + $0x5c] sm:$0xff] }
 0x36f   : > { %v3693_v9 = vpack.c.bf16 %v3679_v38, %v3678_v15  ;;  %v3818_v15 = vld [vmem:[#allocation2 + $0x85] sm:$0xff] }
 0x370   : > { %v3354_v30 = vpop.f32.mrf.mxu2 }
 0x371   : > { %v3489_v46 = vpop.f32.mrf.mxu3  ;;  %v3390_v24 = vadd.f32 %v3354_v30, %v3255_v55  ;;  %v3086_v36 = vpop.f32.mrf.mxu0  ;;  %v7929_v30 = vpack.c.bf16 %v3546_v53, %v3545_v49 }
 0x372   : > { %v3221_v21 = vpop.f32.mrf.mxu1  ;;  %v3121_v8 = vadd.f32 %v3086_v36, %v7778_v39 }
 0x373   : > { %v7912_v20 = vadd.f32 %v3489_v46, %v3390_v24  ;;  %v3815_v24 = vld [vmem:[#allocation2 + $0x6d] sm:$0xff] }
 0x374   : > { %v3256_v5 = vadd.f32 %v3221_v21, %v3121_v8  ;;  %v3829_v36 = vpack.c.bf16 %v3816_v42, %v3815_v24 }
 0x378   : > { %v3356_v22 = vpop.f32.mrf.mxu2 }
 0x379   : > { %v3491_v44 = vpop.f32.mrf.mxu3  ;;  %v3391_v1 = vadd.f32 %v3356_v22, %v3256_v5  ;;  %v3089_v56 = vpop.f32.mrf.mxu0 }
 0x37a   : > { %v3224_v11 = vpop.f32.mrf.mxu1  ;;  %v3122_v33 = vadd.f32 %v3089_v56, %v7789_v23  ;;  %v3683_v56 = vld [vmem:[#allocation2 + $0x84] sm:$0xff] }
 0x37b   : > { %v7917_v39 = vadd.f32 %v3491_v44, %v3391_v1  ;;  %v3548_v1 = vld [vmem:[#allocation2 + $0x83] sm:$0xff] }
 0x37c   : > { %v3257_v25 = vadd.f32 %v3224_v11, %v3122_v33  ;;  %6359 = vmatmul.msk.bf16.gmra.mxu0 %vm1347_vm0, %v7915_v35  ;;  %6374 = vmatmul.msk.bf16.gmra.mxu1 %vm1347_vm0, %v3693_v9 }
 0x37d   : > { %6389 = vmatmul.msk.bf16.gmra.mxu2 %vm1347_vm0, %v3828_v2  ;;  %v3547_v2 = vld [vmem:[#allocation2 + $0x7b] sm:$0xff] }
 0x37e   : > { %6404 = vmatmul.msk.bf16.gmra.mxu3 %vm1347_vm0, %v7792_v29  ;;  %v3680_v29 = vld [vmem:[#allocation2 + $0x6c] sm:$0xff] }
 0x37f   : > { %v3694_v46 = vpack.c.bf16 %v3681_v34, %v3680_v29  ;;  %v3820_v29 = vld [vmem:[#allocation2 + $0x95] sm:$0xff] }
 0x380   : > { %v3359_v26 = vpop.f32.mrf.mxu2 }
 0x381   : > { %v3494_v23 = vpop.f32.mrf.mxu3  ;;  %v3392_v51 = vadd.f32 %v3359_v26, %v3257_v25  ;;  %v3091_v57 = vpop.f32.mrf.mxu0  ;;  %v7943_v26 = vpack.c.bf16 %v3548_v1, %v3547_v2  ;;  %v3687_v2 = vld [vmem:[#allocation2 + $0xa4] sm:$0xff] }
 0x382   : > { %v3226_v59 = vpop.f32.mrf.mxu1  ;;  %v3123_v40 = vadd.f32 %v3091_v57, %v7794_v41 }
 0x383   : > { %v7926_v47 = vadd.f32 %v3494_v23, %v3392_v51  ;;  %v3817_v51 = vld [vmem:[#allocation2 + $0x7d] sm:$0xff] }
 0x384   : > { %v3258_v7 = vadd.f32 %v3226_v59, %v3123_v40  ;;  %v3830_v57 = vpack.c.bf16 %v3818_v15, %v3817_v51 }
 0x388   : > { %v3361_v48 = vpop.f32.mrf.mxu2 }
 0x389   : > { %v3496_v10 = vpop.f32.mrf.mxu3  ;;  %v3393_v14 = vadd.f32 %v3361_v48, %v3258_v7  ;;  %v3094_v6 = vpop.f32.mrf.mxu0 }
 0x38a   : > { %v3229_v61 = vpop.f32.mrf.mxu1  ;;  %v3124_v55 = vadd.f32 %v3094_v6, %v7805_v54  ;;  %v3685_v6 = vld [vmem:[#allocation2 + $0x94] sm:$0xff] }
 0x38b   : > { %v7931_v41 = vadd.f32 %v3496_v10, %v3393_v14  ;;  %v3550_v14 = vld [vmem:[#allocation2 + $0x93] sm:$0xff] }
 0x38c   : > { %v3259_v21 = vadd.f32 %v3229_v61, %v3124_v55  ;;  %6360 = vmatmul.msk.bf16.gmra.mxu0 %vm1347_vm0, %v7929_v30  ;;  %6375 = vmatmul.msk.bf16.gmra.mxu1 %vm1347_vm0, %v3694_v46 }
 0x38d   : > { %6390 = vmatmul.msk.bf16.gmra.mxu2 %vm1347_vm0, %v3829_v36  ;;  %v3549_v36 = vld [vmem:[#allocation2 + $0x8b] sm:$0xff] }
 0x38e   : > { %6405 = vmatmul.msk.bf16.gmra.mxu3 %vm1347_vm0, %v7808_v63  ;;  %v3682_v63 = vld [vmem:[#allocation2 + $0x7c] sm:$0xff] }
 0x38f   : > { %v3695_v23 = vpack.c.bf16 %v3683_v56, %v3682_v63 }
 0x390   : > { %v3364_v8 = vpop.f32.mrf.mxu2 }
 0x391   : > { %v3499_v54 = vpop.f32.mrf.mxu3  ;;  %v3394_v5 = vadd.f32 %v3364_v8, %v3259_v21  ;;  %v3096_v43 = vpop.f32.mrf.mxu0  ;;  %v7957_v8 = vpack.c.bf16 %v3550_v14, %v3549_v36  ;;  %v3689_v36 = vld [vmem:[#allocation2 + $0xb4] sm:$0xff] }
 0x392   : > { %v3231_v38 = vpop.f32.mrf.mxu1  ;;  %v3125_v22 = vadd.f32 %v3096_v43, %v7810_v17 }
 0x393   : > { %v7940_v44 = vadd.f32 %v3499_v54, %v3394_v5 }
 0x394   : > { %v3260_v18 = vadd.f32 %v3231_v38, %v3125_v22 }
 0x398   : > { %v3366_v11 = vpop.f32.mrf.mxu2 }
 0x399   : > { %v3501_v16 = vpop.f32.mrf.mxu3  ;;  %v3395_v33 = vadd.f32 %v3366_v11, %v3260_v18  ;;  %v3099_v9 = vpop.f32.mrf.mxu0 }
 0x39a   : > { %v3234_v58 = vpop.f32.mrf.mxu1  ;;  %v3126_v25 = vadd.f32 %v3099_v9, %v7821_v19  ;;  %v6807_v9 = vld [vmem:[%s8443_s3 + $0xb8] sm:$0xff] }
 0x39b   : > { %v7945_v17 = vadd.f32 %v3501_v16, %v3395_v33  ;;  %v6806_v33 = vld [vmem:[%s8443_s3 + $0xb0] sm:$0xff]  ;;  %4552 = vmatpush.bf16.msra.mxu3 %v6807_v9 }
 0x39c   : > { %v3261_v59 = vadd.f32 %v3234_v58, %v3126_v25  ;;  %6361 = vmatmul.msk.bf16.gmra.mxu0 %vm1347_vm0, %v7943_v26  ;;  %6376 = vmatmul.msk.bf16.gmra.mxu1 %vm1347_vm0, %v3695_v23  ;;  %v3552_v58 = vld [vmem:[#allocation2 + $0xa3] sm:$0xff] }
 0x39d   : > { %6391 = vmatmul.msk.bf16.gmra.mxu2 %vm1347_vm0, %v3830_v57  ;;  %v3822_v25 = vld [vmem:[#allocation2 + $0xa5] sm:$0xff] }
 0x39e   : > { %6406 = vmatmul.msk.bf16.gmra.mxu3 %vm1347_vm0, %v7824_v12  ;;  %v3684_v12 = vld [vmem:[#allocation2 + $0x8c] sm:$0xff]  ;;  %4417 = vmatpush.bf16.msra.mxu2 %v6806_v33 }
 0x39f   : > { %v7959_v54 = vpack.c.bf16 %v3685_v6, %v3684_v12 }
 0x3a0   : > { %v3369_v40 = vpop.f32.mrf.mxu2 }
 0x3a1   : > { %v3504_v19 = vpop.f32.mrf.mxu3  ;;  %v3396_v7 = vadd.f32 %v3369_v40, %v3261_v59  ;;  %v3101_v53 = vpop.f32.mrf.mxu0  ;;  %v3551_v59 = vld [vmem:[#allocation2 + $0x9b] sm:$0xff] }
 0x3a2   : > { %v3236_v34 = vpop.f32.mrf.mxu1  ;;  %v3127_v48 = vadd.f32 %v3101_v53, %v7826_v27  ;;  %v3819_v27 = vld [vmem:[#allocation2 + $0x8d] sm:$0xff]  ;;  %v3686_v40 = vld [vmem:[#allocation2 + $0x9c] sm:$0xff] }
 0x3a3   : > { %v7954_v10 = vadd.f32 %v3504_v19, %v3396_v7  ;;  %v3831_v43 = vpack.c.bf16 %v3820_v29, %v3819_v27  ;;  %v7983_v7 = vpack.c.bf16 %v3552_v58, %v3551_v59  ;;  %v7985_v53 = vpack.c.bf16 %v3687_v2, %v3686_v40  ;;  %v3824_v27 = vld [vmem:[#allocation2 + $0xb5] sm:$0xff]  ;;  %v4213_v59 = vld [vmem:[#allocation2 + $0x41] sm:$0xff] }
 0x3a4   : > { %v3262_v42 = vadd.f32 %v3236_v34, %v3127_v48  ;;  %v3821_v34 = vld [vmem:[#allocation2 + $0x9d] sm:$0xff] }
 0x3a8   : > { %v3371_v61 = vpop.f32.mrf.mxu2 }
 0x3a9   : > { %v3506_v49 = vpop.f32.mrf.mxu3  ;;  %v3397_v55 = vadd.f32 %v3371_v61, %v3262_v42  ;;  %v3104_v46 = vpop.f32.mrf.mxu0  ;;  %v3832_v42 = vpack.c.bf16 %v3822_v25, %v3821_v34  ;;  %v4348_v34 = vld [vmem:[#allocation2 + $0x42] sm:$0xff] }
 0x3aa   : > { %v3239_v24 = vpop.f32.mrf.mxu1  ;;  %v3128_v21 = vadd.f32 %v3104_v46, %v7837_v3 }
 0x3ab   : > { %v7961_v5 = vadd.f32 %v3506_v49, %v3397_v55 }
 0x3ac   : > { %v3263_v38 = vadd.f32 %v3239_v24, %v3128_v21  ;;  %6362 = vmatmul.msk.bf16.gmra.mxu0 %vm1347_vm0, %v7957_v8  ;;  %6377 = vmatmul.msk.bf16.gmra.mxu1 %vm1347_vm0, %v7959_v54  ;;  %v3554_v24 = vld [vmem:[#allocation2 + $0xb3] sm:$0xff] }
 0x3ad   : > { %6392 = vmatmul.msk.bf16.gmra.mxu2 %vm1347_vm0, %v3831_v43  ;;  %v3959_v43 = vld [vmem:[#allocation2 + $0xb6] sm:$0xff] }
 0x3ae   : > { %6407 = vmatmul.msk.bf16.gmra.mxu3 %vm1347_vm0, %v7849_v13  ;;  %v6805_v13 = vld [vmem:[%s8443_s3 + $0xa8] sm:$0xff] }
 0x3af   : > { %4282 = vmatpush.bf16.msra.mxu1 %v6805_v13 }
 0x3b0   : > { %v3374_v3 = vpop.f32.mrf.mxu2 }
 0x3b1   : > { %v3509_v22 = vpop.f32.mrf.mxu3  ;;  %v3398_v18 = vadd.f32 %v3374_v3, %v3263_v38  ;;  %v3106_v1 = vpop.f32.mrf.mxu0  ;;  %v3553_v3 = vld [vmem:[#allocation2 + $0xab] sm:$0xff] }
 0x3b2   : > { %v3241_v56 = vpop.f32.mrf.mxu1  ;;  %v3129_v11 = vadd.f32 %v3106_v1, %v7851_v28  ;;  %v8002_v1 = vpack.c.bf16 %v3554_v24, %v3553_v3  ;;  %v4347_v24 = vld [vmem:[#allocation2 + $0x3a] sm:$0xff] }
 0x3b3   : > { %v7971_v16 = vadd.f32 %v3509_v22, %v3398_v18  ;;  %v3688_v22 = vld [vmem:[#allocation2 + $0xac] sm:$0xff] }
 0x3b4   : > { %v3264_v15 = vadd.f32 %v3241_v56, %v3129_v11  ;;  %v8004_v56 = vpack.c.bf16 %v3689_v36, %v3688_v22  ;;  %v3823_v11 = vld [vmem:[#allocation2 + $0xad] sm:$0xff] }
 0x3b5   : > { %v3833_v33 = vpack.c.bf16 %v3824_v27, %v3823_v11  ;;  %v4215_v11 = vld [vmem:[#allocation2 + $0x51] sm:$0xff] }
 0x3b8   : > { %v3376_v28 = vpop.f32.mrf.mxu2 }
 0x3b9   : > { %v3511_v63 = vpop.f32.mrf.mxu3  ;;  %v3399_v23 = vadd.f32 %v3376_v28, %v3264_v15  ;;  %v3109_v51 = vpop.f32.mrf.mxu0  ;;  %v3958_v15 = vld [vmem:[#allocation2 + $0xae] sm:$0xff] }
 0x3ba   : > { %v3244_v57 = vpop.f32.mrf.mxu1  ;;  %v3130_v19 = vadd.f32 %v3109_v51, %v7862_v31  ;;  %v6808_v31 = vld [vmem:[%s8443_s3 + $0xc0] sm:$0xff]  ;;  %v3968_v9 = vpack.c.bf16 %v3959_v43, %v3958_v15 }
 0x3bb   : > { %v7987_v48 = vadd.f32 %v3511_v63, %v3399_v23  ;;  %4687 = vmatpush.bf16.msrb.mxu0 %v6808_v31 }
 0x3bc   : > { %v3265_v14 = vadd.f32 %v3244_v57, %v3130_v19  ;;  %6363 = vmatmul.msk.bf16.gmra.mxu0 %vm1347_vm0, %v7983_v7  ;;  %6378 = vmatmul.msk.bf16.gmra.mxu1 %vm1347_vm0, %v7985_v53  ;;  %v4078_v57 = vld [vmem:[#allocation2 + $0x40] sm:$0xff] }
 0x3bd   : > { %6393 = vmatmul.msk.bf16.gmra.mxu2 %vm1347_vm0, %v3832_v42 }
 0x3be   : > { %6408 = vmatmul.msk.bf16.gmra.mxu3 %vm1347_vm0, %v7865_v4 }
 0x3c0   : > { %v3379_v6 = vpop.f32.mrf.mxu2 }
 0x3c1   : > { %v3514_v61 = vpop.f32.mrf.mxu3  ;;  %v3400_v49 = vadd.f32 %v3379_v6, %v3265_v14  ;;  %v3111_v29 = vpop.f32.mrf.mxu0  ;;  %v4077_v6 = vld [vmem:[#allocation2 + $0x38] sm:$0xff] }
 0x3c2   : > { %v3246_v55 = vpop.f32.mrf.mxu1  ;;  %v4095_v29 = vpack.c.bf16 %v4078_v57, %v4077_v6 }
 0x3c3   : > { %v7999_v46 = vadd.f32 %v3514_v61, %v3400_v49  ;;  %v4212_v61 = vld [vmem:[#allocation2 + $0x39] sm:$0xff] }
 0x3c4   : > { %v4230_v55 = vpack.c.bf16 %v4213_v59, %v4212_v61  ;;  %v4082_v61 = vld [vmem:[#allocation2 + $0x60] sm:$0xff] }
 0x3c8   : > { %v3381_v12 = vpop.f32.mrf.mxu2 }
 0x3c9   : > { %v3516_v21 = vpop.f32.mrf.mxu3  ;;  %v3609_v38 = vpop.f32.mrf.mxu0 }
 0x3ca   : > { %v3744_v4 = vpop.f32.mrf.mxu1  ;;  %v3654_v18 = vadd.f32 %v3609_v38, %v7873_v60 }
 0x3cc   : > { %v3789_v13 = vadd.f32 %v3744_v4, %v3654_v18  ;;  %6364 = vmatmul.msk.bf16.gmra.mxu0 %vm1347_vm0, %v8002_v1  ;;  %6379 = vmatmul.msk.bf16.gmra.mxu1 %vm1347_vm0, %v8004_v56  ;;  %v4080_v18 = vld [vmem:[#allocation2 + $0x50] sm:$0xff] }
 0x3cd   : > { %6394 = vmatmul.msk.bf16.gmra.mxu2 %vm1347_vm0, %v3833_v33 }
 0x3ce   : > { %6409 = vmatmul.msk.bf16.gmra.mxu3 %vm1347_vm0, %v3968_v9  ;;  %v4350_v9 = vld [vmem:[#allocation2 + $0x52] sm:$0xff] }
 0x3d0   : > { %v3879_v60 = vpop.f32.mrf.mxu2 }
 0x3d1   : > { %v4014_v58 = vpop.f32.mrf.mxu3  ;;  %v3924_v2 = vadd.f32 %v3879_v60, %v3789_v13  ;;  %v3611_v28 = vpop.f32.mrf.mxu0 }
 0x3d2   : > { %v3746_v63 = vpop.f32.mrf.mxu1  ;;  %v3655_v25 = vadd.f32 %v3611_v28, %v7876_v0  ;;  %v4365_v0 = vpack.c.bf16 %v4348_v34, %v4347_v24  ;;  %v4352_v24 = vld [vmem:[#allocation2 + $0x62] sm:$0xff] }
 0x3d3   : > { %v8013_v23 = vadd.f32 %v4014_v58, %v3924_v2  ;;  %v4079_v2 = vld [vmem:[#allocation2 + $0x48] sm:$0xff] }
 0x3d4   : > { %v3790_v51 = vadd.f32 %v3746_v63, %v3655_v25  ;;  %v4096_v63 = vpack.c.bf16 %v4080_v18, %v4079_v2  ;;  %v4084_v2 = vld [vmem:[#allocation2 + $0x70] sm:$0xff] }
 0x3d8   : > { %v3881_v40 = vpop.f32.mrf.mxu2 }
 0x3d9   : > { %v4016_v19 = vpop.f32.mrf.mxu3  ;;  %v3925_v42 = vadd.f32 %v3881_v40, %v3790_v51  ;;  %v3614_v14 = vpop.f32.mrf.mxu0  ;;  %v4349_v51 = vld [vmem:[#allocation2 + $0x4a] sm:$0xff] }
 0x3da   : > { %v3749_v31 = vpop.f32.mrf.mxu1  ;;  %v3656_v49 = vadd.f32 %v3614_v14, %v7884_v32 }
 0x3db   : > { %v8016_v36 = vadd.f32 %v4016_v19, %v3925_v42 }
 0x3dc   : > { %v3791_v12 = vadd.f32 %v3749_v31, %v3656_v49  ;;  %6416 = vmatmul.msk.bf16.vlgmr.msra.gmra.mxu0 %vm1347_vm0, %v4095_v29  ;;  %6431 = vmatmul.msk.bf16.vlgmr.msra.gmra.mxu1 %vm1347_vm0, %v4230_v55  ;;  %v4217_v49 = vld [vmem:[#allocation2 + $0x61] sm:$0xff] }
 0x3dd   : > { %6446 = vmatmul.msk.bf16.vlgmr.msra.gmra.mxu2 %vm1347_vm0, %v4365_v0 }
 0x3de   : > { %6461 = vmatmul.msk.bf16.vlgmr.msra.gmra.mxu3 %vm1347_vm0, %v7887_v62  ;;  %v4214_v62 = vld [vmem:[#allocation2 + $0x49] sm:$0xff] }
 0x3df   : > { %v4231_v25 = vpack.c.bf16 %v4215_v11, %v4214_v62  ;;  %v4219_v62 = vld [vmem:[#allocation2 + $0x71] sm:$0xff] }
 0x3e0   : > { %v3884_v21 = vpop.f32.mrf.mxu2 }
 0x3e1   : > { %v4019_v27 = vpop.f32.mrf.mxu3  ;;  %v3926_v43 = vadd.f32 %v3884_v21, %v3791_v12  ;;  %v3616_v32 = vpop.f32.mrf.mxu0 }
 0x3e2   : > { %v3751_v38 = vpop.f32.mrf.mxu1  ;;  %v3657_v4 = vadd.f32 %v3616_v32, %v7889_v50  ;;  %v4366_v50 = vpack.c.bf16 %v4350_v9, %v4349_v51 }
 0x3e3   : > { %v8024_v3 = vadd.f32 %v4019_v27, %v3926_v43  ;;  %v4081_v27 = vld [vmem:[#allocation2 + $0x58] sm:$0xff] }
 0x3e4   : > { %v3792_v22 = vadd.f32 %v3751_v38, %v3657_v4  ;;  %v4097_v32 = vpack.c.bf16 %v4082_v61, %v4081_v27  ;;  %v4351_v4 = vld [vmem:[#allocation2 + $0x5a] sm:$0xff] }
 0x3e5   : > { %v4221_v27 = vld [vmem:[#allocation2 + $0x81] sm:$0xff] }
 0x3e8   : > { %v3886_v15 = vpop.f32.mrf.mxu2 }
 0x3e9   : > { %v4021_v33 = vpop.f32.mrf.mxu3  ;;  %v3927_v13 = vadd.f32 %v3886_v15, %v3792_v22  ;;  %v3619_v60 = vpop.f32.mrf.mxu0 }
 0x3ea   : > { %v3754_v58 = vpop.f32.mrf.mxu1  ;;  %v3658_v28 = vadd.f32 %v3619_v60, %v7898_v45 }
 0x3eb   : > { %v8027_v57 = vadd.f32 %v4021_v33, %v3927_v13 }
 0x3ec   : > { %v3793_v59 = vadd.f32 %v3754_v58, %v3658_v28  ;;  %6417 = vmatmul.msk.bf16.gmra.mxu0 %vm1347_vm0, %v4096_v63  ;;  %6432 = vmatmul.msk.bf16.gmra.mxu1 %vm1347_vm0, %v4231_v25  ;;  %v4354_v25 = vld [vmem:[#allocation2 + $0x72] sm:$0xff] }
 0x3ed   : > { %6447 = vmatmul.msk.bf16.gmra.mxu2 %vm1347_vm0, %v4366_v50 }
 0x3ee   : > { %6462 = vmatmul.msk.bf16.gmra.mxu3 %vm1347_vm0, %v7901_v37  ;;  %v4216_v37 = vld [vmem:[#allocation2 + $0x59] sm:$0xff] }
 0x3ef   : > { %v4232_v38 = vpack.c.bf16 %v4217_v49, %v4216_v37 }
 0x3f0   : > { %v3889_v40 = vpop.f32.mrf.mxu2 }
 0x3f1   : > { %v4024_v19 = vpop.f32.mrf.mxu3  ;;  %v3928_v34 = vadd.f32 %v3889_v40, %v3793_v59  ;;  %v3621_v45 = vpop.f32.mrf.mxu0  ;;  %v4083_v40 = vld [vmem:[#allocation2 + $0x68] sm:$0xff] }
 0x3f2   : > { %v3756_v42 = vpop.f32.mrf.mxu1  ;;  %v3659_v14 = vadd.f32 %v3621_v45, %v7903_v52  ;;  %v4367_v52 = vpack.c.bf16 %v4352_v24, %v4351_v4 }
 0x3f3   : > { %v8035_v31 = vadd.f32 %v4024_v19, %v3928_v34  ;;  %v4098_v34 = vpack.c.bf16 %v4084_v2, %v4083_v40 }
 0x3f4   : > { %v3794_v6 = vadd.f32 %v3756_v42, %v3659_v14  ;;  %v4353_v42 = vld [vmem:[#allocation2 + $0x6a] sm:$0xff] }
 0x3f8   : > { %v3891_v29 = vpop.f32.mrf.mxu2 }
 0x3f9   : > { %v4026_v55 = vpop.f32.mrf.mxu3  ;;  %v3929_v0 = vadd.f32 %v3891_v29, %v3794_v6  ;;  %v3624_v12 = vpop.f32.mrf.mxu0 }
 0x3fa   : > { %v3759_v21 = vpop.f32.mrf.mxu1  ;;  %v3660_v43 = vadd.f32 %v3624_v12, %v7912_v20 }
 0x3fb   : > { %v8038_v22 = vadd.f32 %v4026_v55, %v3929_v0 }
 0x3fc   : > { %v3795_v18 = vadd.f32 %v3759_v21, %v3660_v43  ;;  %6418 = vmatmul.msk.bf16.gmra.mxu0 %vm1347_vm0, %v4097_v32  ;;  %6433 = vmatmul.msk.bf16.gmra.mxu1 %vm1347_vm0, %v4232_v38  ;;  %v4086_v21 = vld [vmem:[#allocation2 + $0x80] sm:$0xff] }
 0x3fd   : > { %6448 = vmatmul.msk.bf16.gmra.mxu2 %vm1347_vm0, %v4367_v52  ;;  %v4356_v32 = vld [vmem:[#allocation2 + $0x82] sm:$0xff] }
 0x3fe   : > { %6463 = vmatmul.msk.bf16.gmra.mxu3 %vm1347_vm0, %v7915_v35  ;;  %v4218_v35 = vld [vmem:[#allocation2 + $0x69] sm:$0xff] }
 0x3ff   : > { %v4233_v45 = vpack.c.bf16 %v4219_v62, %v4218_v35 }
 0x400   : > { %v3894_v11 = vpop.f32.mrf.mxu2 }
 0x401   : > { %v4029_v15 = vpop.f32.mrf.mxu3  ;;  %v3930_v33 = vadd.f32 %v3894_v11, %v3795_v18  ;;  %v3626_v20 = vpop.f32.mrf.mxu0  ;;  %v4085_v18 = vld [vmem:[#allocation2 + $0x78] sm:$0xff] }
 0x402   : > { %v3761_v9 = vpop.f32.mrf.mxu1  ;;  %v3661_v13 = vadd.f32 %v3626_v20, %v7917_v39  ;;  %v4368_v39 = vpack.c.bf16 %v4354_v25, %v4353_v42  ;;  %v4355_v20 = vld [vmem:[#allocation2 + $0x7a] sm:$0xff] }
 0x403   : > { %v8046_v60 = vadd.f32 %v4029_v15, %v3930_v33  ;;  %v4099_v15 = vpack.c.bf16 %v4086_v21, %v4085_v18  ;;  %v4360_v18 = vld [vmem:[#allocation2 + $0xa2] sm:$0xff] }
 0x404   : > { %v3796_v58 = vadd.f32 %v3761_v9, %v3661_v13 }
 0x408   : > { %v3896_v28 = vpop.f32.mrf.mxu2 }
 0x409   : > { %v4031_v63 = vpop.f32.mrf.mxu3  ;;  %v3931_v51 = vadd.f32 %v3896_v28, %v3796_v58  ;;  %v3629_v50 = vpop.f32.mrf.mxu0 }
 0x40a   : > { %v3764_v59 = vpop.f32.mrf.mxu1  ;;  %v3662_v19 = vadd.f32 %v3629_v50, %v7926_v47  ;;  %v4088_v50 = vld [vmem:[#allocation2 + $0x90] sm:$0xff] }
 0x40b   : > { %v8049_v14 = vadd.f32 %v4031_v63, %v3931_v51 }
 0x40c   : > { %v3797_v6 = vadd.f32 %v3764_v59, %v3662_v19  ;;  %6419 = vmatmul.msk.bf16.gmra.mxu0 %vm1347_vm0, %v4098_v34  ;;  %6434 = vmatmul.msk.bf16.gmra.mxu1 %vm1347_vm0, %v4233_v45  ;;  %v4223_v59 = vld [vmem:[#allocation2 + $0x91] sm:$0xff] }
 0x40d   : > { %6449 = vmatmul.msk.bf16.gmra.mxu2 %vm1347_vm0, %v4368_v39  ;;  %v4358_v19 = vld [vmem:[#allocation2 + $0x92] sm:$0xff]  ;;  %v4087_v39 = vld [vmem:[#allocation2 + $0x88] sm:$0xff] }
 0x40e   : > { %6464 = vmatmul.msk.bf16.gmra.mxu3 %vm1347_vm0, %v7929_v30  ;;  %v4220_v30 = vld [vmem:[#allocation2 + $0x79] sm:$0xff] }
 0x40f   : > { %v4234_v33 = vpack.c.bf16 %v4221_v27, %v4220_v30 }
 0x410   : > { %v3899_v61 = vpop.f32.mrf.mxu2 }
 0x411   : > { %v4034_v49 = vpop.f32.mrf.mxu3  ;;  %v3932_v29 = vadd.f32 %v3899_v61, %v3797_v6  ;;  %v3631_v47 = vpop.f32.mrf.mxu0  ;;  %v4100_v61 = vpack.c.bf16 %v4088_v50, %v4087_v39  ;;  %v4092_v50 = vld [vmem:[#allocation2 + $0xb0] sm:$0xff] }
 0x412   : > { %v3766_v55 = vpop.f32.mrf.mxu1  ;;  %v3663_v24 = vadd.f32 %v3631_v47, %v7931_v41  ;;  %v4369_v41 = vpack.c.bf16 %v4356_v32, %v4355_v20  ;;  %v4090_v32 = vld [vmem:[#allocation2 + $0xa0] sm:$0xff] }
 0x413   : > { %v8057_v0 = vadd.f32 %v4034_v49, %v3932_v29  ;;  %v4357_v29 = vld [vmem:[#allocation2 + $0x8a] sm:$0xff] }
 0x414   : > { %v3798_v12 = vadd.f32 %v3766_v55, %v3663_v24 }
 0x418   : > { %v3901_v37 = vpop.f32.mrf.mxu2 }
 0x419   : > { %v4036_v43 = vpop.f32.mrf.mxu3  ;;  %v3933_v38 = vadd.f32 %v3901_v37, %v3798_v12  ;;  %v3634_v4 = vpop.f32.mrf.mxu0 }
 0x41a   : > { %v3769_v52 = vpop.f32.mrf.mxu1  ;;  %v3664_v11 = vadd.f32 %v3634_v4, %v7940_v44 }
 0x41b   : > { %v8060_v9 = vadd.f32 %v4036_v43, %v3933_v38  ;;  %v4225_v38 = vld [vmem:[#allocation2 + $0xa1] sm:$0xff] }
 0x41c   : > { %v3799_v13 = vadd.f32 %v3769_v52, %v3664_v11  ;;  %6420 = vmatmul.msk.bf16.gmra.mxu0 %vm1347_vm0, %v4099_v15  ;;  %6435 = vmatmul.msk.bf16.gmra.mxu1 %vm1347_vm0, %v4234_v33  ;;  %v4089_v11 = vld [vmem:[#allocation2 + $0x98] sm:$0xff] }
 0x41d   : > { %6450 = vmatmul.msk.bf16.gmra.mxu2 %vm1347_vm0, %v4369_v41  ;;  %v4224_v15 = vld [vmem:[#allocation2 + $0x99] sm:$0xff]  ;;  %v4101_v20 = vpack.c.bf16 %v4090_v32, %v4089_v11  ;;  %v4499_v32 = vld [vmem:[#allocation2 + $0xc3] sm:$0xff] }
 0x41e   : > { %6465 = vmatmul.msk.bf16.gmra.mxu3 %vm1347_vm0, %v7943_v26  ;;  %v4222_v26 = vld [vmem:[#allocation2 + $0x89] sm:$0xff]  ;;  %v4236_v41 = vpack.c.bf16 %v4225_v38, %v4224_v15 }
 0x41f   : > { %v4235_v49 = vpack.c.bf16 %v4223_v59, %v4222_v26  ;;  %v4227_v59 = vld [vmem:[#allocation2 + $0xb1] sm:$0xff] }
 0x420   : > { %v3904_v58 = vpop.f32.mrf.mxu2 }
 0x421   : > { %v4039_v2 = vpop.f32.mrf.mxu3  ;;  %v3934_v62 = vadd.f32 %v3904_v58, %v3799_v13  ;;  %v3636_v44 = vpop.f32.mrf.mxu0  ;;  %v4359_v13 = vld [vmem:[#allocation2 + $0x9a] sm:$0xff] }
 0x422   : > { %v3771_v28 = vpop.f32.mrf.mxu1  ;;  %v3665_v63 = vadd.f32 %v3636_v44, %v7945_v17  ;;  %v4370_v17 = vpack.c.bf16 %v4358_v19, %v4357_v29  ;;  %v4362_v19 = vld [vmem:[#allocation2 + $0xb2] sm:$0xff] }
 0x423   : > { %v8068_v25 = vadd.f32 %v4039_v2, %v3934_v62 }
 0x424   : > { %v3800_v51 = vadd.f32 %v3771_v28, %v3665_v63 }
 0x428   : > { %v3906_v40 = vpop.f32.mrf.mxu2 }
 0x429   : > { %v4041_v35 = vpop.f32.mrf.mxu3  ;;  %v3935_v34 = vadd.f32 %v3906_v40, %v3800_v51  ;;  %v3639_v45 = vpop.f32.mrf.mxu0 }
 0x42a   : > { %v3774_v42 = vpop.f32.mrf.mxu1  ;;  %v3666_v6 = vadd.f32 %v3639_v45, %v7954_v10  ;;  %v4226_v45 = vld [vmem:[#allocation2 + $0xa9] sm:$0xff] }
 0x42b   : > { %v8071_v47 = vadd.f32 %v4041_v35, %v3935_v34  ;;  %v4237_v26 = vpack.c.bf16 %v4227_v59, %v4226_v45  ;;  %v4619_v45 = vld [vmem:[#allocation2 + $0x4c] sm:$0xff] }
 0x42c   : > { %v3801_v55 = vadd.f32 %v3774_v42, %v3666_v6  ;;  %6421 = vmatmul.msk.bf16.gmra.mxu0 %vm1347_vm0, %v4100_v61  ;;  %6436 = vmatmul.msk.bf16.gmra.mxu1 %vm1347_vm0, %v4235_v49  ;;  %v4361_v6 = vld [vmem:[#allocation2 + $0xaa] sm:$0xff] }
 0x42d   : > { %6451 = vmatmul.msk.bf16.gmra.mxu2 %vm1347_vm0, %v4370_v17 }
 0x42e   : > { %6466 = vmatmul.msk.bf16.gmra.mxu3 %vm1347_vm0, %v7957_v8 }
 0x430   : > { %v3909_v24 = vpop.f32.mrf.mxu2 }
 0x431   : > { %v4044_v12 = vpop.f32.mrf.mxu3  ;;  %v3936_v21 = vadd.f32 %v3909_v24, %v3801_v55  ;;  %v3641_v10 = vpop.f32.mrf.mxu0 }
 0x432   : > { %v8078_v27 = vpop.f32.mrf.mxu1  ;;  %v8081_v37 = vadd.f32 %v3641_v10, %v7961_v5  ;;  %v4371_v5 = vpack.c.bf16 %v4360_v18, %v4359_v13  ;;  %v4364_v10 = vld [vmem:[#allocation2 + $0xc2] sm:$0xff]  ;;  %v4093_v18 = vld [vmem:[#allocation2 + $0xb8] sm:$0xff] }
 0x433   : > { %v8083_v43 = vadd.f32 %v4044_v12, %v3936_v21  ;;  %v4094_v12 = vld [vmem:[#allocation2 + $0xc0] sm:$0xff] }
 0x434   : > { %v4229_v21 = vld [vmem:[#allocation2 + $0xc1] sm:$0xff]  ;;  %v4103_v11 = vpack.c.bf16 %v4094_v12, %v4093_v18 }
 0x435   : > { %v6809_v13 = vld [vmem:[%s8445_s5] sm:$0xff] }
 0x436   : > { %4815 = vmatpush.bf16.msrb.mxu1 %v6809_v13 }
 0x438   : > { %v8085_v4 = vpop.f32.mrf.mxu2 }
 0x439   : > { %v8087_v52 = vpop.f32.mrf.mxu3  ;;  %v3644_v30 = vpop.f32.mrf.mxu0 }
 0x43a   : > { %v3779_v8 = vpop.f32.mrf.mxu1  ;;  %v3668_v33 = vadd.f32 %v3644_v30, %v7971_v16  ;;  %v4228_v30 = vld [vmem:[#allocation2 + $0xb9] sm:$0xff] }
 0x43b   : > { %v4238_v15 = vpack.c.bf16 %v4229_v21, %v4228_v30 }
 0x43c   : > { %v3803_v58 = vadd.f32 %v3779_v8, %v3668_v33  ;;  %6422 = vmatmul.msk.bf16.gmra.mxu0 %vm1347_vm0, %v4101_v20  ;;  %6437 = vmatmul.msk.bf16.gmra.mxu1 %vm1347_vm0, %v4236_v41  ;;  %v4363_v33 = vld [vmem:[#allocation2 + $0xba] sm:$0xff] }
 0x43d   : > { %6452 = vmatmul.msk.bf16.gmra.mxu2 %vm1347_vm0, %v4371_v5  ;;  %v4373_v20 = vpack.c.bf16 %v4364_v10, %v4363_v33  ;;  %v4626_v10 = vld [vmem:[#allocation2 + $0x84] sm:$0xff] }
 0x43e   : > { %6467 = vmatmul.msk.bf16.gmra.mxu3 %vm1347_vm0, %v7983_v7  ;;  %v4091_v7 = vld [vmem:[#allocation2 + $0xa8] sm:$0xff] }
 0x43f   : > { %v4102_v39 = vpack.c.bf16 %v4092_v50, %v4091_v7 }
 0x440   : > { %v3914_v2 = vpop.f32.mrf.mxu2 }
 0x441   : > { %v4049_v62 = vpop.f32.mrf.mxu3  ;;  %v3938_v44 = vadd.f32 %v3914_v2, %v3803_v58  ;;  %v3646_v28 = vpop.f32.mrf.mxu0  ;;  %v6810_v58 = vld [vmem:[%s8445_s5 + $0x8] sm:$0xff]  ;;  %v6811_v2 = vld [vmem:[%s8445_s5 + $0x10] sm:$0xff] }
 0x442   : > { %v8095_v63 = vpop.f32.mrf.mxu1  ;;  %v8098_v16 = vadd.f32 %v3646_v28, %v7987_v48  ;;  %v4372_v48 = vpack.c.bf16 %v4362_v19, %v4361_v6  ;;  %4849 = vmatpush.bf16.msrb.mxu2 %v6810_v58  ;;  %4883 = vmatpush.bf16.msrb.mxu3 %v6811_v2  ;;  %v4617_v28 = vld [vmem:[#allocation2 + $0x3c] sm:$0xff]  ;;  %v4622_v6 = vld [vmem:[#allocation2 + $0x64] sm:$0xff] }
 0x443   : > { %v8100_v51 = vadd.f32 %v4049_v62, %v3938_v44  ;;  %v4618_v62 = vld [vmem:[#allocation2 + $0x44] sm:$0xff] }
 0x444   : > { %v4635_v59 = vpack.c.bf16 %v4618_v62, %v4617_v28 }
 0x448   : > { %v8102_v40 = vpop.f32.mrf.mxu2 }
 0x449   : > { %v8104_v35 = vpop.f32.mrf.mxu3  ;;  %v3649_v34 = vpop.f32.mrf.mxu0 }
 0x44a   : > { %v3670_v42 = vadd.f32 %v3649_v34, %v7999_v46  ;;  %v3784_v61 = vpop.f32.mrf.mxu1  ;;  %v4620_v34 = vld [vmem:[#allocation2 + $0x54] sm:$0xff] }
 0x44c   : > { %v3805_v49 = vadd.f32 %v3784_v61, %v3670_v42  ;;  %6423 = vmatmul.msk.bf16.gmra.mxu0 %vm1347_vm0, %v4102_v39  ;;  %6438 = vmatmul.msk.bf16.gmra.mxu1 %vm1347_vm0, %v4237_v26  ;;  %v4636_v39 = vpack.c.bf16 %v4620_v34, %v4619_v45 }
 0x44d   : > { %6453 = vmatmul.msk.bf16.gmra.mxu2 %vm1347_vm0, %v4372_v48  ;;  %v4621_v48 = vld [vmem:[#allocation2 + $0x5c] sm:$0xff] }
 0x44e   : > { %6468 = vmatmul.msk.bf16.gmra.mxu3 %vm1347_vm0, %v8002_v1  ;;  %v4498_v1 = vld [vmem:[#allocation2 + $0xbb] sm:$0xff] }
 0x44f   : > { %v4508_v41 = vpack.c.bf16 %v4499_v32, %v4498_v1 }
 0x450   : > { %v3919_v29 = vpop.f32.mrf.mxu2 }
 0x451   : > { %v3940_v17 = vadd.f32 %v3919_v29, %v3805_v49  ;;  %v3651_v55 = vpop.f32.mrf.mxu0  ;;  %v4054_v24 = vpop.f32.mrf.mxu3 }
 0x453   : > { %v8112_v46 = vadd.f32 %v4054_v24, %v3940_v17  ;;  %v4624_v17 = vld [vmem:[#allocation2 + $0x74] sm:$0xff]  ;;  %v4623_v24 = vld [vmem:[#allocation2 + $0x6c] sm:$0xff] }
 0x459   : > { %v4149_v38 = vpop.f32.mrf.mxu0 }
 0x45a   : > { %v8115_v8 = vadd.f32 %v4149_v38, %v8013_v23  ;;  %v4625_v38 = vld [vmem:[#allocation2 + $0x7c] sm:$0xff] }
 0x45c   : > { %6424 = vmatmul.msk.bf16.gmra.mxu0 %vm1347_vm0, %v4103_v11  ;;  %6439 = vmatmul.msk.bf16.gmra.mxu1 %vm1347_vm0, %v4238_v15  ;;  %v3786_v11 = vpop.f32.mrf.mxu1  ;;  %v3921_v15 = vpop.f32.mrf.mxu2 }
 0x45d   : > { %6454 = vmatmul.msk.bf16.gmra.mxu2 %vm1347_vm0, %v4373_v20  ;;  %v6813_v15 = vld [vmem:[%s8445_s5 + $0x20] sm:$0xff] }
 0x45e   : > { %6469 = vmatmul.msk.bf16.gmra.mxu3 %vm1347_vm0, %v4508_v41  ;;  %4951 = vmatpush.bf16.msra.mxu2 %v6813_v15 }
 0x461   : > { %v4151_v23 = vpop.f32.mrf.mxu0 }
 0x462   : > { %v8125_v5 = vadd.f32 %v4151_v23, %v8016_v36 }
 0x464   : > { %v4284_v20 = vpop.f32.mrf.mxu1 }
 0x469   : > { %v4154_v44 = vpop.f32.mrf.mxu0 }
 0x46a   : > { %v8134_v50 = vadd.f32 %v4154_v44, %v8024_v3 }
 0x46c   : > { %6476 = vmatmul.msk.bf16.vlgmr.msrb.gmra.mxu0 %vm1347_vm0, %v4635_v59  ;;  %v4286_v23 = vpop.f32.mrf.mxu1 }
 0x471   : > { %v4156_v36 = vpop.f32.mrf.mxu0 }
 0x472   : > { %v8138_v19 = vadd.f32 %v4156_v36, %v8027_v57  ;;  %v4637_v57 = vpack.c.bf16 %v4622_v6, %v4621_v48 }
 0x474   : > { %v4289_v59 = vpop.f32.mrf.mxu1 }
 0x479   : > { %v4159_v7 = vpop.f32.mrf.mxu0 }
 0x47a   : > { %v8141_v42 = vadd.f32 %v4159_v7, %v8035_v31 }
 0x47c   : > { %6477 = vmatmul.msk.bf16.gmra.mxu0 %vm1347_vm0, %v4636_v39 }
 0x481   : > { %v4161_v26 = vpop.f32.mrf.mxu0 }
 0x482   : > { %v8145_v3 = vadd.f32 %v4161_v26, %v8038_v22  ;;  %v4638_v22 = vpack.c.bf16 %v4624_v17, %v4623_v24  ;;  %v4330_v17 = vadd.f32 %v4286_v23, %v8125_v5 }
 0x489   : > { %v4164_v61 = vpop.f32.mrf.mxu0 }
 0x48a   : > { %v8148_v49 = vadd.f32 %v4164_v61, %v8046_v60  ;;  %v4634_v61 = vld [vmem:[#allocation2 + $0xc4] sm:$0xff] }
 0x48c   : > { %6478 = vmatmul.msk.bf16.gmra.mxu0 %vm1347_vm0, %v4637_v57 }
 0x491   : > { %v4166_v29 = vpop.f32.mrf.mxu0 }
 0x492   : > { %v8152_v31 = vadd.f32 %v4166_v29, %v8049_v14  ;;  %v4639_v14 = vpack.c.bf16 %v4626_v10, %v4625_v38  ;;  %v4633_v29 = vld [vmem:[#allocation2 + $0xbc] sm:$0xff]  ;;  %v4331_v38 = vadd.f32 %v4289_v59, %v8134_v50 }
 0x499   : > { %v4169_v55 = vpop.f32.mrf.mxu0 }
 0x49a   : > { %v8155_v12 = vadd.f32 %v4169_v55, %v8057_v0  ;;  %v4643_v55 = vpack.c.bf16 %v4634_v61, %v4633_v29 }
 0x49c   : > { %6479 = vmatmul.msk.bf16.gmra.mxu0 %vm1347_vm0, %v4638_v22 }
 0x4a1   : > { %v4171_v21 = vpop.f32.mrf.mxu0 }
 0x4a2   : > { %v8159_v60 = vadd.f32 %v4171_v21, %v8060_v9  ;;  %v4056_v9 = vpop.f32.mrf.mxu3 }
 0x4a9   : > { %v4174_v32 = vpop.f32.mrf.mxu0 }
 0x4aa   : > { %v8162_v18 = vadd.f32 %v4174_v32, %v8068_v25  ;;  %v4419_v25 = vpop.f32.mrf.mxu2  ;;  %v4554_v13 = vpop.f32.mrf.mxu3 }
 0x4ac   : > { %6480 = vmatmul.msk.bf16.gmra.mxu0 %vm1347_vm0, %v4639_v14 }
 0x4b1   : > { %v4176_v30 = vpop.f32.mrf.mxu0 }
 0x4b2   : > { %v8166_v0 = vadd.f32 %v4176_v30, %v8071_v47  ;;  %v4421_v58 = vpop.f32.mrf.mxu2  ;;  %v3804_v47 = vadd.f32 %v8095_v63, %v8098_v16  ;;  %v4291_v16 = vpop.f32.mrf.mxu1 }
 0x4b3   : > { %v4465_v24 = vadd.f32 %v4421_v58, %v4330_v17  ;;  %v4332_v50 = vadd.f32 %v4291_v16, %v8138_v19  ;;  %v6815_v16 = vld [vmem:[%s8445_s5 + $0x30] sm:$0xff] }
 0x4b9   : > { %v4179_v33 = vpop.f32.mrf.mxu0 }
 0x4ba   : > { %v8169_v1 = vadd.f32 %v4179_v33, %v8083_v43  ;;  %v3939_v43 = vadd.f32 %v8102_v40, %v3804_v47  ;;  %v4424_v34 = vpop.f32.mrf.mxu2  ;;  %v4294_v26 = vpop.f32.mrf.mxu1 }
 0x4bb   : > { %v4466_v30 = vadd.f32 %v4424_v34, %v4331_v38 }
 0x4bc   : > { %6481 = vmatmul.msk.bf16.gmra.mxu0 %vm1347_vm0, %v7959_v54  ;;  %v4556_v54 = vpop.f32.mrf.mxu3  ;;  %v4074_v44 = vadd.f32 %v8104_v35, %v3939_v43 }
 0x4bd   : > { %v4600_v21 = vadd.f32 %v4556_v54, %v4465_v24 }
 0x4c1   : > { %v8173_v41 = vpop.f32.mrf.mxu0 }
 0x4c2   : > { %v8198_v10 = vpop.f32.mrf.mxu1 }
 0x4c4   : > { %v4559_v7 = vpop.f32.mrf.mxu3 }
 0x4c5   : > { %v4601_v9 = vadd.f32 %v4559_v7, %v4466_v30 }
 0x4c9   : > { %v4184_v2 = vpop.f32.mrf.mxu0 }
 0x4ca   : > { %v8178_v62 = vadd.f32 %v4184_v2, %v8100_v51  ;;  %v4426_v51 = vpop.f32.mrf.mxu2 }
 0x4cb   : > { %v4467_v43 = vadd.f32 %v4426_v51, %v4332_v50  ;;  %v6816_v50 = vld [vmem:[%s8445_s5 + $0x38] sm:$0xff] }
 0x4cc   : > { %6482 = vmatmul.msk.bf16.gmra.mxu0 %vm1347_vm0, %v7985_v53  ;;  %v4329_v53 = vadd.f32 %v4284_v20, %v8115_v8  ;;  %v4561_v39 = vpop.f32.mrf.mxu3  ;;  %v6812_v8 = vld [vmem:[%s8445_s5 + $0x18] sm:$0xff]  ;;  %v6814_v20 = vld [vmem:[%s8445_s5 + $0x28] sm:$0xff] }
 0x4cd   : > { %4917 = vmatpush.bf16.msra.mxu1 %v6812_v8  ;;  %4985 = vmatpush.bf16.msra.mxu3 %v6814_v20  ;;  %v4602_v7 = vadd.f32 %v4561_v39, %v4467_v43 }
 0x4ce   : > { %v4464_v35 = vadd.f32 %v4419_v25, %v4329_v53  ;;  %v4333_v53 = vadd.f32 %v4294_v26, %v8141_v42 }
 0x4d0   : > { %v4599_v48 = vadd.f32 %v4554_v13, %v4464_v35  ;;  %v8213_v13 = vpop.f32.mrf.mxu1 }
 0x4d1   : > { %v4186_v28 = vpop.f32.mrf.mxu0 }
 0x4d2   : > { %v8184_v36 = vadd.f32 %v4186_v28, %v4074_v44  ;;  %v4429_v6 = vpop.f32.mrf.mxu2 }
 0x4d8   : > { %v8224_v29 = vpop.f32.mrf.mxu1 }
 0x4d9   : > { %v4189_v45 = vpop.f32.mrf.mxu0 }
 0x4da   : > { %v8187_v63 = vadd.f32 %v4189_v45, %v8112_v46  ;;  %v8200_v32 = vpop.f32.mrf.mxu2 }
 0x4dc   : > { %6483 = vmatmul.msk.bf16.gmra.mxu0 %vm1347_vm0, %v8004_v56  ;;  %v4564_v56 = vpop.f32.mrf.mxu3 }
 0x4e1   : > { %v4191_v40 = vpop.f32.mrf.mxu0 }
 0x4e2   : > { %v8215_v58 = vpop.f32.mrf.mxu2 }
 0x4e4   : > { %v8207_v33 = vpop.f32.mrf.mxu3 }
 0x4e9   : > { %v4689_v57 = vpop.f32.mrf.mxu0 }
 0x4ea   : > { %v4734_v46 = vadd.f32 %v4689_v57, %v4599_v48  ;;  %v4468_v57 = vadd.f32 %v4429_v6, %v4333_v53 }
 0x4ec   : > { %v4752_v22 = vmax.f32 %v4734_v46, 0.0  ;;  %6484 = vmatmul.msk.bf16.gmra.mxu0 %vm1347_vm0, %v4643_v55  ;;  %v8218_v40 = vpop.f32.mrf.mxu3  ;;  %v8227_v55 = vpop.f32.mrf.mxu2  ;;  %v4603_v30 = vadd.f32 %v4564_v56, %v4468_v57 }
 0x4ee   : > { %4770 = vst.msk [vmem:[#allocation3] sm:$0xff] %vm1347_vm0, %v4752_v22 }
 0x4f1   : > { %v4691_v5 = vpop.f32.mrf.mxu0 }
 0x4f2   : > { %v4735_v14 = vadd.f32 %v4691_v5, %v4600_v21 }
 0x4f4   : > { %v4753_v11 = vmax.f32 %v4735_v14, 0.0  ;;  %v4571_v56 = vpop.f32.mrf.mxu3 }
 0x4f5   : > { %v4789_v2 = vld [vmem:[#allocation3] sm:$0x1]  ;;  %v4790_v47 = vld [vmem:[#allocation3 + $0x1] sm:$0x1]  ;;  %v4822_v61 = vld [vmem:[#allocation3 + $0x2] sm:$0x1] }
 0x4f6   : > { %4771 = vst.msk [vmem:[#allocation3 + $0x8] sm:$0xff] %vm1347_vm0, %v4753_v11  ;;  %v4791_v59 = vmax.f32 %v4789_v2, %v4790_v47  ;;  %v4823_v48 = vld [vmem:[#allocation3 + $0x3] sm:$0x1]  ;;  %v4856_v39 = vld [vmem:[#allocation3 + $0x4] sm:$0x1] }
 0x4f7   : > { %v4857_v46 = vld [vmem:[#allocation3 + $0x5] sm:$0x1]  ;;  %v4824_v42 = vmax.f32 %v4822_v61, %v4823_v48  ;;  %v4890_v20 = vld [vmem:[#allocation3 + $0x6] sm:$0x1]  ;;  %v4335_v61 = vadd.f32 %v8213_v13, %v8148_v49 }
 0x4f8   : > { %v4858_v5 = vmax.f32 %v4856_v39, %v4857_v46  ;;  %v6819_v13 = vld [vmem:[%s8445_s5 + $0x50] sm:$0xff] }
 0x4f9   : > { %v4694_v25 = vpop.f32.mrf.mxu0  ;;  %v4470_v39 = vadd.f32 %v8215_v58, %v4335_v61  ;;  %v4336_v58 = vadd.f32 %v8224_v29, %v8152_v31 }
 0x4fa   : > { %v4736_v23 = vadd.f32 %v4694_v25, %v4601_v9  ;;  %v4891_v25 = vld [vmem:[#allocation3 + $0x7] sm:$0x1] }
 0x4fc   : > { %v4754_v54 = vmax.f32 %v4736_v23, 0.0  ;;  %v4334_v23 = vadd.f32 %v8198_v10, %v8145_v3  ;;  %v8242_v10 = vpop.f32.mrf.mxu2 }
 0x4fd   : > { %v4792_v44 = vld [vmem:[#allocation3 + $0xe] sm:$0x1]  ;;  %v4793_v28 = vld [vmem:[#allocation3 + $0xf] sm:$0x1] }
 0x4fe   : > { %4772 = vst.msk [vmem:[#allocation3 + $0x10] sm:$0xff] %vm1347_vm0, %v4754_v54  ;;  %v4794_v34 = vmax.f32 %v4792_v44, %v4793_v28  ;;  %v6817_v54 = vld [vmem:[%s8445_s5 + $0x40] sm:$0xff]  ;;  %v4469_v28 = vadd.f32 %v8200_v32, %v4334_v23  ;;  %v4924_v32 = vld [vmem:[#allocation3 + $0x8] sm:$0x1] }
 0x500   : > { %v4795_v45 = vmax.f32 %v4791_v59, %v4794_v34  ;;  %v4892_v34 = vmax.f32 %v4890_v20, %v4891_v25 }
 0x501   : > { %v4696_v19 = vpop.f32.mrf.mxu0 }
 0x502   : > { %v4737_v35 = vadd.f32 %v4696_v19, %v4602_v7  ;;  %v4796_v51 = vpack.c.bf16 %v4795_v45, %v4795_v45  ;;  %v4304_v7 = vpop.f32.mrf.mxu1 }
 0x504   : > { %v4755_v17 = vmax.f32 %v4737_v35, 0.0  ;;  %6489 = vmatmul.msk.bf16.vlgmr.msrb.gmra.mxu1 %vm1347_vm0, %v4796_v51  ;;  %v4925_v35 = vld [vmem:[#allocation3 + $0x9] sm:$0x1]  ;;  %v6818_v51 = vld [vmem:[%s8445_s5 + $0x48] sm:$0xff] }
 0x505   : > { %v4825_v24 = vld [vmem:[#allocation3 + $0x10] sm:$0x1]  ;;  %v4826_v22 = vld [vmem:[#allocation3 + $0x11] sm:$0x1]  ;;  %v4859_v8 = vld [vmem:[#allocation3 + $0x12] sm:$0x1]  ;;  %5019 = vmatpush.bf16.msrb.mxu1 %v6815_v16  ;;  %v4604_v16 = vadd.f32 %v8207_v33, %v4469_v28  ;;  %v4574_v33 = vpop.f32.mrf.mxu3 }
 0x506   : > { %4773 = vst.msk [vmem:[#allocation3 + $0x18] sm:$0xff] %vm1347_vm0, %v4755_v17  ;;  %v4827_v26 = vmax.f32 %v4825_v24, %v4826_v22  ;;  %v4860_v21 = vld [vmem:[#allocation3 + $0x13] sm:$0x1]  ;;  %v4893_v38 = vld [vmem:[#allocation3 + $0x14] sm:$0x1]  ;;  %v4926_v24 = vmax.f32 %v4924_v32, %v4925_v35 }
 0x507   : > { %v4861_v6 = vmax.f32 %v4859_v8, %v4860_v21  ;;  %v4894_v14 = vld [vmem:[#allocation3 + $0x15] sm:$0x1]  ;;  %v4927_v45 = vld [vmem:[#allocation3 + $0x16] sm:$0x1]  ;;  %v4928_v19 = vld [vmem:[#allocation3 + $0x17] sm:$0x1]  ;;  %v4605_v8 = vadd.f32 %v8218_v40, %v4470_v39 }
 0x508   : > { %v4828_v11 = vmax.f32 %v4824_v42, %v4827_v26  ;;  %v4895_v43 = vmax.f32 %v4893_v38, %v4894_v14  ;;  %v4929_v17 = vmax.f32 %v4927_v45, %v4928_v19  ;;  %v8254_v26 = vpop.f32.mrf.mxu2  ;;  %v4471_v14 = vadd.f32 %v8227_v55, %v4336_v58  ;;  %v6821_v35 = vld [vmem:[%s8445_s5 + $0x60] sm:$0xff] }
 0x509   : > { %v4699_v15 = vpop.f32.mrf.mxu0  ;;  %v4862_v9 = vmax.f32 %v4858_v5, %v4861_v6  ;;  %v4337_v45 = vadd.f32 %v4304_v7, %v8155_v12 }
 0x50a   : > { %v4738_v2 = vadd.f32 %v4699_v15, %v4603_v30  ;;  %v4829_v47 = vpack.c.bf16 %v4828_v11, %v4828_v11  ;;  %v4896_v3 = vmax.f32 %v4892_v34, %v4895_v43  ;;  %v4930_v22 = vmax.f32 %v4926_v24, %v4929_v17  ;;  %v4306_v42 = vpop.f32.mrf.mxu1 }
 0x50b   : > { %v4863_v44 = vpack.c.bf16 %v4862_v9, %v4862_v9  ;;  %v4606_v55 = vadd.f32 %v4571_v56, %v4471_v14  ;;  %v4472_v61 = vadd.f32 %v8242_v10, %v4337_v45  ;;  %v4338_v58 = vadd.f32 %v4306_v42, %v8159_v60 }
 0x50c   : > { %v4756_v59 = vmax.f32 %v4738_v2, 0.0  ;;  %6496 = vmatmul.msk.bf16.vlgmr.msrb.gmra.mxu2 %vm1347_vm0, %v4829_v47  ;;  %v4897_v57 = vpack.c.bf16 %v4896_v3, %v4896_v3  ;;  %v4931_v5 = vpack.c.bf16 %v4930_v22, %v4930_v22  ;;  %v6820_v3 = vld [vmem:[%s8445_s5 + $0x58] sm:$0xff] }
 0x50d   : > { %6503 = vmatmul.msk.bf16.vlgmr.msrb.gmra.mxu3 %vm1347_vm0, %v4863_v44  ;;  %5053 = vmatpush.bf16.msrb.mxu2 %v6816_v50  ;;  %v4958_v6 = vld [vmem:[#allocation3 + $0x1c] sm:$0x1]  ;;  %v4959_v38 = vld [vmem:[#allocation3 + $0x1d] sm:$0x1]  ;;  %v4992_v40 = vld [vmem:[#allocation3 + $0x1e] sm:$0x1]  ;;  %v4576_v29 = vpop.f32.mrf.mxu3  ;;  %v4607_v39 = vadd.f32 %v4574_v33, %v4472_v61  ;;  %v4473_v33 = vadd.f32 %v8254_v26, %v4338_v58 }
 0x50e   : > { %4774 = vst.msk [vmem:[#allocation3 + $0x20] sm:$0xff] %vm1347_vm0, %v4756_v59  ;;  %5087 = vmatpush.bf16.msrb.mxu3 %v6817_v54  ;;  %v4993_v11 = vld [vmem:[#allocation3 + $0x1f] sm:$0x1]  ;;  %v4960_v25 = vmax.f32 %v4958_v6, %v4959_v38 }
 0x50f   : > { %v4994_v23 = vmax.f32 %v4992_v40, %v4993_v11  ;;  %v4608_v42 = vadd.f32 %v4576_v29, %v4473_v33 }
 0x510   : > { %v4444_v56 = vpop.f32.mrf.mxu2 }
 0x511   : > { %v4701_v53 = vpop.f32.mrf.mxu0 }
 0x512   : > { %v4739_v48 = vadd.f32 %v4701_v53, %v4604_v16  ;;  %v4309_v19 = vpop.f32.mrf.mxu1 }
 0x513   : > { %v4339_v26 = vadd.f32 %v4309_v19, %v8162_v18 }
 0x514   : > { %v4757_v46 = vmax.f32 %v4739_v48, 0.0  ;;  %6510 = vmatmul.msk.bf16.vlgmr.msra.gmra.mxu1 %vm1347_vm0, %v4897_v57 }
 0x515   : > { %5121 = vmatpush.bf16.msra.mxu1 %v6818_v51  ;;  %v5026_v59 = vld [vmem:[#allocation3 + $0x20] sm:$0x1]  ;;  %v5027_v34 = vld [vmem:[#allocation3 + $0x21] sm:$0x1]  ;;  %v4579_v22 = vpop.f32.mrf.mxu3  ;;  %v5061_v10 = vld [vmem:[#allocation3 + $0x23] sm:$0x1] }
 0x516   : > { %4775 = vst.msk [vmem:[#allocation3 + $0x28] sm:$0xff] %vm1347_vm0, %v4757_v46  ;;  %v5028_v57 = vmax.f32 %v5026_v59, %v5027_v34  ;;  %v5094_v38 = vld [vmem:[#allocation3 + $0x24] sm:$0x1]  ;;  %v5095_v14 = vld [vmem:[#allocation3 + $0x25] sm:$0x1] }
 0x519   : > { %v4704_v49 = vpop.f32.mrf.mxu0 }
 0x51a   : > { %v4740_v21 = vadd.f32 %v4704_v49, %v4605_v8  ;;  %v5060_v49 = vld [vmem:[#allocation3 + $0x22] sm:$0x1]  ;;  %v4311_v40 = vpop.f32.mrf.mxu1 }
 0x51c   : > { %v4758_v30 = vmax.f32 %v4740_v21, 0.0  ;;  %6517 = vmatmul.msk.bf16.vlgmr.msra.gmra.mxu2 %vm1347_vm0, %v4931_v5 }
 0x51d   : > { %v4961_v15 = vld [vmem:[#allocation3 + $0x2a] sm:$0x1]  ;;  %v4962_v9 = vld [vmem:[#allocation3 + $0x2b] sm:$0x1]  ;;  %v4995_v20 = vld [vmem:[#allocation3 + $0x2c] sm:$0x1]  ;;  %5155 = vmatpush.bf16.msra.mxu2 %v6819_v13 }
 0x51e   : > { %4776 = vst.msk [vmem:[#allocation3 + $0x30] sm:$0xff] %vm1347_vm0, %v4758_v30  ;;  %v4963_v50 = vmax.f32 %v4961_v15, %v4962_v9  ;;  %v4996_v31 = vld [vmem:[#allocation3 + $0x2d] sm:$0x1]  ;;  %v5029_v47 = vld [vmem:[#allocation3 + $0x2e] sm:$0x1]  ;;  %v6822_v13 = vld [vmem:[%s8445_s5 + $0x68] sm:$0xff]  ;;  %v5062_v15 = vmax.f32 %v5060_v49, %v5061_v10  ;;  %v4446_v9 = vpop.f32.mrf.mxu2  ;;  %v3802_v49 = vadd.f32 %v8078_v27, %v8081_v37 }
 0x51f   : > { %v4997_v2 = vmax.f32 %v4995_v20, %v4996_v31  ;;  %v5030_v43 = vld [vmem:[#allocation3 + $0x2f] sm:$0x1]  ;;  %v5096_v20 = vmax.f32 %v5094_v38, %v5095_v14  ;;  %v6823_v31 = vld [vmem:[%s8445_s5 + $0x70] sm:$0xff]  ;;  %v6826_v27 = vld [vmem:[%s8445_s5 + $0x88] sm:$0xff] }
 0x520   : > { %v4964_v54 = vmax.f32 %v4960_v25, %v4963_v50  ;;  %v5031_v32 = vmax.f32 %v5029_v47, %v5030_v43  ;;  %v6824_v47 = vld [vmem:[%s8445_s5 + $0x78] sm:$0xff]  ;;  %v4581_v43 = vpop.f32.mrf.mxu3  ;;  %v3937_v38 = vadd.f32 %v8085_v4, %v3802_v49  ;;  %v6827_v4 = vld [vmem:[%s8445_s5 + $0x90] sm:$0xff] }
 0x521   : > { %v4706_v44 = vpop.f32.mrf.mxu0  ;;  %v4998_v28 = vmax.f32 %v4994_v23, %v4997_v2 }
 0x522   : > { %v4741_v16 = vadd.f32 %v4706_v44, %v4606_v55  ;;  %v4965_v53 = vpack.c.bf16 %v4964_v54, %v4964_v54  ;;  %v5032_v12 = vmax.f32 %v5028_v57, %v5031_v32  ;;  %v4314_v18 = vpop.f32.mrf.mxu1 }
 0x523   : > { %v4999_v51 = vpack.c.bf16 %v4998_v28, %v4998_v28  ;;  %v4474_v28 = vadd.f32 %v4444_v56, %v4339_v26  ;;  %v4340_v56 = vadd.f32 %v4311_v40, %v8166_v0  ;;  %v4341_v37 = vadd.f32 %v4314_v18, %v8169_v1 }
 0x524   : > { %v4759_v48 = vmax.f32 %v4741_v16, 0.0  ;;  %6524 = vmatmul.msk.bf16.vlgmr.msra.gmra.mxu3 %vm1347_vm0, %v4965_v53  ;;  %v5033_v5 = vpack.c.bf16 %v5032_v12, %v5032_v12 }
 0x525   : > { %6531 = vmatmul.msk.bf16.vlgmr.msrb.gmra.mxu1 %vm1347_vm0, %v4999_v51  ;;  %5189 = vmatpush.bf16.msra.mxu3 %v6820_v3  ;;  %v5063_v7 = vld [vmem:[#allocation3 + $0x30] sm:$0x1]  ;;  %v5064_v17 = vld [vmem:[#allocation3 + $0x31] sm:$0x1]  ;;  %v5097_v46 = vld [vmem:[#allocation3 + $0x32] sm:$0x1]  ;;  %v4609_v16 = vadd.f32 %v4579_v22, %v4474_v28  ;;  %v4475_v12 = vadd.f32 %v4446_v9, %v4340_v56 }
 0x526   : > { %4777 = vst.msk [vmem:[#allocation3 + $0x38] sm:$0xff] %vm1347_vm0, %v4759_v48  ;;  %5223 = vmatpush.bf16.msrb.mxu1 %v6821_v35  ;;  %v5098_v24 = vld [vmem:[#allocation3 + $0x33] sm:$0x1]  ;;  %v5065_v6 = vmax.f32 %v5063_v7, %v5064_v17  ;;  %v4449_v19 = vpop.f32.mrf.mxu2 }
 0x527   : > { %v5099_v30 = vmax.f32 %v5097_v46, %v5098_v24  ;;  %v6825_v35 = vld [vmem:[%s8445_s5 + $0x80] sm:$0xff]  ;;  %v4610_v14 = vadd.f32 %v4581_v43, %v4475_v12  ;;  %v4476_v26 = vadd.f32 %v4449_v19, %v4341_v37 }
 0x528   : > { %v5066_v25 = vmax.f32 %v5062_v15, %v5065_v6  ;;  %v4584_v46 = vpop.f32.mrf.mxu3 }
 0x529   : > { %v4709_v8 = vpop.f32.mrf.mxu0  ;;  %v5100_v60 = vmax.f32 %v5096_v20, %v5099_v30 }
 0x52a   : > { %v4742_v21 = vadd.f32 %v4709_v8, %v4607_v39  ;;  %v5067_v2 = vpack.c.bf16 %v5066_v25, %v5066_v25  ;;  %v4316_v30 = vpop.f32.mrf.mxu1 }
 0x52b   : > { %v5101_v55 = vpack.c.bf16 %v5100_v60, %v5100_v60 }
 0x52c   : > { %v4760_v11 = vmax.f32 %v4742_v21, 0.0  ;;  %6538 = vmatmul.msk.bf16.vlgmr.msrb.gmra.mxu2 %vm1347_vm0, %v5033_v5 }
 0x52d   : > { %5257 = vmatpush.bf16.msrb.mxu2 %v6822_v13  ;;  %v5128_v54 = vld [vmem:[#allocation3 + $0x38] sm:$0x1]  ;;  %v5129_v44 = vld [vmem:[#allocation3 + $0x39] sm:$0x1]  ;;  %v5162_v48 = vld [vmem:[#allocation3 + $0x3a] sm:$0x1] }
 0x52e   : > { %4778 = vst.msk [vmem:[#allocation3 + $0x40] sm:$0xff] %vm1347_vm0, %v4760_v11  ;;  %v5130_v3 = vmax.f32 %v5128_v54, %v5129_v44  ;;  %v5163_v57 = vld [vmem:[#allocation3 + $0x3b] sm:$0x1]  ;;  %v5196_v17 = vld [vmem:[#allocation3 + $0x3c] sm:$0x1]  ;;  %v4451_v40 = vpop.f32.mrf.mxu2  ;;  %v4611_v44 = vadd.f32 %v4584_v46, %v4476_v26 }
 0x52f   : > { %v5197_v39 = vld [vmem:[#allocation3 + $0x3d] sm:$0x1]  ;;  %v5164_v0 = vmax.f32 %v5162_v48, %v5163_v57  ;;  %v5230_v9 = vld [vmem:[#allocation3 + $0x3e] sm:$0x1]  ;;  %v5231_v20 = vld [vmem:[#allocation3 + $0x3f] sm:$0x1] }
 0x530   : > { %v5198_v58 = vmax.f32 %v5196_v17, %v5197_v39  ;;  %v4586_v43 = vpop.f32.mrf.mxu3  ;;  %v6829_v48 = vld [vmem:[%s8445_s5 + $0xa0] sm:$0xff] }
 0x531   : > { %v4711_v50 = vpop.f32.mrf.mxu0 }
 0x532   : > { %v4743_v23 = vadd.f32 %v4711_v50, %v4608_v42  ;;  %v4319_v18 = vpop.f32.mrf.mxu1 }
 0x533   : > { %v4343_v57 = vadd.f32 %v4319_v18, %v8178_v62  ;;  %v6832_v18 = vld [vmem:[%s8445_s5 + $0xb8] sm:$0xff] }
 0x534   : > { %v4761_v59 = vmax.f32 %v4743_v23, 0.0  ;;  %6545 = vmatmul.msk.bf16.vlgmr.msrb.gmra.mxu3 %vm1347_vm0, %v5067_v2  ;;  %v5232_v2 = vmax.f32 %v5230_v9, %v5231_v20 }
 0x535   : > { %6552 = vmatmul.msk.bf16.vlgmr.msra.gmra.mxu1 %vm1347_vm0, %v5101_v55  ;;  %v5131_v29 = vld [vmem:[#allocation3 + $0x46] sm:$0x1]  ;;  %v5132_v34 = vld [vmem:[#allocation3 + $0x47] sm:$0x1]  ;;  %5291 = vmatpush.bf16.msrb.mxu3 %v6823_v31  ;;  %v4072_v31 = vadd.f32 %v8087_v52, %v3937_v38  ;;  %v5264_v52 = vld [vmem:[#allocation3 + $0x40] sm:$0x1] }
 0x536   : > { %4779 = vst.msk [vmem:[#allocation3 + $0x48] sm:$0xff] %vm1347_vm0, %v4761_v59  ;;  %v5133_v45 = vmax.f32 %v5131_v29, %v5132_v34  ;;  %5325 = vmatpush.bf16.msra.mxu1 %v6824_v47  ;;  %v5265_v59 = vld [vmem:[#allocation3 + $0x41] sm:$0x1]  ;;  %v6828_v29 = vld [vmem:[%s8445_s5 + $0x98] sm:$0xff]  ;;  %v4454_v19 = vpop.f32.mrf.mxu2 }
 0x537   : > { %v4207_v1 = vadd.f32 %v8173_v41, %v4072_v31  ;;  %v4478_v46 = vadd.f32 %v4454_v19, %v4343_v57 }
 0x538   : > { %v5134_v53 = vmax.f32 %v5130_v3, %v5133_v45 }
 0x539   : > { %v4714_v32 = vpop.f32.mrf.mxu0  ;;  %v4342_v34 = vadd.f32 %v4316_v30, %v4207_v1 }
 0x53a   : > { %v4744_v51 = vadd.f32 %v4714_v32, %v4609_v16  ;;  %v5135_v61 = vpack.c.bf16 %v5134_v53, %v5134_v53  ;;  %v5266_v32 = vmax.f32 %v5264_v52, %v5265_v59 }
 0x53b   : > { %v4477_v16 = vadd.f32 %v4451_v40, %v4342_v34 }
 0x53c   : > { %v4762_v7 = vmax.f32 %v4744_v51, 0.0  ;;  %6559 = vmatmul.msk.bf16.vlgmr.msra.gmra.mxu2 %vm1347_vm0, %v5135_v61  ;;  %v4589_v51 = vpop.f32.mrf.mxu3 }
 0x53d   : > { %v5165_v24 = vld [vmem:[#allocation3 + $0x48] sm:$0x1]  ;;  %v5166_v22 = vld [vmem:[#allocation3 + $0x49] sm:$0x1]  ;;  %v5199_v8 = vld [vmem:[#allocation3 + $0x4a] sm:$0x1]  ;;  %5359 = vmatpush.bf16.msra.mxu2 %v6825_v35  ;;  %v4612_v56 = vadd.f32 %v4586_v43, %v4477_v16 }
 0x53e   : > { %4780 = vst.msk [vmem:[#allocation3 + $0x50] sm:$0xff] %vm1347_vm0, %v4762_v7  ;;  %v5167_v10 = vmax.f32 %v5165_v24, %v5166_v22  ;;  %v5200_v13 = vld [vmem:[#allocation3 + $0x4b] sm:$0x1]  ;;  %v5233_v5 = vld [vmem:[#allocation3 + $0x4c] sm:$0x1]  ;;  %v4321_v24 = vpop.f32.mrf.mxu1 }
 0x53f   : > { %v5201_v21 = vmax.f32 %v5199_v8, %v5200_v13  ;;  %v5234_v6 = vld [vmem:[#allocation3 + $0x4d] sm:$0x1]  ;;  %v5267_v55 = vld [vmem:[#allocation3 + $0x4e] sm:$0x1]  ;;  %v5268_v54 = vld [vmem:[#allocation3 + $0x4f] sm:$0x1]  ;;  %v4344_v37 = vadd.f32 %v4321_v24, %v8184_v36 }
 0x540   : > { %v5168_v33 = vmax.f32 %v5164_v0, %v5167_v10  ;;  %v5235_v42 = vmax.f32 %v5233_v5, %v5234_v6  ;;  %v5269_v41 = vmax.f32 %v5267_v55, %v5268_v54  ;;  %v4456_v0 = vpop.f32.mrf.mxu2 }
 0x541   : > { %v4716_v11 = vpop.f32.mrf.mxu0  ;;  %v5202_v15 = vmax.f32 %v5198_v58, %v5201_v21  ;;  %v4479_v26 = vadd.f32 %v4456_v0, %v4344_v37 }
 0x542   : > { %v4745_v25 = vadd.f32 %v4716_v11, %v4610_v14  ;;  %v5169_v60 = vpack.c.bf16 %v5168_v33, %v5168_v33  ;;  %v5236_v47 = vmax.f32 %v5232_v2, %v5235_v42  ;;  %v5270_v35 = vmax.f32 %v5266_v32, %v5269_v41 }
 0x543   : > { %v5203_v50 = vpack.c.bf16 %v5202_v15, %v5202_v15  ;;  %v4613_v33 = vadd.f32 %v4589_v51, %v4478_v46  ;;  %v6833_v46 = vld [vmem:[%s8445_s5 + $0xc0] sm:$0xff] }
 0x544   : > { %v4763_v23 = vmax.f32 %v4745_v25, 0.0  ;;  %6566 = vmatmul.msk.bf16.vlgmr.msra.gmra.mxu3 %vm1347_vm0, %v5169_v60  ;;  %v5237_v45 = vpack.c.bf16 %v5236_v47, %v5236_v47  ;;  %v5271_v7 = vpack.c.bf16 %v5270_v35, %v5270_v35  ;;  %v6841_v47 = vld [vmem:[%s8447_s7 + $0x38] sm:$0xff] }
 0x545   : > { %6573 = vmatmul.msk.bf16.vlgmr.msrb.gmra.mxu1 %vm1347_vm0, %v5203_v50  ;;  %5393 = vmatpush.bf16.msra.mxu3 %v6826_v27  ;;  %v5298_v17 = vld [vmem:[#allocation3 + $0x54] sm:$0x1]  ;;  %v5299_v39 = vld [vmem:[#allocation3 + $0x55] sm:$0x1]  ;;  %v5332_v8 = vld [vmem:[#allocation3 + $0x56] sm:$0x1]  ;;  %v4591_v50 = vpop.f32.mrf.mxu3 }
 0x546   : > { %4781 = vst.msk [vmem:[#allocation3 + $0x58] sm:$0xff] %vm1347_vm0, %v4763_v23  ;;  %5427 = vmatpush.bf16.msrb.mxu1 %v6827_v4  ;;  %v5333_v49 = vld [vmem:[#allocation3 + $0x57] sm:$0x1]  ;;  %v5300_v21 = vmax.f32 %v5298_v17, %v5299_v39  ;;  %v6830_v27 = vld [vmem:[%s8445_s5 + $0xa8] sm:$0xff]  ;;  %v6831_v4 = vld [vmem:[%s8445_s5 + $0xb0] sm:$0xff]  ;;  %v4324_v1 = vpop.f32.mrf.mxu1  ;;  %5705 = vmatpush.bf16.msra.mxu0 %v6841_v47 }
 0x547   : > { %v5334_v6 = vmax.f32 %v5332_v8, %v5333_v49 }
 0x548   : > { %v4459_v43 = vpop.f32.mrf.mxu2 }
 0x549   : > { %v4719_v28 = vpop.f32.mrf.mxu0 }
 0x54a   : > { %v4746_v3 = vadd.f32 %v4719_v28, %v4611_v44  ;;  %v4614_v44 = vadd.f32 %v4591_v50, %v4479_v26 }
 0x54c   : > { %v4764_v53 = vmax.f32 %v4746_v3, 0.0  ;;  %6580 = vmatmul.msk.bf16.vlgmr.msrb.gmra.mxu2 %vm1347_vm0, %v5237_v45  ;;  %v4345_v3 = vadd.f32 %v4324_v1, %v8187_v63 }
 0x54d   : > { %5461 = vmatpush.bf16.msrb.mxu2 %v6828_v29  ;;  %v5366_v9 = vld [vmem:[#allocation3 + $0x58] sm:$0x1]  ;;  %v5367_v20 = vld [vmem:[#allocation3 + $0x59] sm:$0x1]  ;;  %v5400_v29 = vld [vmem:[#allocation3 + $0x5a] sm:$0x1] }
 0x54e   : > { %4782 = vst.msk [vmem:[#allocation3 + $0x60] sm:$0xff] %vm1347_vm0, %v4764_v53  ;;  %v5368_v2 = vmax.f32 %v5366_v9, %v5367_v20  ;;  %v5401_v34 = vld [vmem:[#allocation3 + $0x5b] sm:$0x1]  ;;  %v5434_v16 = vld [vmem:[#allocation3 + $0x5c] sm:$0x1]  ;;  %v4480_v35 = vadd.f32 %v4459_v43, %v4345_v3  ;;  %v4326_v63 = vpop.f32.mrf.mxu1 }
 0x54f   : > { %v5435_v53 = vld [vmem:[#allocation3 + $0x5d] sm:$0x1]  ;;  %v5402_v51 = vmax.f32 %v5400_v29, %v5401_v34 }
 0x550   : > { %v4461_v17 = vpop.f32.mrf.mxu2  ;;  %v6839_v3 = vld [vmem:[%s8447_s7 + $0x28] sm:$0xff] }
 0x551   : > { %v4721_v61 = vpop.f32.mrf.mxu0 }
 0x552   : > { %v4747_v12 = vadd.f32 %v4721_v61, %v4612_v56  ;;  %v4594_v61 = vpop.f32.mrf.mxu3 }
 0x554   : > { %v4765_v22 = vmax.f32 %v4747_v12, 0.0  ;;  %6587 = vmatmul.msk.bf16.vlgmr.msrb.gmra.mxu3 %vm1347_vm0, %v5271_v7  ;;  %v4615_v7 = vadd.f32 %v4594_v61, %v4480_v35 }
 0x555   : > { %v5301_v10 = vld [vmem:[#allocation3 + $0x62] sm:$0x1]  ;;  %v5302_v13 = vld [vmem:[#allocation3 + $0x63] sm:$0x1]  ;;  %v5335_v58 = vld [vmem:[#allocation3 + $0x64] sm:$0x1]  ;;  %5495 = vmatpush.bf16.msrb.mxu3 %v6829_v48  ;;  %v5436_v48 = vmax.f32 %v5434_v16, %v5435_v53 }
 0x556   : > { %4783 = vst.msk [vmem:[#allocation3 + $0x68] sm:$0xff] %vm1347_vm0, %v4765_v22  ;;  %v5303_v62 = vmax.f32 %v5301_v10, %v5302_v13  ;;  %v5336_v5 = vld [vmem:[#allocation3 + $0x65] sm:$0x1]  ;;  %v5369_v14 = vld [vmem:[#allocation3 + $0x66] sm:$0x1] }
 0x557   : > { %v5337_v38 = vmax.f32 %v5335_v58, %v5336_v5  ;;  %v5370_v30 = vld [vmem:[#allocation3 + $0x67] sm:$0x1]  ;;  %v4788_v53 = vld [vmem:[%s8446_s6] sm:$0x1] }
 0x558   : > { %v5304_v40 = vmax.f32 %v5300_v21, %v5303_v62  ;;  %v5371_v42 = vmax.f32 %v5369_v14, %v5370_v30 }
 0x559   : > { %v4724_v11 = vpop.f32.mrf.mxu0  ;;  %v5338_v15 = vmax.f32 %v5334_v6, %v5337_v38 }
 0x55a   : > { %v4748_v25 = vadd.f32 %v4724_v11, %v4613_v33  ;;  %v5305_v60 = vpack.c.bf16 %v5304_v40, %v5304_v40  ;;  %v5372_v36 = vmax.f32 %v5368_v2, %v5371_v42  ;;  %v4596_v5 = vpop.f32.mrf.mxu3 }
 0x55b   : > { %v5339_v31 = vpack.c.bf16 %v5338_v15, %v5338_v15  ;;  %v6840_v15 = vld [vmem:[%s8447_s7 + $0x30] sm:$0xff] }
 0x55c   : > { %v4766_v23 = vmax.f32 %v4748_v25, 0.0  ;;  %6594 = vmatmul.msk.bf16.vlgmr.msra.gmra.mxu1 %vm1347_vm0, %v5305_v60  ;;  %v5373_v41 = vpack.c.bf16 %v5372_v36, %v5372_v36  ;;  %5706 = vmatpush.bf16.msra.mxu0 %v6840_v15 }
 0x55d   : > { %6601 = vmatmul.msk.bf16.vlgmr.msra.gmra.mxu2 %vm1347_vm0, %v5339_v31  ;;  %5529 = vmatpush.bf16.msra.mxu1 %v6830_v27  ;;  %v5403_v55 = vld [vmem:[#allocation3 + $0x68] sm:$0x1]  ;;  %v5404_v54 = vld [vmem:[#allocation3 + $0x69] sm:$0x1]  ;;  %v5437_v28 = vld [vmem:[#allocation3 + $0x6a] sm:$0x1] }
 0x55e   : > { %4784 = vst.msk [vmem:[#allocation3 + $0x70] sm:$0xff] %vm1347_vm0, %v4766_v23  ;;  %5563 = vmatpush.bf16.msra.mxu2 %v6831_v4  ;;  %v5438_v52 = vld [vmem:[#allocation3 + $0x6b] sm:$0x1]  ;;  %v5405_v19 = vmax.f32 %v5403_v55, %v5404_v54 }
 0x55f   : > { %v5439_v32 = vmax.f32 %v5437_v28, %v5438_v52 }
 0x560   : > { %v5406_v57 = vmax.f32 %v5402_v51, %v5405_v19  ;;  %5707 = vmatpush.bf16.msra.mxu0 %v6839_v3  ;;  %v6848_v3 = vld [vmem:[%s8449_s9 + $0x30] sm:$0xff] }
 0x561   : > { %v4726_v59 = vpop.f32.mrf.mxu0  ;;  %v5440_v12 = vmax.f32 %v5436_v48, %v5439_v32 }
 0x562   : > { %v4749_v45 = vadd.f32 %v4726_v59, %v4614_v44  ;;  %v5407_v22 = vpack.c.bf16 %v5406_v57, %v5406_v57  ;;  %v6838_v57 = vld [vmem:[%s8447_s7 + $0x20] sm:$0xff] }
 0x563   : > { %v5441_v8 = vpack.c.bf16 %v5440_v12, %v5440_v12 }
 0x564   : > { %v4767_v56 = vmax.f32 %v4749_v45, 0.0  ;;  %6608 = vmatmul.msk.bf16.vlgmr.msra.gmra.mxu3 %vm1347_vm0, %v5373_v41  ;;  %5708 = vmatpush.bf16.msra.mxu0 %v6838_v57  ;;  %v6845_v57 = vld [vmem:[%s8449_s9 + $0x18] sm:$0xff] }
 0x565   : > { %5597 = vmatpush.bf16.msra.mxu3 %v6832_v18  ;;  %v5468_v49 = vld [vmem:[#allocation3 + $0x70] sm:$0x1]  ;;  %v5469_v0 = vld [vmem:[#allocation3 + $0x71] sm:$0x1]  ;;  %v5502_v30 = vld [vmem:[#allocation3 + $0x72] sm:$0x1] }
 0x566   : > { %4785 = vst.msk [vmem:[#allocation3 + $0x78] sm:$0xff] %vm1347_vm0, %v4767_v56  ;;  %v5470_v21 = vmax.f32 %v5468_v49, %v5469_v0  ;;  %v5503_v33 = vld [vmem:[#allocation3 + $0x73] sm:$0x1]  ;;  %v5536_v40 = vld [vmem:[#allocation3 + $0x74] sm:$0x1]  ;;  %v6837_v0 = vld [vmem:[%s8447_s7 + $0x18] sm:$0xff] }
 0x567   : > { %v5537_v11 = vld [vmem:[#allocation3 + $0x75] sm:$0x1]  ;;  %v5504_v37 = vmax.f32 %v5502_v30, %v5503_v33  ;;  %v5570_v2 = vld [vmem:[#allocation3 + $0x76] sm:$0x1]  ;;  %v5571_v1 = vld [vmem:[#allocation3 + $0x77] sm:$0x1] }
 0x568   : > { %v5538_v42 = vmax.f32 %v5536_v40, %v5537_v11  ;;  %v5572_v55 = vmax.f32 %v5570_v2, %v5571_v1  ;;  %5709 = vmatpush.bf16.msra.mxu0 %v6837_v0 }
 0x569   : > { %v4729_v39 = vpop.f32.mrf.mxu0 }
 0x56a   : > { %v4750_v24 = vadd.f32 %v4729_v39, %v4615_v7 }
 0x56c   : > { %v4768_v10 = vmax.f32 %v4750_v24, 0.0  ;;  %6615 = vmatmul.msk.bf16.vlgmr.msrb.gmra.mxu1 %vm1347_vm0, %v5407_v22 }
 0x56d   : > { %6622 = vmatmul.msk.bf16.vlgmr.msrb.gmra.mxu2 %vm1347_vm0, %v5441_v8  ;;  %v5471_v13 = vld [vmem:[#allocation3 + $0x7e] sm:$0x1]  ;;  %v5472_v58 = vld [vmem:[#allocation3 + $0x7f] sm:$0x1]  ;;  %5631 = vmatpush.bf16.msrb.mxu1 %v6833_v46  ;;  %v5604_v59 = vld [vmem:[#allocation3 + $0x78] sm:$0x1] }
 0x56e   : > { %4786 = vst.msk [vmem:[#allocation3 + $0x80] sm:$0xff] %vm1347_vm0, %v4768_v10  ;;  %v5473_v62 = vmax.f32 %v5471_v13, %v5472_v58  ;;  %v5605_v29 = vld [vmem:[#allocation3 + $0x79] sm:$0x1] }
 0x56f   : > { %v5606_v45 = vmax.f32 %v5604_v59, %v5605_v29 }
 0x570   : > { %v5474_v6 = vmax.f32 %v5470_v21, %v5473_v62 }
 0x571   : > { %v4731_v38 = vpop.f32.mrf.mxu0 }
 0x572   : > { %v5475_v14 = vpack.c.bf16 %v5474_v6, %v5474_v6 }
 0x574   : > { %6629 = vmatmul.msk.bf16.vlgmr.msrb.gmra.mxu3 %vm1347_vm0, %v5475_v14  ;;  %v6836_v14 = vld [vmem:[%s8447_s7 + $0x10] sm:$0xff] }
 0x575   : > { %v5505_v9 = vld [vmem:[#allocation3 + $0x80] sm:$0x1]  ;;  %v5506_v20 = vld [vmem:[#allocation3 + $0x81] sm:$0x1]  ;;  %v5539_v27 = vld [vmem:[#allocation3 + $0x82] sm:$0x1]  ;;  %5710 = vmatpush.bf16.msra.mxu0 %v6836_v14 }
 0x576   : > { %v5507_v25 = vmax.f32 %v5505_v9, %v5506_v20  ;;  %v5540_v60 = vld [vmem:[#allocation3 + $0x83] sm:$0x1]  ;;  %v5573_v50 = vld [vmem:[#allocation3 + $0x84] sm:$0x1]  ;;  %v5574_v31 = vld [vmem:[#allocation3 + $0x85] sm:$0x1] }
 0x577   : > { %v5541_v4 = vmax.f32 %v5539_v27, %v5540_v60  ;;  %v5575_v47 = vmax.f32 %v5573_v50, %v5574_v31  ;;  %v5607_v44 = vld [vmem:[#allocation3 + $0x86] sm:$0x1]  ;;  %v5608_v28 = vld [vmem:[#allocation3 + $0x87] sm:$0x1]  ;;  %v6835_v20 = vld [vmem:[%s8447_s7 + $0x8] sm:$0xff] }
 0x578   : > { %v5508_v26 = vmax.f32 %v5504_v37, %v5507_v25  ;;  %v5609_v18 = vmax.f32 %v5607_v44, %v5608_v28 }
 0x579   : > { %v5542_v23 = vmax.f32 %v5538_v42, %v5541_v4  ;;  %v5576_v54 = vmax.f32 %v5572_v55, %v5575_v47  ;;  %5711 = vmatpush.bf16.msra.mxu0 %v6835_v20  ;;  %v6834_v4 = vld [vmem:[%s8447_s7] sm:$0xff] }
 0x57a   : > { %v5509_v36 = vpack.c.bf16 %v5508_v26, %v5508_v26  ;;  %v5610_v41 = vmax.f32 %v5606_v45, %v5609_v18  ;;  %v6849_v18 = vld [vmem:[%s8449_s9 + $0x38] sm:$0xff] }
 0x57b   : > { %v5543_v43 = vpack.c.bf16 %v5542_v23, %v5542_v23  ;;  %v5577_v34 = vpack.c.bf16 %v5576_v54, %v5576_v54  ;;  %5785 = vmatpush.bf16.msrb.mxu2 %v6849_v18 }
 0x57c   : > { %6636 = vmatmul.msk.bf16.vlgmr.msra.gmra.mxu1 %vm1347_vm0, %v5509_v36  ;;  %v5611_v16 = vpack.c.bf16 %v5610_v41, %v5610_v41 }
 0x57d   : > { %6643 = vmatmul.msk.bf16.vlgmr.msra.gmra.mxu2 %vm1347_vm0, %v5543_v43  ;;  %5712 = vmatpush.bf16.msra.mxu0 %v6834_v4 }
 0x57f   : > { %5786 = vmatpush.bf16.msrb.mxu2 %v6848_v3 }
 0x581   : > { %v4817_v52 = vpop.f32.mrf.mxu1 }
 0x582   : > { %v4821_v32 = vadd.f32 %v4817_v52, %v4788_v53 }
 0x584   : > { %6650 = vmatmul.msk.bf16.vlgmr.msra.gmra.mxu3 %vm1347_vm0, %v5577_v34 }
 0x589   : > { %v4819_v19 = vpop.f32.mrf.mxu1 }
 0x58c   : > { %6657 = vmatmul.msk.bf16.vlgmr.msrb.gmra.mxu1 %vm1347_vm0, %v5611_v16  ;;  %v6847_v16 = vld [vmem:[%s8449_s9 + $0x28] sm:$0xff] }
 0x58d   : > { %5787 = vmatpush.bf16.msrb.mxu2 %v6847_v16 }
 0x58f   : > { %v4851_v35 = vpop.f32.mrf.mxu2 }
 0x590   : > { %v4855_v56 = vadd.f32 %v4851_v35, %v4821_v32  ;;  %v4885_v51 = vpop.f32.mrf.mxu3 }
 0x591   : > { %v4919_v61 = vpop.f32.mrf.mxu1 }
 0x592   : > { %v4889_v48 = vadd.f32 %v4885_v51, %v4855_v56  ;;  %v6846_v56 = vld [vmem:[%s8449_s9 + $0x20] sm:$0xff] }
 0x593   : > { %5788 = vmatpush.bf16.msrb.mxu2 %v6846_v56 }
 0x594   : > { %v4923_v12 = vadd.f32 %v4919_v61, %v4889_v48 }
 0x597   : > { %v4853_v7 = vpop.f32.mrf.mxu2  ;;  %5789 = vmatpush.bf16.msrb.mxu2 %v6845_v57 }
 0x598   : > { %v4887_v63 = vpop.f32.mrf.mxu3 }
 0x599   : > { %v4921_v17 = vpop.f32.mrf.mxu1 }
 0x59a   : > { %v6844_v17 = vld [vmem:[%s8449_s9 + $0x10] sm:$0xff] }
 0x59b   : > { %5790 = vmatpush.bf16.msrb.mxu2 %v6844_v17 }
 0x59f   : > { %v4953_v39 = vpop.f32.mrf.mxu2 }
 0x5a0   : > { %v4957_v46 = vadd.f32 %v4953_v39, %v4923_v12 }
 0x5a2   : > { %v5021_v24 = vpop.f32.mrf.mxu1 }
 0x5a7   : > { %v4955_v22 = vpop.f32.mrf.mxu2  ;;  %v4987_v8 = vpop.f32.mrf.mxu3 }
 0x5a8   : > { %v4991_v49 = vadd.f32 %v4987_v8, %v4957_v46 }
 0x5aa   : > { %v5023_v10 = vpop.f32.mrf.mxu1  ;;  %v5025_v13 = vadd.f32 %v5021_v24, %v4991_v49 }
 0x5af   : > { %v4989_v58 = vpop.f32.mrf.mxu3  ;;  %v5055_v21 = vpop.f32.mrf.mxu2 }
 0x5b0   : > { %v5059_v50 = vadd.f32 %v5055_v21, %v5025_v13 }
 0x5b2   : > { %v5123_v62 = vpop.f32.mrf.mxu1 }
 0x5b7   : > { %v5057_v5 = vpop.f32.mrf.mxu2  ;;  %v5089_v6 = vpop.f32.mrf.mxu3 }
 0x5b8   : > { %v5093_v26 = vadd.f32 %v5089_v6, %v5059_v50  ;;  %v6842_v5 = vld [vmem:[%s8449_s9] sm:$0xff] }
 0x5b9   : > { %v5656_v6 = vld [vmem:[%s8448_s8] sm:$0x1] }
 0x5ba   : > { %v5125_v38 = vpop.f32.mrf.mxu1  ;;  %v5127_v1 = vadd.f32 %v5123_v62, %v5093_v26  ;;  %v6843_v62 = vld [vmem:[%s8449_s9 + $0x8] sm:$0xff] }
 0x5bb   : > { %5791 = vmatpush.bf16.msrb.mxu2 %v6843_v62 }
 0x5bf   : > { %v5091_v30 = vpop.f32.mrf.mxu3  ;;  %v5157_v33 = vpop.f32.mrf.mxu2  ;;  %5792 = vmatpush.bf16.msrb.mxu2 %v6842_v5 }
 0x5c0   : > { %v5161_v36 = vadd.f32 %v5157_v33, %v5127_v1 }
 0x5c2   : > { %v5225_v40 = vpop.f32.mrf.mxu1 }
 0x5c7   : > { %v5159_v11 = vpop.f32.mrf.mxu2  ;;  %v5191_v15 = vpop.f32.mrf.mxu3 }
 0x5c8   : > { %v5195_v43 = vadd.f32 %v5191_v15, %v5161_v36  ;;  %v5736_v11 = vld [vmem:[%s8450_s10] sm:$0x1] }
 0x5ca   : > { %v5227_v9 = vpop.f32.mrf.mxu1  ;;  %v5229_v44 = vadd.f32 %v5225_v40, %v5195_v43 }
 0x5cf   : > { %v5193_v27 = vpop.f32.mrf.mxu3  ;;  %v5259_v37 = vpop.f32.mrf.mxu2 }
 0x5d0   : > { %v5263_v28 = vadd.f32 %v5259_v37, %v5229_v44 }
 0x5d7   : > { %v5261_v25 = vpop.f32.mrf.mxu2  ;;  %v5293_v60 = vpop.f32.mrf.mxu3 }
 0x5d8   : > { %v5297_v59 = vadd.f32 %v5293_v60, %v5263_v28 }
 0x5d9   : > { %v5327_v42 = vpop.f32.mrf.mxu1 }
 0x5da   : > { %v5331_v45 = vadd.f32 %v5327_v42, %v5297_v59 }
 0x5df   : > { %v5295_v31 = vpop.f32.mrf.mxu3 }
 0x5e0   : > { %v5361_v23 = vpop.f32.mrf.mxu2 }
 0x5e1   : > { %v5329_v2 = vpop.f32.mrf.mxu1  ;;  %v5365_v41 = vadd.f32 %v5361_v23, %v5331_v45 }
 0x5e7   : > { %v5395_v47 = vpop.f32.mrf.mxu3 }
 0x5e8   : > { %v5363_v55 = vpop.f32.mrf.mxu2  ;;  %v5399_v53 = vadd.f32 %v5395_v47, %v5365_v41 }
 0x5e9   : > { %v5429_v54 = vpop.f32.mrf.mxu1 }
 0x5ea   : > { %v5433_v51 = vadd.f32 %v5429_v54, %v5399_v53 }
 0x5ef   : > { %v5397_v52 = vpop.f32.mrf.mxu3 }
 0x5f0   : > { %v5463_v29 = vpop.f32.mrf.mxu2 }
 0x5f1   : > { %v5431_v34 = vpop.f32.mrf.mxu1  ;;  %v5467_v61 = vadd.f32 %v5463_v29, %v5433_v51 }
 0x5f7   : > { %v5497_v19 = vpop.f32.mrf.mxu3 }
 0x5f8   : > { %v5465_v32 = vpop.f32.mrf.mxu2  ;;  %v5501_v12 = vadd.f32 %v5497_v19, %v5467_v61 }
 0x5f9   : > { %v5531_v35 = vpop.f32.mrf.mxu1 }
 0x5fa   : > { %v5535_v39 = vadd.f32 %v5531_v35, %v5501_v12 }
 0x5ff   : > { %v5499_v48 = vpop.f32.mrf.mxu3 }
 0x600   : > { %v5565_v7 = vpop.f32.mrf.mxu2 }
 0x601   : > { %v5533_v63 = vpop.f32.mrf.mxu1  ;;  %v5569_v46 = vadd.f32 %v5565_v7, %v5535_v39 }
 0x607   : > { %v5599_v24 = vpop.f32.mrf.mxu3 }
 0x608   : > { %v5567_v22 = vpop.f32.mrf.mxu2  ;;  %v5603_v8 = vadd.f32 %v5599_v24, %v5569_v46 }
 0x609   : > { %v5633_v49 = vpop.f32.mrf.mxu1 }
 0x60a   : > { %v5637_v0 = vadd.f32 %v5633_v49, %v5603_v8 }
 0x60c   : > { %v5638_v10 = vmax.f32 %v5637_v0, 0.0 }
 0x60e   : > { %v5639_v13 = vpack.c.bf16 %v5638_v10, %v5638_v10 }
 0x60f   : > { %v5601_v58 = vpop.f32.mrf.mxu3 }
 0x610   : > { %5713 = vmatmul.bf16.vlgmr.msra.gmra.mxu0 %v5639_v13 }
 0x611   : > { %v5635_v21 = vpop.f32.mrf.mxu1 }
 0x68d   : > { %v5714_v38 = vpop.f32.mrf.mxu0 }
 0x68e   : > { %v5715_v14 = vadd.f32 %v5714_v38, %v5656_v6 }
 0x690   : > { %v5718_v30 = vmax.f32 %v5715_v14, 0.0 }
 0x692   : > { %v5719_v33 = vpack.c.bf16 %v5718_v30, %v5718_v30 }
 0x694   : > { %5793 = vmatmul.bf16.vlgmr.msrb.gmra.mxu2 %v5719_v33 }
 0x695   : > { %v5716_v40 = vpop.f32.mrf.mxu0 }
 0x717   : > { %v5794_v15 = vpop.f32.mrf.mxu2 }
 0x718   : > { %v5795_v9 = vadd.f32 %v5794_v15, %v5736_v11 }
 0x71a   : > { %5798 = vst [vmem:[%s378_s25] sm:$0x1] %v5795_v9 }
 0x71b   : > { %6939 = shalt.err (!%p6936_p3)
}
 0x71c   : > { %6851 = dma.vmem_to_hbm [thread:$0]  (%p7074_p5), %s5811_s30, 16, %s5813_s12, %s5800_s13  }
 0x71f   : > { %v5796_v20 = vpop.f32.mrf.mxu2 }
 0x720 PF: > { %p6857_p4 = scmp.ge.s32.totalorder %s6974_s20, 2  ;;  %s5824_s29 = sand.u32 1, %s6962_s17  }
 0x721   : > { %s5825_s16 = scalar_lea.sflag [#allocation5], %s5824_s29 }
 0x722   : > { %p6854_p7 = pnand %p6857_p4, %p7078_p6 }
 0x724   : > { %p6855_p8 = pneg %p6854_p7 }
 0x726   : > { %6957 = dma.done.wait (%p6855_p8), %s5825_s16, 16  }
 0x727   : > { %6959 = vsyncadd (%p6855_p8), %s5825_s16, 4294967280  ;;  %p21_p9 = scmp.ge.s32.totalorder %s7061_s23, 4   ;;  %s8481_s17 = smov %s6966_s18 }
 0x728   : > { %s8482_s18 = smov %s6970_s19  ;;  %s8483_s19 = smov %s7072_s26 }
 0x729   : > { %s8484_s20 = smov %s7061_s23  ;;  %23 = sbr.rel (!%p21_p9) target bundleno = 6 (0x6), region = 147 }
 0x72e   :  { %5830 = vsyncpa [#allocation5], 1 }
 0x72f   :  { %5832 = vsyncpa [#allocation5 + $0x1], 1 }

</bundles_post_ra>
